<compile_context>
chip_gen: v7x
topology: tpu7x:2x2x1
jax: 0.10.0
libtpu: 0.0.40
codegen_flags: <defaults>
</compile_context>

<pallas_src>
import functools

import jax
import jax.numpy as jnp
import numpy as np
from jax.experimental import pallas as pl
from jax.experimental.pallas import tpu as pltpu


# ---------------------------------------------------------------------------
# Fused kernel: one batch image per grid step.
# ---------------------------------------------------------------------------
def _down_kernel(x_ref, w1_ref, b1_ref, w2_ref, b2_ref, o_ref, p1_ref, p2_ref,
                 *, ho, wo, cin, cmid, cout):
    # ---- 2x2 max-pool, entirely in VMEM ------------------------------------
    # x_ref block is (1, H*Wo, 2, Cin): the trailing 2 holds horizontal pairs.
    x = x_ref[0]                                   # (H*Wo, 2, Cin)
    hp = jnp.max(x, axis=1)                        # horizontal pairs -> (H*Wo, Cin)
    hp = hp.reshape(ho, 2, wo, cin)                # regroup row pairs (free split)
    pooled = jnp.max(hp, axis=1)                   # vertical pairs   -> (Ho, Wo, Cin)

    # ---- conv1 (3x3, pad=1) + folded BN + ReLU ------------------------------
    # Zero-initialized VMEM scratch provides the pad=1 border (no jnp.pad).
    p1_ref[...] = jnp.zeros_like(p1_ref)
    p1_ref[1:ho + 1, 1:wo + 1, :] = pooled
    cols = [p1_ref[dy:dy + ho, dx:dx + wo, :]
            for dy in range(3) for dx in range(3)]
    patches = jnp.concatenate(cols, axis=2).reshape(ho * wo, 9 * cin)
    h1 = jnp.dot(patches, w1_ref[...], preferred_element_type=jnp.float32)
    h1 = jnp.maximum(h1 + b1_ref[...], 0.0)        # (Ho*Wo, Cmid)

    # ---- conv2 (3x3, pad=1) + folded BN + ReLU ------------------------------
    p2_ref[...] = jnp.zeros_like(p2_ref)
    p2_ref[1:ho + 1, 1:wo + 1, :] = h1.reshape(ho, wo, cmid)
    cols = [p2_ref[dy:dy + ho, dx:dx + wo, :]
            for dy in range(3) for dx in range(3)]
    patches = jnp.concatenate(cols, axis=2).reshape(ho * wo, 9 * cmid)
    h2 = jnp.dot(patches, w2_ref[...], preferred_element_type=jnp.float32)
    h2 = jnp.maximum(h2 + b2_ref[...], 0.0)        # (Ho*Wo, Cout)

    # Output presented as a 2-D-per-image slab (Ho*Wo, Cout); lane-dense for
    # realistic UNet channel counts (Cout >= 128).
    o_ref[...] = h2.reshape(1, ho * wo, cout).astype(o_ref.dtype)


# ---------------------------------------------------------------------------
# Host-side parameter folding: conv bias + inference BN -> scale into weights,
# bias into a per-channel additive term; weights in im2col (9*Cin, Cout) form.
# ---------------------------------------------------------------------------
def _fold_conv_bn(w_oihw, conv_bias, gamma, beta, mean, var, eps):
    cout, cin = w_oihw.shape[0], w_oihw.shape[1]
    scale = gamma / jnp.sqrt(var + eps)                                # (Cout,)
    # (Cout,Cin,3,3) -> (3,3,Cin,Cout) -> (9*Cin, Cout), BN scale folded in.
    w = jnp.transpose(w_oihw, (2, 3, 1, 0)).reshape(9 * cin, cout)
    w = (w * scale[None, :]).astype(jnp.float32)
    b = ((conv_bias - mean) * scale + beta).reshape(1, cout).astype(jnp.float32)
    return w, b


# ---------------------------------------------------------------------------
# Down module forward (NCHW in / NCHW out, matching PyTorch).
# ---------------------------------------------------------------------------
def down_forward(x_nchw, params, eps=1e-5):
    n, cin, h, w = x_nchw.shape
    assert h % 2 == 0 and w % 2 == 0, "MaxPool2d(2) path here expects even H, W"
    ho, wo = h // 2, w // 2
    cmid = params["w1"].shape[0]
    cout = params["w2"].shape[0]

    # NCHW -> NHWC (channels on the lane axis), then a FREE contiguous reshape
    # that groups horizontal 2x2-pool partners on a trailing axis of size 2.
    x = jnp.transpose(x_nchw, (0, 2, 3, 1)).astype(jnp.float32)        # (N,H,W,C)
    x = x.reshape(n, h * wo, 2, cin)

    w1, b1 = _fold_conv_bn(params["w1"], params["b1"], params["g1"],
                           params["be1"], params["m1"], params["v1"], eps)
    w2, b2 = _fold_conv_bn(params["w2"], params["b2"], params["g2"],
                           params["be2"], params["m2"], params["v2"], eps)

    kernel = functools.partial(_down_kernel, ho=ho, wo=wo, cin=cin,
                               cmid=cmid, cout=cout)

    out = pl.pallas_call(
        kernel,
        out_shape=jax.ShapeDtypeStruct((n, ho * wo, cout), jnp.float32),
        grid=(n,),
        in_specs=[
            pl.BlockSpec((1, h * wo, 2, cin), lambda i: (i, 0, 0, 0)),
            pl.BlockSpec((9 * cin, cmid), lambda i: (0, 0)),   # VMEM-resident
            pl.BlockSpec((1, cmid), lambda i: (0, 0)),         # VMEM-resident
            pl.BlockSpec((9 * cmid, cout), lambda i: (0, 0)),  # VMEM-resident
            pl.BlockSpec((1, cout), lambda i: (0, 0)),         # VMEM-resident
        ],
        out_specs=pl.BlockSpec((1, ho * wo, cout), lambda i: (i, 0, 0)),
        scratch_shapes=[
            pltpu.VMEM((ho + 2, wo + 2, cin), jnp.float32),    # padded pooled x
            pltpu.VMEM((ho + 2, wo + 2, cmid), jnp.float32),   # padded conv1 act
        ],
        compiler_params=pltpu.CompilerParams(
            dimension_semantics=("parallel",)),
    )(x, w1, b1, w2, b2)

    out = out.reshape(n, ho, wo, cout)
    return jnp.transpose(out, (0, 3, 1, 2))                            # -> NCHW


def init_params(key, in_channels, out_channels):
    mid = out_channels
    k1, k2, k3, k4 = jax.random.split(key, 4)
    return {
        "w1": 0.1 * jax.random.normal(k1, (mid, in_channels, 3, 3), jnp.float32),
        "b1": 0.1 * jax.random.normal(k2, (mid,), jnp.float32),
        "g1": jnp.ones((mid,), jnp.float32),
        "be1": jnp.zeros((mid,), jnp.float32),
        "m1": jnp.zeros((mid,), jnp.float32),
        "v1": jnp.ones((mid,), jnp.float32),
        "w2": 0.1 * jax.random.normal(k3, (out_channels, mid, 3, 3), jnp.float32),
        "b2": 0.1 * jax.random.normal(k4, (out_channels,), jnp.float32),
        "g2": jnp.ones((out_channels,), jnp.float32),
        "be2": jnp.zeros((out_channels,), jnp.float32),
        "m2": jnp.zeros((out_channels,), jnp.float32),
        "v2": jnp.ones((out_channels,), jnp.float32),
    }


# ---------------------------------------------------------------------------
# Pure-JAX reference (same eval-mode BN).  NOTE: uses a *correct* max-pool
# (reduce_window with max / -inf init) — the previous reference's min/0.0
# formulation clamped negative pooled values at 0 and caused a false mismatch.
# ---------------------------------------------------------------------------
def _ref_conv_bn_relu(x_nchw, w, b, g, be, m, v, eps=1e-5):
    y = jax.lax.conv_general_dilated(
        x_nchw, w, window_strides=(1, 1), padding=((1, 1), (1, 1)),
        dimension_numbers=("NCHW", "OIHW", "NCHW"))
    y = y + b.reshape(1, -1, 1, 1)
    y = (y - m.reshape(1, -1, 1, 1)) / jnp.sqrt(v.reshape(1, -1, 1, 1) + eps)
    y = y * g.reshape(1, -1, 1, 1) + be.reshape(1, -1, 1, 1)
    return jnp.maximum(y, 0.0)


def _ref_down(x_nchw, p):
    x = jax.lax.reduce_window(x_nchw, -jnp.inf, jax.lax.max,
                              (1, 1, 2, 2), (1, 1, 2, 2), "VALID")
    x = _ref_conv_bn_relu(x, p["w1"], p["b1"], p["g1"], p["be1"], p["m1"], p["v1"])
    x = _ref_conv_bn_relu(x, p["w2"], p["b2"], p["g2"], p["be2"], p["m2"], p["v2"])
    return x


if __name__ == "__main__":
    key = jax.random.PRNGKey(0)
    kx, kp = jax.random.split(key)

    batch, in_channels, out_channels, spatial = 2, 4, 8, 16
    x = jax.random.normal(kx, (batch, in_channels, spatial, spatial), jnp.float32)
    params = init_params(kp, in_channels, out_channels)

    down = jax.jit(down_forward)
    out = jax.block_until_ready(down(x, params))
    assert out.shape == (batch, out_channels, spatial // 2, spatial // 2), out.shape

    ref = jax.block_until_ready(_ref_down(x, params))
    # Tolerance covers TPU default (bf16-operand) fp32 matmul/conv precision on
    # both sides; genuine structural bugs produce O(0.1+) errors.
    diff = float(np.max(np.abs(np.asarray(out) - np.asarray(ref))))
    assert np.allclose(np.asarray(out), np.asarray(ref), atol=2e-2, rtol=2e-2), diff

    print("KERNEL_OK")
</pallas_src>

<mosaic_0001>
module attributes {stable_mosaic.version = 11 : i64} {
  func.func @_down_kernel(%arg0: i32, %arg1: memref<1x128x2x4xf32, #tpu.memory_space<vmem>>, %arg2: memref<36x8xf32, #tpu.memory_space<vmem>>, %arg3: memref<1x8xf32, #tpu.memory_space<vmem>>, %arg4: memref<72x8xf32, #tpu.memory_space<vmem>>, %arg5: memref<1x8xf32, #tpu.memory_space<vmem>>, %arg6: memref<1x64x8xf32, #tpu.memory_space<vmem>>, %arg7: memref<10x10x4xf32, #tpu.memory_space<vmem>>, %arg8: memref<10x10x8xf32, #tpu.memory_space<vmem>>) attributes {dimension_semantics = [#tpu.dimension_semantics<parallel>], iteration_bounds = array<i64: 2>, scalar_prefetch = 0 : i64, scratch_operands = 2 : i64, tpu.core_type = #tpu.core_type<tc>, window_params = [{transform_indices = @transform_0, window_bounds = array<i64: 1, 128, 2, 4>}, {pipeline_mode = #tpu.pipeline_mode<synchronous>, transform_indices = @transform_1, window_bounds = array<i64: 36, 8>}, {pipeline_mode = #tpu.pipeline_mode<synchronous>, transform_indices = @transform_2, window_bounds = array<i64: 1, 8>}, {pipeline_mode = #tpu.pipeline_mode<synchronous>, transform_indices = @transform_3, window_bounds = array<i64: 72, 8>}, {pipeline_mode = #tpu.pipeline_mode<synchronous>, transform_indices = @transform_4, window_bounds = array<i64: 1, 8>}, {transform_indices = @transform_5, window_bounds = array<i64: 1, 64, 8>}]} {
    %c0 = arith.constant 0 : index
    %c0_0 = arith.constant 0 : index
    %c0_1 = arith.constant 0 : index
    %c0_2 = arith.constant 0 : index
    %0 = vector.load %arg1[%c0, %c0_0, %c0_1, %c0_2] : memref<1x128x2x4xf32, #tpu.memory_space<vmem>>, vector<1x128x2x4xf32>
    %1 = vector.shape_cast %0 : vector<1x128x2x4xf32> to vector<128x2x4xf32>
    %cst = arith.constant dense<0xFF800000> : vector<128x4xf32>
    %2 = vector.multi_reduction <maximumf>, %1, %cst [1] : vector<128x2x4xf32> to vector<128x4xf32>
    %3 = vector.shape_cast %2 : vector<128x4xf32> to vector<8x2x8x4xf32>
    %cst_3 = arith.constant dense<0xFF800000> : vector<8x8x4xf32>
    %4 = vector.multi_reduction <maximumf>, %3, %cst_3 [1] : vector<8x2x8x4xf32> to vector<8x8x4xf32>
    %cst_4 = arith.constant 0.000000e+00 : f32
    %5 = vector.broadcast %cst_4 : f32 to vector<10x10x4xf32>
    %c0_5 = arith.constant 0 : index
    %c0_6 = arith.constant 0 : index
    %c0_7 = arith.constant 0 : index
    %6 = vector.load %arg7[%c0_5, %c0_6, %c0_7] : memref<10x10x4xf32, #tpu.memory_space<vmem>>, vector<10x10x4xf32>
    tpu.vector_store %arg7[%c0_5, %c0_6, %c0_7], %5 {strides = array<i32>} : memref<10x10x4xf32, #tpu.memory_space<vmem>>, vector<10x10x4xf32>,
    %c1 = arith.constant 1 : index
    %c1_8 = arith.constant 1 : index
    %c0_9 = arith.constant 0 : index
    %7 = vector.load %arg7[%c1, %c1_8, %c0_9] : memref<10x10x4xf32, #tpu.memory_space<vmem>>, vector<8x8x4xf32>
    tpu.vector_store %arg7[%c1, %c1_8, %c0_9], %4 {strides = array<i32>} : memref<10x10x4xf32, #tpu.memory_space<vmem>>, vector<8x8x4xf32>,
    %c0_10 = arith.constant 0 : index
    %c0_11 = arith.constant 0 : index
    %c0_12 = arith.constant 0 : index
    %8 = vector.load %arg7[%c0_10, %c0_11, %c0_12] : memref<10x10x4xf32, #tpu.memory_space<vmem>>, vector<8x8x4xf32>
    %c0_13 = arith.constant 0 : index
    %c1_14 = arith.constant 1 : index
    %c0_15 = arith.constant 0 : index
    %9 = vector.load %arg7[%c0_13, %c1_14, %c0_15] : memref<10x10x4xf32, #tpu.memory_space<vmem>>, vector<8x8x4xf32>
    %c0_16 = arith.constant 0 : index
    %c2 = arith.constant 2 : index
    %c0_17 = arith.constant 0 : index
    %10 = vector.load %arg7[%c0_16, %c2, %c0_17] : memref<10x10x4xf32, #tpu.memory_space<vmem>>, vector<8x8x4xf32>
    %c1_18 = arith.constant 1 : index
    %c0_19 = arith.constant 0 : index
    %c0_20 = arith.constant 0 : index
    %11 = vector.load %arg7[%c1_18, %c0_19, %c0_20] : memref<10x10x4xf32, #tpu.memory_space<vmem>>, vector<8x8x4xf32>
    %c1_21 = arith.constant 1 : index
    %c1_22 = arith.constant 1 : index
    %c0_23 = arith.constant 0 : index
    %12 = vector.load %arg7[%c1_21, %c1_22, %c0_23] : memref<10x10x4xf32, #tpu.memory_space<vmem>>, vector<8x8x4xf32>
    %c1_24 = arith.constant 1 : index
    %c2_25 = arith.constant 2 : index
    %c0_26 = arith.constant 0 : index
    %13 = vector.load %arg7[%c1_24, %c2_25, %c0_26] : memref<10x10x4xf32, #tpu.memory_space<vmem>>, vector<8x8x4xf32>
    %c2_27 = arith.constant 2 : index
    %c0_28 = arith.constant 0 : index
    %c0_29 = arith.constant 0 : index
    %14 = vector.load %arg7[%c2_27, %c0_28, %c0_29] : memref<10x10x4xf32, #tpu.memory_space<vmem>>, vector<8x8x4xf32>
    %c2_30 = arith.constant 2 : index
    %c1_31 = arith.constant 1 : index
    %c0_32 = arith.constant 0 : index
    %15 = vector.load %arg7[%c2_30, %c1_31, %c0_32] : memref<10x10x4xf32, #tpu.memory_space<vmem>>, vector<8x8x4xf32>
    %c2_33 = arith.constant 2 : index
    %c2_34 = arith.constant 2 : index
    %c0_35 = arith.constant 0 : index
    %16 = vector.load %arg7[%c2_33, %c2_34, %c0_35] : memref<10x10x4xf32, #tpu.memory_space<vmem>>, vector<8x8x4xf32>
    %17 = tpu.concatenate %8, %9, %10, %11, %12, %13, %14, %15, %16 in 2 : vector<8x8x4xf32>, vector<8x8x4xf32>, vector<8x8x4xf32>, vector<8x8x4xf32>, vector<8x8x4xf32>, vector<8x8x4xf32>, vector<8x8x4xf32>, vector<8x8x4xf32>, vector<8x8x4xf32> -> vector<8x8x36xf32>
    %18 = vector.shape_cast %17 : vector<8x8x36xf32> to vector<64x36xf32>
    %c0_36 = arith.constant 0 : index
    %c0_37 = arith.constant 0 : index
    %19 = vector.load %arg2[%c0_36, %c0_37] : memref<36x8xf32, #tpu.memory_space<vmem>>, vector<36x8xf32>
    %cst_38 = arith.constant dense<0.000000e+00> : vector<64x8xf32>
    %20 = tpu.matmul %18, %19, %cst_38 {dimension_numbers = #tpu.dot_dimension_numbers<[1], [0], [0], [1], [0, 0, 1, 1], [], []>} : vector<64x36xf32>, vector<36x8xf32>, vector<64x8xf32> -> vector<64x8xf32>
    %c0_39 = arith.constant 0 : index
    %c0_40 = arith.constant 0 : index
    %21 = vector.load %arg3[%c0_39, %c0_40] : memref<1x8xf32, #tpu.memory_space<vmem>>, vector<1x8xf32>
    %22 = vector.broadcast %21 : vector<1x8xf32> to vector<64x8xf32>
    %23 = arith.addf %20, %22 : vector<64x8xf32>
    %cst_41 = arith.constant 0.000000e+00 : f32
    %24 = vector.broadcast %cst_41 : f32 to vector<64x8xf32>
    %25 = arith.maximumf %23, %24 : vector<64x8xf32>
    %cst_42 = arith.constant 0.000000e+00 : f32
    %26 = vector.broadcast %cst_42 : f32 to vector<10x10x8xf32>
    %c0_43 = arith.constant 0 : index
    %c0_44 = arith.constant 0 : index
    %c0_45 = arith.constant 0 : index
    %27 = vector.load %arg8[%c0_43, %c0_44, %c0_45] : memref<10x10x8xf32, #tpu.memory_space<vmem>>, vector<10x10x8xf32>
    tpu.vector_store %arg8[%c0_43, %c0_44, %c0_45], %26 {strides = array<i32>} : memref<10x10x8xf32, #tpu.memory_space<vmem>>, vector<10x10x8xf32>,
    %28 = vector.shape_cast %25 : vector<64x8xf32> to vector<8x8x8xf32>
    %c1_46 = arith.constant 1 : index
    %c1_47 = arith.constant 1 : index
    %c0_48 = arith.constant 0 : index
    %29 = vector.load %arg8[%c1_46, %c1_47, %c0_48] : memref<10x10x8xf32, #tpu.memory_space<vmem>>, vector<8x8x8xf32>
    tpu.vector_store %arg8[%c1_46, %c1_47, %c0_48], %28 {strides = array<i32>} : memref<10x10x8xf32, #tpu.memory_space<vmem>>, vector<8x8x8xf32>,
    %c0_49 = arith.constant 0 : index
    %c0_50 = arith.constant 0 : index
    %c0_51 = arith.constant 0 : index
    %30 = vector.load %arg8[%c0_49, %c0_50, %c0_51] : memref<10x10x8xf32, #tpu.memory_space<vmem>>, vector<8x8x8xf32>
    %c0_52 = arith.constant 0 : index
    %c1_53 = arith.constant 1 : index
    %c0_54 = arith.constant 0 : index
    %31 = vector.load %arg8[%c0_52, %c1_53, %c0_54] : memref<10x10x8xf32, #tpu.memory_space<vmem>>, vector<8x8x8xf32>
    %c0_55 = arith.constant 0 : index
    %c2_56 = arith.constant 2 : index
    %c0_57 = arith.constant 0 : index
    %32 = vector.load %arg8[%c0_55, %c2_56, %c0_57] : memref<10x10x8xf32, #tpu.memory_space<vmem>>, vector<8x8x8xf32>
    %c1_58 = arith.constant 1 : index
    %c0_59 = arith.constant 0 : index
    %c0_60 = arith.constant 0 : index
    %33 = vector.load %arg8[%c1_58, %c0_59, %c0_60] : memref<10x10x8xf32, #tpu.memory_space<vmem>>, vector<8x8x8xf32>
    %c1_61 = arith.constant 1 : index
    %c1_62 = arith.constant 1 : index
    %c0_63 = arith.constant 0 : index
    %34 = vector.load %arg8[%c1_61, %c1_62, %c0_63] : memref<10x10x8xf32, #tpu.memory_space<vmem>>, vector<8x8x8xf32>
    %c1_64 = arith.constant 1 : index
    %c2_65 = arith.constant 2 : index
    %c0_66 = arith.constant 0 : index
    %35 = vector.load %arg8[%c1_64, %c2_65, %c0_66] : memref<10x10x8xf32, #tpu.memory_space<vmem>>, vector<8x8x8xf32>
    %c2_67 = arith.constant 2 : index
    %c0_68 = arith.constant 0 : index
    %c0_69 = arith.constant 0 : index
    %36 = vector.load %arg8[%c2_67, %c0_68, %c0_69] : memref<10x10x8xf32, #tpu.memory_space<vmem>>, vector<8x8x8xf32>
    %c2_70 = arith.constant 2 : index
    %c1_71 = arith.constant 1 : index
    %c0_72 = arith.constant 0 : index
    %37 = vector.load %arg8[%c2_70, %c1_71, %c0_72] : memref<10x10x8xf32, #tpu.memory_space<vmem>>, vector<8x8x8xf32>
    %c2_73 = arith.constant 2 : index
    %c2_74 = arith.constant 2 : index
    %c0_75 = arith.constant 0 : index
    %38 = vector.load %arg8[%c2_73, %c2_74, %c0_75] : memref<10x10x8xf32, #tpu.memory_space<vmem>>, vector<8x8x8xf32>
    %39 = tpu.concatenate %30, %31, %32, %33, %34, %35, %36, %37, %38 in 2 : vector<8x8x8xf32>, vector<8x8x8xf32>, vector<8x8x8xf32>, vector<8x8x8xf32>, vector<8x8x8xf32>, vector<8x8x8xf32>, vector<8x8x8xf32>, vector<8x8x8xf32>, vector<8x8x8xf32> -> vector<8x8x72xf32>
    %40 = vector.shape_cast %39 : vector<8x8x72xf32> to vector<64x72xf32>
    %c0_76 = arith.constant 0 : index
    %c0_77 = arith.constant 0 : index
    %41 = vector.load %arg4[%c0_76, %c0_77] : memref<72x8xf32, #tpu.memory_space<vmem>>, vector<72x8xf32>
    %cst_78 = arith.constant dense<0.000000e+00> : vector<64x8xf32>
    %42 = tpu.matmul %40, %41, %cst_78 {dimension_numbers = #tpu.dot_dimension_numbers<[1], [0], [0], [1], [0, 0, 1, 1], [], []>} : vector<64x72xf32>, vector<72x8xf32>, vector<64x8xf32> -> vector<64x8xf32>
    %c0_79 = arith.constant 0 : index
    %c0_80 = arith.constant 0 : index
    %43 = vector.load %arg5[%c0_79, %c0_80] : memref<1x8xf32, #tpu.memory_space<vmem>>, vector<1x8xf32>
    %44 = vector.broadcast %43 : vector<1x8xf32> to vector<64x8xf32>
    %45 = arith.addf %42, %44 : vector<64x8xf32>
    %cst_81 = arith.constant 0.000000e+00 : f32
    %46 = vector.broadcast %cst_81 : f32 to vector<64x8xf32>
    %47 = arith.maximumf %45, %46 : vector<64x8xf32>
    %48 = vector.shape_cast %47 : vector<64x8xf32> to vector<1x64x8xf32>
    %c0_82 = arith.constant 0 : index
    %c0_83 = arith.constant 0 : index
    %c0_84 = arith.constant 0 : index
    %49 = vector.load %arg6[%c0_82, %c0_83, %c0_84] : memref<1x64x8xf32, #tpu.memory_space<vmem>>, vector<1x64x8xf32>
    tpu.vector_store %arg6[%c0_82, %c0_83, %c0_84], %48 {strides = array<i32>} : memref<1x64x8xf32, #tpu.memory_space<vmem>>, vector<1x64x8xf32>,
    return
  }
  func.func @transform_0(%arg0: i32) -> (i32, i32, i32, i32) {
    %c0_i32 = arith.constant 0 : i32
    %c0_i32_0 = arith.constant 0 : i32
    %c0_i32_1 = arith.constant 0 : i32
    %c0_i32_2 = arith.constant 0 : i32
    return %arg0, %c0_i32, %c0_i32_0, %c0_i32_1 : i32, i32, i32, i32
  }
  func.func @transform_1(%arg0: i32) -> (i32, i32) {
    %c0_i32 = arith.constant 0 : i32
    %c0_i32_0 = arith.constant 0 : i32
    %c0_i32_1 = arith.constant 0 : i32
    return %c0_i32, %c0_i32_0 : i32, i32
  }
  func.func @transform_2(%arg0: i32) -> (i32, i32) {
    %c0_i32 = arith.constant 0 : i32
    %c0_i32_0 = arith.constant 0 : i32
    %c0_i32_1 = arith.constant 0 : i32
    return %c0_i32, %c0_i32_0 : i32, i32
  }
  func.func @transform_3(%arg0: i32) -> (i32, i32) {
    %c0_i32 = arith.constant 0 : i32
    %c0_i32_0 = arith.constant 0 : i32
    %c0_i32_1 = arith.constant 0 : i32
    return %c0_i32, %c0_i32_0 : i32, i32
  }
  func.func @transform_4(%arg0: i32) -> (i32, i32) {
    %c0_i32 = arith.constant 0 : i32
    %c0_i32_0 = arith.constant 0 : i32
    %c0_i32_1 = arith.constant 0 : i32
    return %c0_i32, %c0_i32_0 : i32, i32
  }
  func.func @transform_5(%arg0: i32) -> (i32, i32, i32) {
    %c0_i32 = arith.constant 0 : i32
    %c0_i32_0 = arith.constant 0 : i32
    %c0_i32_1 = arith.constant 0 : i32
    return %arg0, %c0_i32, %c0_i32_0 : i32, i32, i32
  }
}

</mosaic_0001>

<bundles_post_ra>
// kernel: down_forward.1
= control target key start
LH: loop header
LB: loop body
LE: loop exit
PB: predicated region body
PF: predicated region fallthrough
CT: control target
= control target key end

     0   :  { %s3015_s18 = smov 0   ;;  %s4299_s0 = inlined_call_operand.vmem [shape: f32[2,128,2,4], index: 0, kind: input, shape index: {}]   ;;  %s4300_s1 = inlined_call_operand.vmem [shape: f32[36,8], index: 1, kind: input, shape index: {}]   ;;  %s4301_s2 = inlined_call_operand.vmem [shape: f32[1,8], index: 2, kind: input, shape index: {}]   ;;  %s4302_s3 = inlined_call_operand.vmem [shape: f32[72,8], index: 3, kind: input, shape index: {}]   ;;  %s4303_s4 = inlined_call_operand.vmem [shape: f32[1,8], index: 4, kind: input, shape index: {}]   ;;  %s4304_s5 = inlined_call_operand.vmem [shape: f32[2,64,8], index: 5, kind: output, shape index: {}]  }
   0x1 LB: > { %s2805_s19 = sadd.s32 4294967295, %s2970_s18   ;;  %p2809_p0 = scmp.ge.s32.totalorder %s2970_s18, 1  ;;  %s2970_s18 = sphi %s3015_s18, %s15_s18  }
   0x2   : > { %p187_p1 = scmp.lt.s32.totalorder %s2970_s18, 3 }
   0x4   : > { %p188_p2 = pnand %p2809_p0, %p187_p1 }
   0x5   : > { %vm353_vm0 = vcmask (!%p188_p2), 25600   ;;  %vm1250_vm1 = vcmask (!%p188_p2), 31744   ;;  %v2972_v0 = vmov (!%p188_p2), 0.0   ;;  %p215_p3 = scmp.lt.s32.totalorder (!%p188_p2), %s2805_s19, 1  ;;  %s2973_s24 = smov (!%p188_p2), 4   ;;  %vm1527_vm2 = vcmask (!%p188_p2), 1041409  }
   0x6   : > { %191 = sbr.rel (%p188_p2) target bundleno = 1071 (0x42f), region = 40  ;;  %1443 = vst.msk [vmem:[#allocation2] sm:$0xff] (!%p188_p2), %vm1250_vm1, %v2972_v0  ;;  %1445 = vst.msk [vmem:[#allocation2 + $0x10] sm:$0xff] (!%p188_p2), %vm1250_vm1, %v2972_v0  ;;  %s2974_s25 = smov (!%p188_p2), 8   ;;  %vm1529_vm3 = vcmask (!%p188_p2), 1042434   ;;  %vm1531_vm4 = vcmask (!%p188_p2), 1043459  }
   0x7   : > { %1444 = vst.msk [vmem:[#allocation2 + $0x8] sm:$0x3] (!%p188_p2), %vm353_vm0, %v2972_v0  ;;  %1446 = vst.msk [vmem:[#allocation2 + $0x18] sm:$0x3] (!%p188_p2), %vm353_vm0, %v2972_v0  ;;  %vm1533_vm5 = vcmask (!%p188_p2), 1044484   ;;  %vm1535_vm6 = vcmask (!%p188_p2), 1045509  }
   0x8   : > { %1447 = vst.msk [vmem:[#allocation2 + $0x20] sm:$0xff] (!%p188_p2), %vm1250_vm1, %v2972_v0  ;;  %1449 = vst.msk [vmem:[#allocation2 + $0x30] sm:$0xff] (!%p188_p2), %vm1250_vm1, %v2972_v0  ;;  %vm1537_vm7 = vcmask (!%p188_p2), 1046534   ;;  %vm1539_vm8 = vcmask (!%p188_p2), 1047559   ;;  %s2975_s26 = smov (!%p188_p2), 12   ;;  %s2976_s27 = smov (!%p188_p2), 16  }
   0x9   : > { %1448 = vst.msk [vmem:[#allocation2 + $0x28] sm:$0x3] (!%p188_p2), %vm353_vm0, %v2972_v0  ;;  %1450 = vst.msk [vmem:[#allocation2 + $0x38] sm:$0x3] (!%p188_p2), %vm353_vm0, %v2972_v0  ;;  %s2977_s28 = smov (!%p188_p2), 20   ;;  %s2978_s29 = smov (!%p188_p2), 24  }
   0xa   : > { %1451 = vst.msk [vmem:[#allocation2 + $0x40] sm:$0xff] (!%p188_p2), %vm1250_vm1, %v2972_v0  ;;  %1453 = vst.msk [vmem:[#allocation2 + $0x50] sm:$0xff] (!%p188_p2), %vm1250_vm1, %v2972_v0  ;;  %s2979_s30 = smov (!%p188_p2), 28   ;;  %s2980_s6 = smov (!%p188_p2), 32   ;;  %vm1944_vm9 = vcmask (!%p188_p2), 64512   ;;  %vm1953_vm10 = vcmask (!%p188_p2), 97280  }
   0xb   : > { %1452 = vst.msk [vmem:[#allocation2 + $0x48] sm:$0x3] (!%p188_p2), %vm353_vm0, %v2972_v0  ;;  %1454 = vst.msk [vmem:[#allocation2 + $0x58] sm:$0x3] (!%p188_p2), %vm353_vm0, %v2972_v0  ;;  %vm1962_vm11 = vcmask (!%p188_p2), 130048   ;;  %vm1971_vm12 = vcmask (!%p188_p2), 162816  }
   0xc   : > { %1455 = vst.msk [vmem:[#allocation2 + $0x60] sm:$0xff] (!%p188_p2), %vm1250_vm1, %v2972_v0  ;;  %1457 = vst.msk [vmem:[#allocation2 + $0x70] sm:$0xff] (!%p188_p2), %vm1250_vm1, %v2972_v0  ;;  %vm1980_vm13 = vcmask (!%p188_p2), 195584   ;;  %vm1989_vm14 = vcmask (!%p188_p2), 228352   ;;  %vm1998_vm15 = vcmask (!%p188_p2), 261120   ;;  %s2981_s17 = smov (!%p188_p2), 48  }
   0xd   : > { %1456 = vst.msk [vmem:[#allocation2 + $0x68] sm:$0x3] %vm353_vm0, %v2972_v0  ;;  %1458 = vst.msk [vmem:[#allocation2 + $0x78] sm:$0x3] %vm353_vm0, %v2972_v0  ;;  %s4306_s19 = smov (!%p215_p3, %s2805_s19), 1 }
   0xe   : > { %1459 = vst.msk [vmem:[#allocation2 + $0x80] sm:$0xff] %vm1250_vm1, %v2972_v0  ;;  %1461 = vst.msk [vmem:[#allocation2 + $0x90] sm:$0xff] %vm1250_vm1, %v2972_v0  ;;  %s2835_s20 = sshll.u32 %s4306_s19, 8  ;;  %v1615_v3 = vld [vmem:[#allocation2 + $0x1] sm:$0xff] }
   0xf   : > { %1460 = vst.msk [vmem:[#allocation2 + $0x88] sm:$0x3] %vm353_vm0, %v2972_v0  ;;  %1462 = vst.msk [vmem:[#allocation2 + $0x98] sm:$0x3] %vm353_vm0, %v2972_v0  ;;  %s3069_s23 = scalar_lea.vmem %s4299_s0, %s2835_s20  ;;  %v1623_v4 = vld [vmem:[#allocation2 + $0x2] sm:$0xff]  ;;  %1688 = vrot.lane.b32.xlu0 %v1615_v3, %s2973_s24  ;;  %s2982_s20 = smov 56  }
  0x10   : > { %v225_v1 = vld [vmem:[%s3069_s23] sm:$0x3]  ;;  %v226_v2 = vld [vmem:[%s3069_s23 + $0x2] sm:$0x3]  ;;  %1720 = vrot.lane.b32.xlu1 %v1623_v4, %s2974_s25  ;;  %v227_v9 = vld [vmem:[%s3069_s23 + $0x4] sm:$0x3] }
  0x11   : > { %v354_v5 = vsel %vm353_vm0, %v225_v1, -inf  ;;  %v361_v6 = vsel %vm353_vm0, %v226_v2, -inf  ;;  %v228_v10 = vld [vmem:[%s3069_s23 + $0x6] sm:$0x3]  ;;  %v229_v11 = vld [vmem:[%s3069_s23 + $0x8] sm:$0x3] }
  0x12   : > { %v355_v7 = vrot.slane %v354_v5, 4  ;;  %v362_v8 = vrot.slane %v361_v6, 4  ;;  %v230_v12 = vld [vmem:[%s3069_s23 + $0xa] sm:$0x3]  ;;  %v231_v15 = vld [vmem:[%s3069_s23 + $0xc] sm:$0x3] }
  0x13   : > { %v232_v16 = vld [vmem:[%s3069_s23 + $0xe] sm:$0x3]  ;;  %v368_v19 = vsel %vm353_vm0, %v227_v9, -inf  ;;  %v375_v20 = vsel %vm353_vm0, %v228_v10, -inf  ;;  %v382_v23 = vsel %vm353_vm0, %v229_v11, -inf  ;;  %v389_v24 = vsel %vm353_vm0, %v230_v12, -inf }
  0x14   : > { %v356_v13 = vmax.f32 %v354_v5, %v355_v7  ;;  %v363_v14 = vmax.f32 %v361_v6, %v362_v8  ;;  %v369_v21 = vrot.slane %v368_v19, 4  ;;  %v376_v22 = vrot.slane %v375_v20, 4  ;;  %v233_v33 = vld [vmem:[%s3069_s23 + $0x10] sm:$0x3]  ;;  %v234_v38 = vld [vmem:[%s3069_s23 + $0x12] sm:$0x3] }
  0x15   : > { %v383_v27 = vrot.slane %v382_v23, 4  ;;  %v390_v28 = vrot.slane %v389_v24, 4  ;;  %v396_v31 = vsel %vm353_vm0, %v231_v15, -inf  ;;  %v403_v32 = vsel %vm353_vm0, %v232_v16, -inf  ;;  %v235_v55 = vld [vmem:[%s3069_s23 + $0x14] sm:$0x3] }
  0x16   : > { %v357_v17 = vrot.slane %v356_v13, 2  ;;  %v364_v18 = vrot.slane %v363_v14, 2  ;;  %v370_v29 = vmax.f32 %v368_v19, %v369_v21  ;;  %v377_v30 = vmax.f32 %v375_v20, %v376_v22  ;;  %v236_v60 = vld [vmem:[%s3069_s23 + $0x16] sm:$0x3]  ;;  %v237_v6 = vld [vmem:[%s3069_s23 + $0x18] sm:$0x3] }
  0x17   : > { %v384_v36 = vmax.f32 %v382_v23, %v383_v27  ;;  %v391_v37 = vmax.f32 %v389_v24, %v390_v28  ;;  %v397_v41 = vrot.slane %v396_v31, 4  ;;  %v404_v42 = vrot.slane %v403_v32, 4  ;;  %v238_v7 = vld [vmem:[%s3069_s23 + $0x1a] sm:$0x3]  ;;  %v239_v12 = vld [vmem:[%s3069_s23 + $0x1c] sm:$0x3] }
  0x18   : > { %v358_v25 = vmax.f32 %v356_v13, %v357_v17  ;;  %v365_v26 = vmax.f32 %v363_v14, %v364_v18  ;;  %v371_v39 = vrot.slane %v370_v29, 2  ;;  %v378_v40 = vrot.slane %v377_v30, 2  ;;  %v240_v17 = vld [vmem:[%s3069_s23 + $0x1e] sm:$0x3]  ;;  %2161 = vst.msk [vmem:[#allocation3] sm:$0xff] %vm1944_vm9, %v2972_v0  ;;  %2164 = vst.msk [vmem:[#allocation3 + $0x10] sm:$0xff] %vm1944_vm9, %v2972_v0 }
  0x19   : > { %v385_v45 = vrot.slane %v384_v36, 2  ;;  %v392_v46 = vrot.slane %v391_v37, 2  ;;  %v398_v49 = vmax.f32 %v396_v31, %v397_v41  ;;  %v405_v50 = vmax.f32 %v403_v32, %v404_v42  ;;  %2166 = vst.msk [vmem:[#allocation3 + $0x20] sm:$0xff] %vm1944_vm9, %v2972_v0  ;;  %2168 = vst.msk [vmem:[#allocation3 + $0x30] sm:$0xff] %vm1944_vm9, %v2972_v0 }
  0x1a   : > { %v359_v34 = vrot.slane %v358_v25, 1  ;;  %v366_v35 = vrot.slane %v365_v26, 1  ;;  %v372_v47 = vmax.f32 %v370_v29, %v371_v39  ;;  %v379_v48 = vmax.f32 %v377_v30, %v378_v40  ;;  %2170 = vst.msk [vmem:[#allocation3 + $0x40] sm:$0xff] %vm1944_vm9, %v2972_v0  ;;  %2172 = vst.msk [vmem:[#allocation3 + $0x50] sm:$0xff] %vm1944_vm9, %v2972_v0 }
  0x1b   : > { %v386_v51 = vmax.f32 %v384_v36, %v385_v45  ;;  %v393_v52 = vmax.f32 %v391_v37, %v392_v46  ;;  %v410_v53 = vsel %vm353_vm0, %v233_v33, -inf  ;;  %v417_v54 = vsel %vm353_vm0, %v234_v38, -inf  ;;  %2174 = vst.msk [vmem:[#allocation3 + $0x60] sm:$0xff] %vm1944_vm9, %v2972_v0  ;;  %2176 = vst.msk [vmem:[#allocation3 + $0x70] sm:$0xff] %vm1944_vm9, %v2972_v0 }
  0x1c   : > { %v3091_v43 = vmax.f32 %v358_v25, %v359_v34  ;;  %v3093_v44 = vmax.f32 %v365_v26, %v366_v35  ;;  %v373_v56 = vrot.slane %v372_v47, 1  ;;  %v380_v57 = vrot.slane %v379_v48, 1  ;;  %2178 = vst.msk [vmem:[#allocation3 + $0x80] sm:$0xff] %vm1944_vm9, %v2972_v0  ;;  %2180 = vst.msk [vmem:[#allocation3 + $0x90] sm:$0xff] %vm1944_vm9, %v2972_v0 }
  0x1d   : > { %v399_v58 = vrot.slane %v398_v49, 2  ;;  %v406_v59 = vrot.slane %v405_v50, 2  ;;  %v387_v61 = vrot.slane %v386_v51, 1  ;;  %v394_v62 = vrot.slane %v393_v52, 1 }
  0x1e   : > { %v411_v63 = vrot.slane %v410_v53, 4  ;;  %v418_v1 = vrot.slane %v417_v54, 4  ;;  %v3099_v2 = vmax.f32 %v372_v47, %v373_v56  ;;  %v3101_v3 = vmax.f32 %v379_v48, %v380_v57 }
  0x1f   : > { %v400_v4 = vmax.f32 %v398_v49, %v399_v58  ;;  %v407_v5 = vmax.f32 %v405_v50, %v406_v59  ;;  %v3105_v8 = vmax.f32 %v386_v51, %v387_v61  ;;  %v3107_v9 = vmax.f32 %v393_v52, %v394_v62 }
  0x20   : > { %v412_v10 = vmax.f32 %v410_v53, %v411_v63  ;;  %v419_v11 = vmax.f32 %v417_v54, %v418_v1  ;;  %v424_v15 = vsel %vm353_vm0, %v235_v55, -inf  ;;  %v431_v16 = vsel %vm353_vm0, %v236_v60, -inf }
  0x21   : > { %v401_v13 = vrot.slane %v400_v4, 1  ;;  %v408_v14 = vrot.slane %v407_v5, 1  ;;  %v425_v20 = vrot.slane %v424_v15, 4  ;;  %v432_v21 = vrot.slane %v431_v16, 4 }
  0x22   : > { %v413_v18 = vrot.slane %v412_v10, 2  ;;  %v420_v19 = vrot.slane %v419_v11, 2  ;;  %v438_v24 = vsel %vm353_vm0, %v237_v6, -inf  ;;  %v445_v25 = vsel %vm353_vm0, %v238_v7, -inf }
  0x23   : > { %v3113_v22 = vmax.f32 %v400_v4, %v401_v13  ;;  %v3115_v23 = vmax.f32 %v407_v5, %v408_v14  ;;  %v426_v28 = vmax.f32 %v424_v15, %v425_v20  ;;  %v433_v29 = vmax.f32 %v431_v16, %v432_v21  ;;  %v241_v21 = vld [vmem:[%s3069_s23 + $0x20] sm:$0x3] }
  0x24   : > { %v414_v26 = vmax.f32 %v412_v10, %v413_v18  ;;  %v421_v27 = vmax.f32 %v419_v11, %v420_v19  ;;  %v439_v30 = vrot.slane %v438_v24, 4  ;;  %v446_v31 = vrot.slane %v445_v25, 4 }
  0x25   : > { %v452_v32 = vsel %vm353_vm0, %v239_v12, -inf  ;;  %v459_v33 = vsel %vm353_vm0, %v240_v17, -inf  ;;  %v427_v36 = vrot.slane %v426_v28, 2  ;;  %v434_v37 = vrot.slane %v433_v29, 2 }
  0x26   : > { %v415_v34 = vrot.slane %v414_v26, 1  ;;  %v422_v35 = vrot.slane %v421_v27, 1  ;;  %v440_v38 = vmax.f32 %v438_v24, %v439_v30  ;;  %v447_v39 = vmax.f32 %v445_v25, %v446_v31  ;;  %v242_v24 = vld [vmem:[%s3069_s23 + $0x22] sm:$0x3] }
  0x27   : > { %v453_v40 = vrot.slane %v452_v32, 4  ;;  %v460_v41 = vrot.slane %v459_v33, 4  ;;  %v428_v46 = vmax.f32 %v426_v28, %v427_v36  ;;  %v435_v47 = vmax.f32 %v433_v29, %v434_v37  ;;  %v243_v29 = vld [vmem:[%s3069_s23 + $0x24] sm:$0x3]  ;;  %v245_v36 = vld [vmem:[%s3069_s23 + $0x28] sm:$0x3] }
  0x28   : > { %v416_v42 = vmax.f32 %v414_v26, %v415_v34  ;;  %v423_v45 = vmax.f32 %v421_v27, %v422_v35  ;;  %v441_v48 = vrot.slane %v440_v38, 2  ;;  %v448_v49 = vrot.slane %v447_v39, 2 }
  0x29   : > { %v454_v50 = vmax.f32 %v452_v32, %v453_v40  ;;  %v461_v51 = vmax.f32 %v459_v33, %v460_v41  ;;  %v429_v52 = vrot.slane %v428_v46, 1  ;;  %v436_v53 = vrot.slane %v435_v47, 1  ;;  %v244_v33 = vld [vmem:[%s3069_s23 + $0x26] sm:$0x3]  ;;  %v246_v41 = vld [vmem:[%s3069_s23 + $0x2a] sm:$0x3] }
  0x2a   : > { %v1251_v54 = vsel %vm1250_vm1, %v3091_v43, -inf  ;;  %v1252_v55 = vsel %vm1250_vm1, %v416_v42, -inf  ;;  %v442_v56 = vmax.f32 %v440_v38, %v441_v48  ;;  %v449_v57 = vmax.f32 %v447_v39, %v448_v49 }
  0x2b   : > { %v455_v58 = vrot.slane %v454_v50, 2  ;;  %v462_v59 = vrot.slane %v461_v51, 2  ;;  %v430_v60 = vmax.f32 %v428_v46, %v429_v52  ;;  %v437_v61 = vmax.f32 %v435_v47, %v436_v53  ;;  %v247_v52 = vld [vmem:[%s3069_s23 + $0x2c] sm:$0x3] }
  0x2c   : > { %v1253_v62 = vmax.f32 %v1251_v54, %v1252_v55  ;;  %v1254_v63 = vsel %vm1250_vm1, %v3093_v44, -inf  ;;  %v443_v1 = vrot.slane %v442_v56, 1  ;;  %v450_v4 = vrot.slane %v449_v57, 1 }
  0x2d   : > { %v456_v5 = vmax.f32 %v454_v50, %v455_v58  ;;  %v463_v6 = vmax.f32 %v461_v51, %v462_v59  ;;  %v1255_v43 = vsel %vm1250_vm1, %v423_v45, -inf  ;;  %v1257_v7 = vsel %vm1250_vm1, %v3099_v2, -inf }
  0x2e   : > { %v1258_v10 = vsel %vm1250_vm1, %v430_v60, -inf  ;;  %v1260_v11 = vsel %vm1250_vm1, %v3101_v3, -inf  ;;  %v444_v44 = vmax.f32 %v442_v56, %v443_v1  ;;  %v451_v12 = vmax.f32 %v449_v57, %v450_v4 }
  0x2f   : > { %v457_v13 = vrot.slane %v456_v5, 1  ;;  %v464_v14 = vrot.slane %v463_v6, 1  ;;  %v1256_v15 = vmax.f32 %v1254_v63, %v1255_v43  ;;  %v1259_v16 = vmax.f32 %v1257_v7, %v1258_v10 }
  0x30   : > { %v1261_v17 = vsel %vm1250_vm1, %v437_v61, -inf  ;;  %v1263_v2 = vsel %vm1250_vm1, %v3105_v8, -inf  ;;  %v1264_v3 = vsel %vm1250_vm1, %v444_v44, -inf  ;;  %v1266_v26 = vsel %vm1250_vm1, %v3107_v9, -inf  ;;  %v248_v61 = vld [vmem:[%s3069_s23 + $0x2e] sm:$0x3] }
  0x31   : > { %v458_v18 = vmax.f32 %v456_v5, %v457_v13  ;;  %v465_v19 = vmax.f32 %v463_v6, %v464_v14  ;;  %v1262_v20 = vmax.f32 %v1260_v11, %v1261_v17  ;;  %v1265_v25 = vmax.f32 %v1263_v2, %v1264_v3 }
  0x32   : > { %v1267_v27 = vsel %vm1250_vm1, %v451_v12, -inf  ;;  %v1269_v28 = vsel %vm1250_vm1, %v3113_v22, -inf  ;;  %v1272_v31 = vsel %vm1250_vm1, %v3115_v23, -inf  ;;  %v1528_v9 = vsel %vm1527_vm2, %v1256_v15, %v1253_v62 }
  0x33   : > { %v1268_v8 = vmax.f32 %v1266_v26, %v1267_v27  ;;  %v1270_v30 = vsel %vm1250_vm1, %v458_v18, -inf  ;;  %v1273_v32 = vsel %vm1250_vm1, %v465_v19, -inf  ;;  %v466_v37 = vsel %vm353_vm0, %v241_v21, -inf  ;;  %v251_v26 = vld [vmem:[%s3069_s23 + $0x34] sm:$0x3] }
  0x34   : > { %v1271_v34 = vmax.f32 %v1269_v28, %v1270_v30  ;;  %v1274_v35 = vmax.f32 %v1272_v31, %v1273_v32  ;;  %v1530_v22 = vsel %vm1529_vm3, %v1259_v16, %v1528_v9  ;;  %v467_v38 = vrot.slane %v466_v37, 4  ;;  %v249_v16 = vld [vmem:[%s3069_s23 + $0x30] sm:$0x3]  ;;  %v252_v30 = vld [vmem:[%s3069_s23 + $0x36] sm:$0x3] }
  0x35   : > { %v473_v39 = vsel %vm353_vm0, %v242_v24, -inf  ;;  %v480_v40 = vsel %vm353_vm0, %v243_v29, -inf  ;;  %v1532_v23 = vsel %vm1531_vm4, %v1262_v20, %v1530_v22  ;;  %v487_v46 = vsel %vm353_vm0, %v244_v33, -inf  ;;  %v250_v20 = vld [vmem:[%s3069_s23 + $0x32] sm:$0x3] }
  0x36   : > { %v474_v42 = vrot.slane %v473_v39, 4  ;;  %v481_v45 = vrot.slane %v480_v40, 4  ;;  %v1534_v47 = vsel %vm1533_vm5, %v1265_v25, %v1532_v23  ;;  %v468_v48 = vmax.f32 %v466_v37, %v467_v38 }
  0x37   : > { %v488_v49 = vrot.slane %v487_v46, 4  ;;  %v494_v50 = vsel %vm353_vm0, %v245_v36, -inf  ;;  %v1536_v51 = vsel %vm1535_vm6, %v1268_v8, %v1534_v47  ;;  %v501_v59 = vsel %vm353_vm0, %v246_v41, -inf }
  0x38   : > { %v475_v53 = vmax.f32 %v473_v39, %v474_v42  ;;  %v482_v54 = vmax.f32 %v480_v40, %v481_v45  ;;  %v495_v55 = vrot.slane %v494_v50, 4  ;;  %v1538_v56 = vsel %vm1537_vm7, %v1271_v34, %v1536_v51  ;;  %v253_v39 = vld [vmem:[%s3069_s23 + $0x38] sm:$0x3]  ;;  %v255_v51 = vld [vmem:[%s3069_s23 + $0x3c] sm:$0x3] }
  0x39   : > { %v469_v57 = vrot.slane %v468_v48, 2  ;;  %v489_v58 = vmax.f32 %v487_v46, %v488_v49  ;;  %v1540_v60 = vsel %vm1539_vm8, %v1274_v35, %v1538_v56  ;;  %v502_v6 = vrot.slane %v501_v59, 4 }
  0x3a   : > { %v476_v62 = vrot.slane %v475_v53, 2  ;;  %v483_v63 = vrot.slane %v482_v54, 2  ;;  %v496_v1 = vmax.f32 %v494_v50, %v495_v55  ;;  %1599 = vst.msk [vmem:[#allocation2 + $0x11] sm:$0xff] %vm1250_vm1, %v1540_v60  ;;  %v508_v43 = vsel %vm353_vm0, %v247_v52, -inf  ;;  %v254_v50 = vld [vmem:[%s3069_s23 + $0x3a] sm:$0x3] }
  0x3b   : > { %v470_v4 = vmax.f32 %v468_v48, %v469_v57  ;;  %v490_v5 = vrot.slane %v489_v58, 2  ;;  %v509_v44 = vrot.slane %v508_v43, 4  ;;  %v503_v14 = vmax.f32 %v501_v59, %v502_v6 }
  0x3c   : > { %v477_v7 = vmax.f32 %v475_v53, %v476_v62  ;;  %v484_v10 = vmax.f32 %v482_v54, %v483_v63  ;;  %v497_v11 = vrot.slane %v496_v1, 2  ;;  %v515_v15 = vsel %vm353_vm0, %v248_v61, -inf }
  0x3d   : > { %v471_v12 = vrot.slane %v470_v4, 1  ;;  %v491_v13 = vmax.f32 %v489_v58, %v490_v5  ;;  %v510_v19 = vmax.f32 %v508_v43, %v509_v44  ;;  %v504_v24 = vrot.slane %v503_v14, 2 }
  0x3e   : > { %v478_v17 = vrot.slane %v477_v7, 1  ;;  %v485_v2 = vrot.slane %v484_v10, 1  ;;  %v498_v18 = vmax.f32 %v496_v1, %v497_v11  ;;  %v516_v25 = vrot.slane %v515_v15, 4  ;;  %v256_v1 = vld [vmem:[%s3069_s23 + $0x3e] sm:$0x3] }
  0x3f   : > { %v3171_v3 = vmax.f32 %v470_v4, %v471_v12  ;;  %v492_v21 = vrot.slane %v491_v13, 1  ;;  %v511_v8 = vrot.slane %v510_v19, 2  ;;  %v505_v32 = vmax.f32 %v503_v14, %v504_v24 }
  0x40   : > { %v3174_v27 = vmax.f32 %v477_v7, %v478_v17  ;;  %v3176_v28 = vmax.f32 %v484_v10, %v485_v2  ;;  %v499_v29 = vrot.slane %v498_v18, 1  ;;  %v517_v33 = vmax.f32 %v515_v15, %v516_v25 }
  0x41   : > { %v3179_v31 = vmax.f32 %v491_v13, %v492_v21  ;;  %v522_v34 = vsel %vm353_vm0, %v249_v16, -inf  ;;  %v3182_v35 = vld [vmem:[#allocation2 + $0x12] sm:$0xff]  ;;  %v512_v37 = vmax.f32 %v510_v19, %v511_v8  ;;  %v529_v38 = vsel %vm353_vm0, %v250_v20, -inf }
  0x42   : > { %v1616_v9 = vld [vmem:[#allocation2 + $0x11] sm:$0xff]  ;;  %v3184_v36 = vmax.f32 %v498_v18, %v499_v29  ;;  %v523_v22 = vrot.slane %v522_v34, 4  ;;  %1722 = vrot.lane.b32.xlu1 %v3182_v35, %s2974_s25  ;;  %v506_v40 = vrot.slane %v505_v32, 1  ;;  %v518_v23 = vrot.slane %v517_v33, 2 }
  0x43   : > { %1690 = vrot.lane.b32.xlu0 %v1616_v9, %s2973_s24  ;;  %v530_v41 = vrot.slane %v529_v38, 4  ;;  %v536_v42 = vsel %vm353_vm0, %v251_v26, -inf  ;;  %v513_v45 = vrot.slane %v512_v37, 1  ;;  %v543_v48 = vsel %vm353_vm0, %v252_v30, -inf  ;;  %v1631_v49 = vld [vmem:[#allocation2 + $0x10] sm:$0xff] }
  0x44   : > { %v524_v46 = vmax.f32 %v522_v34, %v523_v22  ;;  %v537_v47 = vrot.slane %v536_v42, 4  ;;  %v3195_v52 = vmax.f32 %v505_v32, %v506_v40  ;;  %v519_v53 = vmax.f32 %v517_v33, %v518_v23 }
  0x45   : > { %v531_v54 = vmax.f32 %v529_v38, %v530_v41  ;;  %v544_v55 = vrot.slane %v543_v48, 4  ;;  %v3197_v56 = vmax.f32 %v512_v37, %v513_v45  ;;  %v550_v59 = vsel %vm353_vm0, %v253_v39, -inf }
  0x46   : > { %v525_v57 = vrot.slane %v524_v46, 2  ;;  %v538_v58 = vmax.f32 %v536_v42, %v537_v47  ;;  %v520_v60 = vrot.slane %v519_v53, 1  ;;  %v551_v63 = vrot.slane %v550_v59, 4 }
  0x47   : > { %v532_v61 = vrot.slane %v531_v54, 2  ;;  %v545_v62 = vmax.f32 %v543_v48, %v544_v55  ;;  %1752 = vrot.lane.b32.xlu0 %v1631_v49, %s2975_s26  ;;  %v557_v6 = vsel %vm353_vm0, %v254_v50, -inf  ;;  %v564_v43 = vsel %vm353_vm0, %v255_v51, -inf }
  0x48   : > { %v526_v4 = vmax.f32 %v524_v46, %v525_v57  ;;  %v539_v5 = vrot.slane %v538_v58, 2  ;;  %v521_v7 = vmax.f32 %v519_v53, %v520_v60  ;;  %v552_v44 = vmax.f32 %v550_v59, %v551_v63  ;;  %v258_v60 = vld [vmem:[%s3069_s23 + $0x42] sm:$0x3] }
  0x49   : > { %v533_v10 = vmax.f32 %v531_v54, %v532_v61  ;;  %v546_v11 = vrot.slane %v545_v62, 2  ;;  %v558_v14 = vrot.slane %v557_v6, 4  ;;  %v565_v15 = vrot.slane %v564_v43, 4 }
  0x4a   : > { %v527_v12 = vrot.slane %v526_v4, 1  ;;  %v540_v13 = vmax.f32 %v538_v58, %v539_v5  ;;  %v553_v2 = vrot.slane %v552_v44, 2  ;;  %v571_v18 = vsel %vm353_vm0, %v256_v1, -inf  ;;  %v259_v1 = vld [vmem:[%s3069_s23 + $0x44] sm:$0x3] }
  0x4b   : > { %v534_v16 = vrot.slane %v533_v10, 1  ;;  %v547_v17 = vmax.f32 %v545_v62, %v546_v11  ;;  %1784 = vrot.lane.b32.xlu0 %v1616_v9, %s2976_s27  ;;  %v559_v21 = vmax.f32 %v557_v6, %v558_v14  ;;  %v566_v24 = vmax.f32 %v564_v43, %v565_v15 }
  0x4c   : > { %v528_v19 = vmax.f32 %v526_v4, %v527_v12  ;;  %v541_v20 = vrot.slane %v540_v13, 1  ;;  %v554_v29 = vmax.f32 %v552_v44, %v553_v2  ;;  %v572_v8 = vrot.slane %v571_v18, 4  ;;  %v260_v12 = vld [vmem:[%s3069_s23 + $0x46] sm:$0x3] }
  0x4d   : > { %v535_v25 = vmax.f32 %v533_v10, %v534_v16  ;;  %v548_v26 = vrot.slane %v547_v17, 1  ;;  %v560_v32 = vrot.slane %v559_v21, 2  ;;  %v567_v33 = vrot.slane %v566_v24, 2 }
  0x4e   : > { %v542_v30 = vmax.f32 %v540_v13, %v541_v20  ;;  %v1275_v34 = vsel %vm1250_vm1, %v3171_v3, -inf  ;;  %v555_v22 = vrot.slane %v554_v29, 1  ;;  %v573_v38 = vmax.f32 %v571_v18, %v572_v8  ;;  %v261_v13 = vld [vmem:[%s3069_s23 + $0x48] sm:$0x3] }
  0x4f   : > { %v549_v37 = vmax.f32 %v547_v17, %v548_v26  ;;  %v1276_v39 = vsel %vm1250_vm1, %v528_v19, -inf  ;;  %v561_v9 = vmax.f32 %v559_v21, %v560_v32  ;;  %v568_v40 = vmax.f32 %v566_v24, %v567_v33  ;;  %v262_v17 = vld [vmem:[%s3069_s23 + $0x4a] sm:$0x3]  ;;  %v263_v26 = vld [vmem:[%s3069_s23 + $0x4c] sm:$0x3] }
  0x50   : > { %v1277_v23 = vmax.f32 %v1275_v34, %v1276_v39  ;;  %v1278_v41 = vsel %vm1250_vm1, %v3174_v27, -inf  ;;  %v556_v42 = vmax.f32 %v554_v29, %v555_v22  ;;  %v574_v45 = vrot.slane %v573_v38, 2 }
  0x51   : > { %v1279_v46 = vsel %vm1250_vm1, %v535_v25, -inf  ;;  %v1281_v3 = vsel %vm1250_vm1, %v3176_v28, -inf  ;;  %v562_v47 = vrot.slane %v561_v9, 1  ;;  %v569_v48 = vrot.slane %v568_v40, 1  ;;  %v257_v28 = vld [vmem:[%s3069_s23 + $0x40] sm:$0x3] }
  0x52   : > { %v1280_v49 = vmax.f32 %v1278_v41, %v1279_v46  ;;  %v1282_v50 = vsel %vm1250_vm1, %v542_v30, -inf  ;;  %v575_v51 = vmax.f32 %v573_v38, %v574_v45  ;;  %v1284_v27 = vsel %vm1250_vm1, %v3179_v31, -inf  ;;  %v264_v38 = vld [vmem:[%s3069_s23 + $0x4e] sm:$0x3] }
  0x53   : > { %v1283_v53 = vmax.f32 %v1281_v3, %v1282_v50  ;;  %v1285_v54 = vsel %vm1250_vm1, %v549_v37, -inf  ;;  %v563_v55 = vmax.f32 %v561_v9, %v562_v47  ;;  %v570_v57 = vmax.f32 %v568_v40, %v569_v48 }
  0x54   : > { %v1286_v58 = vmax.f32 %v1284_v27, %v1285_v54  ;;  %v1287_v59 = vsel %vm1250_vm1, %v3184_v36, -inf  ;;  %v576_v61 = vrot.slane %v575_v51, 1  ;;  %v1288_v62 = vsel %vm1250_vm1, %v556_v42, -inf  ;;  %v265_v27 = vld [vmem:[%s3069_s23 + $0x50] sm:$0x3] }
  0x55   : > { %v1290_v63 = vsel %vm1250_vm1, %v3195_v52, -inf  ;;  %v1293_v31 = vsel %vm1250_vm1, %v3197_v56, -inf  ;;  %v1289_v4 = vmax.f32 %v1287_v59, %v1288_v62  ;;  %v1291_v5 = vsel %vm1250_vm1, %v563_v55, -inf  ;;  %v266_v59 = vld [vmem:[%s3069_s23 + $0x52] sm:$0x3] }
  0x56   : > { %v1294_v36 = vsel %vm1250_vm1, %v570_v57, -inf  ;;  %v1296_v6 = vsel %vm1250_vm1, %v521_v7, -inf  ;;  %v577_v43 = vmax.f32 %v575_v51, %v576_v61  ;;  %v1292_v10 = vmax.f32 %v1290_v63, %v1291_v5  ;;  %v267_v5 = vld [vmem:[%s3069_s23 + $0x54] sm:$0x3] }
  0x57   : > { %v1295_v11 = vmax.f32 %v1293_v31, %v1294_v36  ;;  %v1541_v44 = vsel %vm1527_vm2, %v1280_v49, %v1277_v23  ;;  %v578_v56 = vsel %vm353_vm0, %v257_v28, -inf  ;;  %v585_v14 = vsel %vm353_vm0, %v258_v60, -inf  ;;  %v268_v36 = vld [vmem:[%s3069_s23 + $0x56] sm:$0x3] }
  0x58   : > { %v1542_v52 = vsel %vm1529_vm3, %v1283_v53, %v1541_v44  ;;  %v592_v15 = vsel %vm353_vm0, %v259_v1, -inf  ;;  %v1297_v16 = vsel %vm1250_vm1, %v577_v43, -inf  ;;  %v579_v2 = vrot.slane %v578_v56, 4 }
  0x59   : > { %v1543_v7 = vsel %vm1531_vm4, %v1286_v58, %v1542_v52  ;;  %v586_v18 = vrot.slane %v585_v14, 4  ;;  %v1298_v19 = vmax.f32 %v1296_v6, %v1297_v16  ;;  %v593_v21 = vrot.slane %v592_v15, 4 }
  0x5a   : > { %v1544_v20 = vsel %vm1533_vm5, %v1289_v4, %v1543_v7  ;;  %v599_v24 = vsel %vm353_vm0, %v260_v12, -inf  ;;  %v580_v29 = vmax.f32 %v578_v56, %v579_v2  ;;  %v606_v34 = vsel %vm353_vm0, %v261_v13, -inf }
  0x5b   : > { %v1545_v25 = vsel %vm1535_vm6, %v1292_v10, %v1544_v20  ;;  %v587_v8 = vmax.f32 %v585_v14, %v586_v18  ;;  %v600_v30 = vrot.slane %v599_v24, 4  ;;  %v594_v33 = vmax.f32 %v592_v15, %v593_v21  ;;  %v269_v15 = vld [vmem:[%s3069_s23 + $0x58] sm:$0x3]  ;;  %v270_v18 = vld [vmem:[%s3069_s23 + $0x5a] sm:$0x3] }
  0x5c   : > { %v1546_v32 = vsel %vm1537_vm7, %v1295_v11, %v1545_v25  ;;  %v613_v37 = vsel %vm353_vm0, %v262_v17, -inf  ;;  %v581_v39 = vrot.slane %v580_v29, 2  ;;  %v607_v41 = vrot.slane %v606_v34, 4 }
  0x5d   : > { %v1547_v22 = vsel %vm1539_vm8, %v1298_v19, %v1546_v32  ;;  %v588_v9 = vrot.slane %v587_v8, 2  ;;  %v601_v40 = vmax.f32 %v599_v24, %v600_v30  ;;  %v595_v23 = vrot.slane %v594_v33, 2  ;;  %v271_v30 = vld [vmem:[%s3069_s23 + $0x5c] sm:$0x3] }
  0x5e   : > { %1600 = vst.msk [vmem:[#allocation2 + $0x21] sm:$0xff] %vm1250_vm1, %v1547_v22  ;;  %v614_v42 = vrot.slane %v613_v37, 4  ;;  %v620_v45 = vsel %vm353_vm0, %v263_v26, -inf  ;;  %v582_v46 = vmax.f32 %v580_v29, %v581_v39  ;;  %v608_v50 = vmax.f32 %v606_v34, %v607_v41 }
  0x5f   : > { %v589_v3 = vmax.f32 %v587_v8, %v588_v9  ;;  %v602_v47 = vrot.slane %v601_v40, 2  ;;  %v621_v48 = vrot.slane %v620_v45, 4  ;;  %v596_v49 = vmax.f32 %v594_v33, %v595_v23 }
  0x60   : > { %v615_v51 = vmax.f32 %v613_v37, %v614_v42  ;;  %v627_v53 = vsel %vm353_vm0, %v264_v38, -inf  ;;  %v583_v54 = vrot.slane %v582_v46, 1  ;;  %v609_v60 = vrot.slane %v608_v50, 2 }
  0x61   : > { %v590_v55 = vrot.slane %v589_v3, 1  ;;  %v603_v57 = vmax.f32 %v601_v40, %v602_v47  ;;  %v622_v58 = vmax.f32 %v620_v45, %v621_v48  ;;  %v597_v28 = vrot.slane %v596_v49, 1  ;;  %v272_v40 = vld [vmem:[%s3069_s23 + $0x5e] sm:$0x3] }
  0x62   : > { %v616_v61 = vrot.slane %v615_v51, 2  ;;  %v628_v62 = vrot.slane %v627_v53, 4  ;;  %v3255_v63 = vmax.f32 %v582_v46, %v583_v54  ;;  %v610_v43 = vmax.f32 %v608_v50, %v609_v60 }
  0x63   : > { %v3257_v31 = vmax.f32 %v589_v3, %v590_v55  ;;  %v604_v1 = vrot.slane %v603_v57, 1  ;;  %v623_v4 = vrot.slane %v622_v58, 2  ;;  %v3261_v6 = vmax.f32 %v596_v49, %v597_v28 }
  0x64   : > { %v617_v10 = vmax.f32 %v615_v51, %v616_v61  ;;  %v629_v11 = vmax.f32 %v627_v53, %v628_v62  ;;  %v634_v56 = vsel %vm353_vm0, %v265_v27, -inf  ;;  %v641_v14 = vsel %vm353_vm0, %v266_v59, -inf }
  0x65   : > { %v3263_v44 = vld [vmem:[#allocation2 + $0x20] sm:$0xff]  ;;  %v3267_v52 = vmax.f32 %v603_v57, %v604_v1  ;;  %v624_v13 = vmax.f32 %v622_v58, %v623_v4  ;;  %v611_v16 = vrot.slane %v610_v43, 1  ;;  %v635_v2 = vrot.slane %v634_v56, 4 }
  0x66   : > { %v3265_v12 = vld [vmem:[#allocation2 + $0x21] sm:$0xff]  ;;  %1754 = vrot.lane.b32.xlu1 %v3263_v44, %s2975_s26  ;;  %v618_v7 = vrot.slane %v617_v10, 1  ;;  %v630_v17 = vrot.slane %v629_v11, 2  ;;  %v642_v20 = vrot.slane %v641_v14, 4  ;;  %v648_v21 = vsel %vm353_vm0, %v267_v5, -inf }
  0x67   : > { %1786 = vrot.lane.b32.xlu0 %v3265_v12, %s2976_s27  ;;  %v625_v19 = vrot.slane %v624_v13, 1  ;;  %v655_v24 = vsel %vm353_vm0, %v268_v36, -inf  ;;  %v3279_v25 = vmax.f32 %v610_v43, %v611_v16  ;;  %v636_v8 = vmax.f32 %v634_v56, %v635_v2  ;;  %v3297_v58 = vld [vmem:[#allocation2 + $0x22] sm:$0xff] }
  0x68   : > { %v3281_v26 = vmax.f32 %v617_v10, %v618_v7  ;;  %v631_v29 = vmax.f32 %v629_v11, %v630_v17  ;;  %v643_v33 = vmax.f32 %v641_v14, %v642_v20  ;;  %v649_v34 = vrot.slane %v648_v21, 4 }
  0x69   : > { %v3284_v32 = vmax.f32 %v624_v13, %v625_v19  ;;  %v656_v37 = vrot.slane %v655_v24, 4  ;;  %v637_v38 = vrot.slane %v636_v8, 2  ;;  %v662_v39 = vsel %vm353_vm0, %v269_v15, -inf }
  0x6a   : > { %1692 = vrot.lane.b32.xlu1 %v3265_v12, %s2973_s24  ;;  %v632_v22 = vrot.slane %v631_v29, 1  ;;  %v669_v9 = vsel %vm353_vm0, %v270_v18, -inf  ;;  %v644_v23 = vrot.slane %v643_v33, 2  ;;  %v650_v41 = vmax.f32 %v648_v21, %v649_v34 }
  0x6b   : > { %v657_v42 = vmax.f32 %v655_v24, %v656_v37  ;;  %v663_v45 = vrot.slane %v662_v39, 4  ;;  %v638_v3 = vmax.f32 %v636_v8, %v637_v38  ;;  %v670_v47 = vrot.slane %v669_v9, 4 }
  0x6c   : > { %v3291_v46 = vmax.f32 %v631_v29, %v632_v22  ;;  %v676_v48 = vsel %vm353_vm0, %v271_v30, -inf  ;;  %v645_v49 = vmax.f32 %v643_v33, %v644_v23  ;;  %v651_v50 = vrot.slane %v650_v41, 2  ;;  %v273_v23 = vld [vmem:[%s3069_s23 + $0x60] sm:$0x3] }
  0x6d   : > { %v658_v51 = vrot.slane %v657_v42, 2  ;;  %v664_v53 = vmax.f32 %v662_v39, %v663_v45  ;;  %v639_v27 = vrot.slane %v638_v3, 1  ;;  %v671_v54 = vmax.f32 %v669_v9, %v670_v47  ;;  %v274_v45 = vld [vmem:[%s3069_s23 + $0x62] sm:$0x3] }
  0x6e   : > { %1816 = vrot.lane.b32.xlu1 %v3182_v35, %s2977_s28  ;;  %v677_v55 = vrot.slane %v676_v48, 4  ;;  %v683_v57 = vsel %vm353_vm0, %v272_v40, -inf  ;;  %v646_v59 = vrot.slane %v645_v49, 1  ;;  %v652_v28 = vmax.f32 %v650_v41, %v651_v50 }
  0x6f   : > { %v659_v60 = vmax.f32 %v657_v42, %v658_v51  ;;  %v665_v61 = vrot.slane %v664_v53, 2  ;;  %v640_v62 = vmax.f32 %v638_v3, %v639_v27  ;;  %v672_v1 = vrot.slane %v671_v54, 2 }
  0x70   : > { %v678_v4 = vmax.f32 %v676_v48, %v677_v55  ;;  %v684_v5 = vrot.slane %v683_v57, 4  ;;  %v647_v36 = vmax.f32 %v645_v49, %v646_v59  ;;  %v653_v43 = vrot.slane %v652_v28, 1  ;;  %v275_v49 = vld [vmem:[%s3069_s23 + $0x64] sm:$0x3]  ;;  %v277_v55 = vld [vmem:[%s3069_s23 + $0x68] sm:$0x3] }
  0x71   : > { %v660_v10 = vrot.slane %v659_v60, 1  ;;  %v666_v11 = vmax.f32 %v664_v53, %v665_v61  ;;  %v673_v35 = vmax.f32 %v671_v54, %v672_v1  ;;  %v1299_v14 = vsel %vm1250_vm1, %v3255_v63, -inf  ;;  %v276_v53 = vld [vmem:[%s3069_s23 + $0x66] sm:$0x3]  ;;  %v278_v1 = vld [vmem:[%s3069_s23 + $0x6a] sm:$0x3] }
  0x72   : > { %1724 = vrot.lane.b32.xlu1 %v3297_v58, %s2974_s25  ;;  %v679_v13 = vrot.slane %v678_v4, 2  ;;  %v685_v56 = vmax.f32 %v683_v57, %v684_v5  ;;  %v654_v15 = vmax.f32 %v652_v28, %v653_v43  ;;  %v1300_v17 = vsel %vm1250_vm1, %v640_v62, -inf }
  0x73   : > { %v661_v16 = vmax.f32 %v659_v60, %v660_v10  ;;  %v667_v7 = vrot.slane %v666_v11, 1  ;;  %v674_v2 = vrot.slane %v673_v35, 1  ;;  %v1301_v20 = vmax.f32 %v1299_v14, %v1300_v17  ;;  %v280_v14 = vld [vmem:[%s3069_s23 + $0x6e] sm:$0x3] }
  0x74   : > { %v680_v18 = vmax.f32 %v678_v4, %v679_v13  ;;  %v686_v19 = vrot.slane %v685_v56, 2  ;;  %v1302_v24 = vsel %vm1250_vm1, %v3257_v31, -inf  ;;  %v1303_v29 = vsel %vm1250_vm1, %v647_v36, -inf }
  0x75   : > { %v668_v21 = vmax.f32 %v666_v11, %v667_v7  ;;  %v1305_v8 = vsel %vm1250_vm1, %v3261_v6, -inf  ;;  %v675_v63 = vmax.f32 %v673_v35, %v674_v2  ;;  %v1304_v34 = vmax.f32 %v1302_v24, %v1303_v29 }
  0x76   : > { %v681_v30 = vrot.slane %v680_v18, 1  ;;  %v687_v33 = vmax.f32 %v685_v56, %v686_v19  ;;  %1848 = vrot.lane.b32.xlu1 %v3263_v44, %s2978_s29  ;;  %v1306_v37 = vsel %vm1250_vm1, %v654_v15, -inf  ;;  %v1308_v31 = vsel %vm1250_vm1, %v3267_v52, -inf  ;;  %v279_v56 = vld [vmem:[%s3069_s23 + $0x6c] sm:$0x3] }
  0x77   : > { %v1309_v22 = vsel %vm1250_vm1, %v661_v16, -inf  ;;  %v1311_v6 = vsel %vm1250_vm1, %v3279_v25, -inf  ;;  %v1307_v9 = vmax.f32 %v1305_v8, %v1306_v37  ;;  %v1312_v41 = vsel %vm1250_vm1, %v668_v21, -inf }
  0x78   : > { %v682_v38 = vmax.f32 %v680_v18, %v681_v30  ;;  %v688_v39 = vrot.slane %v687_v33, 1  ;;  %v1310_v40 = vmax.f32 %v1308_v31, %v1309_v22  ;;  %v1314_v44 = vsel %vm1250_vm1, %v3281_v26, -inf }
  0x79   : > { %v1315_v52 = vsel %vm1250_vm1, %v675_v63, -inf  ;;  %v1317_v42 = vsel %vm1250_vm1, %v3284_v32, -inf  ;;  %v1313_v25 = vmax.f32 %v1311_v6, %v1312_v41  ;;  %v1320_v51 = vsel %vm1250_vm1, %v3291_v46, -inf  ;;  %v281_v6 = vld [vmem:[%s3069_s23 + $0x70] sm:$0x3] }
  0x7a   : > { %v689_v3 = vmax.f32 %v687_v33, %v688_v39  ;;  %v1316_v47 = vmax.f32 %v1314_v44, %v1315_v52  ;;  %v1318_v48 = vsel %vm1250_vm1, %v682_v38, -inf  ;;  %v1548_v26 = vsel %vm1527_vm2, %v1304_v34, %v1301_v20 }
  0x7b   : > { %v1319_v50 = vmax.f32 %v1317_v42, %v1318_v48  ;;  %v690_v27 = vsel %vm353_vm0, %v273_v23, -inf  ;;  %v1549_v32 = vsel %vm1529_vm3, %v1307_v9, %v1548_v26  ;;  %v697_v59 = vsel %vm353_vm0, %v274_v45, -inf  ;;  %v282_v42 = vld [vmem:[%s3069_s23 + $0x72] sm:$0x3]  ;;  %v283_v45 = vld [vmem:[%s3069_s23 + $0x74] sm:$0x3] }
  0x7c   : > { %v1321_v54 = vsel %vm1250_vm1, %v689_v3, -inf  ;;  %v691_v57 = vrot.slane %v690_v27, 4  ;;  %v1550_v60 = vsel %vm1531_vm4, %v1310_v40, %v1549_v32  ;;  %v698_v61 = vrot.slane %v697_v59, 4 }
  0x7d   : > { %v1322_v28 = vmax.f32 %v1320_v51, %v1321_v54  ;;  %v704_v46 = vsel %vm353_vm0, %v275_v49, -inf  ;;  %v1551_v62 = vsel %vm1533_vm5, %v1313_v25, %v1550_v60  ;;  %v711_v36 = vsel %vm353_vm0, %v276_v53, -inf  ;;  %v284_v49 = vld [vmem:[%s3069_s23 + $0x76] sm:$0x3] }
  0x7e   : > { %v692_v4 = vmax.f32 %v690_v27, %v691_v57  ;;  %v705_v5 = vrot.slane %v704_v46, 4  ;;  %v1552_v43 = vsel %vm1535_vm6, %v1316_v47, %v1551_v62  ;;  %v699_v10 = vmax.f32 %v697_v59, %v698_v61 }
  0x7f   : > { %v712_v11 = vrot.slane %v711_v36, 4  ;;  %v718_v35 = vsel %vm353_vm0, %v277_v55, -inf  ;;  %v1553_v13 = vsel %vm1537_vm7, %v1319_v50, %v1552_v43  ;;  %v725_v19 = vsel %vm353_vm0, %v278_v1, -inf  ;;  %v285_v50 = vld [vmem:[%s3069_s23 + $0x78] sm:$0x3] }
  0x80   : > { %v693_v15 = vrot.slane %v692_v4, 2  ;;  %v706_v16 = vmax.f32 %v704_v46, %v705_v5  ;;  %v719_v7 = vrot.slane %v718_v35, 4  ;;  %v1554_v17 = vsel %vm1539_vm8, %v1322_v28, %v1553_v13  ;;  %v286_v1 = vld [vmem:[%s3069_s23 + $0x7a] sm:$0x3] }
  0x81   : > { %v700_v2 = vrot.slane %v699_v10, 2  ;;  %v713_v18 = vmax.f32 %v711_v36, %v712_v11  ;;  %1601 = vst.msk [vmem:[#allocation2 + $0x31] sm:$0xff] %vm1250_vm1, %v1554_v17  ;;  %v726_v29 = vrot.slane %v725_v19, 4  ;;  %v732_v30 = vsel %vm353_vm0, %v279_v56, -inf  ;;  %v287_v56 = vld [vmem:[%s3069_s23 + $0x7c] sm:$0x3] }
  0x82   : > { %v694_v20 = vmax.f32 %v692_v4, %v693_v15  ;;  %v707_v21 = vrot.slane %v706_v16, 2  ;;  %v720_v24 = vmax.f32 %v718_v35, %v719_v7  ;;  %v739_v33 = vsel %vm353_vm0, %v280_v14, -inf  ;;  %v288_v17 = vld [vmem:[%s3069_s23 + $0x7e] sm:$0x3] }
  0x83   : > { %v701_v8 = vmax.f32 %v699_v10, %v700_v2  ;;  %v714_v63 = vrot.slane %v713_v18, 2  ;;  %v727_v22 = vmax.f32 %v725_v19, %v726_v29  ;;  %v733_v9 = vrot.slane %v732_v30, 4 }
  0x84   : > { %v695_v34 = vrot.slane %v694_v20, 1  ;;  %v708_v37 = vmax.f32 %v706_v16, %v707_v21  ;;  %v721_v31 = vrot.slane %v720_v24, 2  ;;  %v740_v40 = vrot.slane %v739_v33, 4 }
  0x85   : > { %v702_v38 = vrot.slane %v701_v8, 1  ;;  %v715_v39 = vmax.f32 %v713_v18, %v714_v63  ;;  %v728_v52 = vrot.slane %v727_v22, 2  ;;  %v734_v47 = vmax.f32 %v732_v30, %v733_v9 }
  0x86   : > { %v3352_v23 = vmax.f32 %v694_v20, %v695_v34  ;;  %v709_v41 = vrot.slane %v708_v37, 1  ;;  %v722_v44 = vmax.f32 %v720_v24, %v721_v31  ;;  %v741_v48 = vmax.f32 %v739_v33, %v740_v40 }
  0x87   : > { %v3356_v3 = vmax.f32 %v701_v8, %v702_v38  ;;  %v716_v25 = vrot.slane %v715_v39, 1  ;;  %v729_v53 = vmax.f32 %v727_v22, %v728_v52  ;;  %v746_v27 = vsel %vm353_vm0, %v281_v6, -inf }
  0x88   : > { %v3360_v51 = vmax.f32 %v708_v37, %v709_v41  ;;  %v723_v26 = vrot.slane %v722_v44, 1  ;;  %v3363_v54 = vld [vmem:[#allocation2 + $0x31] sm:$0xff]  ;;  %v735_v57 = vrot.slane %v734_v47, 2  ;;  %v742_v59 = vrot.slane %v741_v48, 2 }
  0x89   : > { %v3365_v32 = vld [vmem:[#allocation2 + $0x30] sm:$0xff]  ;;  %v3367_v55 = vmax.f32 %v715_v39, %v716_v25  ;;  %v747_v28 = vrot.slane %v746_v27, 4  ;;  %1694 = vrot.lane.b32.xlu0 %v3363_v54, %s2973_s24  ;;  %v730_v61 = vrot.slane %v729_v53, 1  ;;  %v753_v46 = vsel %vm353_vm0, %v282_v42, -inf }
  0x8a   : > { %1756 = vrot.lane.b32.xlu1 %v3365_v32, %s2975_s26  ;;  %v3373_v60 = vmax.f32 %v722_v44, %v723_v26  ;;  %v760_v62 = vsel %vm353_vm0, %v283_v45, -inf  ;;  %v736_v4 = vmax.f32 %v734_v47, %v735_v57  ;;  %v743_v5 = vmax.f32 %v741_v48, %v742_v59  ;;  %v3389_v21 = vld [vmem:[#allocation2 + $0x32] sm:$0xff] }
  0x8b   : > { %v748_v36 = vmax.f32 %v746_v27, %v747_v28  ;;  %v754_v43 = vrot.slane %v753_v46, 4  ;;  %v3378_v10 = vmax.f32 %v729_v53, %v730_v61  ;;  %v761_v11 = vrot.slane %v760_v62, 4 }
  0x8c   : > { %v767_v35 = vsel %vm353_vm0, %v284_v49, -inf  ;;  %v774_v13 = vsel %vm353_vm0, %v285_v50, -inf  ;;  %v737_v14 = vrot.slane %v736_v4, 1  ;;  %v744_v15 = vrot.slane %v743_v5, 1 }
  0x8d   : > { %v749_v16 = vrot.slane %v748_v36, 2  ;;  %v755_v7 = vmax.f32 %v753_v46, %v754_v43  ;;  %1818 = vrot.lane.b32.xlu0 %v3297_v58, %s2977_s28  ;;  %v762_v2 = vmax.f32 %v760_v62, %v761_v11  ;;  %v768_v18 = vrot.slane %v767_v35, 4 }
  0x8e   : > { %1880 = vrot.lane.b32.xlu1 %v3265_v12, %s2979_s30  ;;  %v775_v19 = vrot.slane %v774_v13, 4  ;;  %v781_v20 = vsel %vm353_vm0, %v286_v1, -inf  ;;  %v3391_v24 = vmax.f32 %v736_v4, %v737_v14  ;;  %v3393_v29 = vmax.f32 %v743_v5, %v744_v15 }
  0x8f   : > { %v750_v8 = vmax.f32 %v748_v36, %v749_v16  ;;  %v756_v63 = vrot.slane %v755_v7, 2  ;;  %v763_v30 = vrot.slane %v762_v2, 2  ;;  %v769_v33 = vmax.f32 %v767_v35, %v768_v18 }
  0x90   : > { %v776_v34 = vmax.f32 %v774_v13, %v775_v19  ;;  %v782_v37 = vrot.slane %v781_v20, 4  ;;  %v788_v22 = vsel %vm353_vm0, %v287_v56, -inf  ;;  %v795_v6 = vsel %vm353_vm0, %v288_v17, -inf  ;;  %v289_v19 = vld [vmem:[%s3069_s23 + $0x80] sm:$0x3] }
  0x91   : > { %v751_v31 = vrot.slane %v750_v8, 1  ;;  %v757_v12 = vmax.f32 %v755_v7, %v756_v63  ;;  %1726 = vrot.lane.b32.xlu0 %v3389_v21, %s2974_s25  ;;  %v764_v38 = vmax.f32 %v762_v2, %v763_v30  ;;  %v770_v39 = vrot.slane %v769_v33, 2  ;;  %v290_v30 = vld [vmem:[%s3069_s23 + $0x82] sm:$0x3] }
  0x92   : > { %1788 = vrot.lane.b32.xlu1 %v3363_v54, %s2976_s27  ;;  %v777_v9 = vrot.slane %v776_v34, 2  ;;  %v783_v40 = vmax.f32 %v781_v20, %v782_v37  ;;  %v789_v52 = vrot.slane %v788_v22, 4  ;;  %v796_v42 = vrot.slane %v795_v6, 4 }
  0x93   : > { %v752_v41 = vmax.f32 %v750_v8, %v751_v31  ;;  %v758_v44 = vrot.slane %v757_v12, 1  ;;  %v765_v45 = vrot.slane %v764_v38, 1  ;;  %v771_v25 = vmax.f32 %v769_v33, %v770_v39  ;;  %v291_v31 = vld [vmem:[%s3069_s23 + $0x84] sm:$0x3] }
  0x94   : > { %v778_v47 = vmax.f32 %v776_v34, %v777_v9  ;;  %v784_v48 = vrot.slane %v783_v40, 2  ;;  %v790_v50 = vmax.f32 %v788_v22, %v789_v52  ;;  %v797_v26 = vmax.f32 %v795_v6, %v796_v42 }
  0x95   : > { %v759_v49 = vmax.f32 %v757_v12, %v758_v44  ;;  %v1323_v53 = vsel %vm1250_vm1, %v3352_v23, -inf  ;;  %1850 = vrot.lane.b32.xlu0 %v3365_v32, %s2978_s29  ;;  %v766_v27 = vmax.f32 %v764_v38, %v765_v45  ;;  %v772_v57 = vrot.slane %v771_v25, 1 }
  0x96   : > { %v779_v59 = vrot.slane %v778_v47, 1  ;;  %v785_v28 = vmax.f32 %v783_v40, %v784_v48  ;;  %1912 = vrot.lane.b32.xlu1 %v3297_v58, %s2980_s6  ;;  %v791_v61 = vrot.slane %v790_v50, 2  ;;  %v798_v46 = vrot.slane %v797_v26, 2  ;;  %v293_v40 = vld [vmem:[%s3069_s23 + $0x88] sm:$0x3] }
  0x97   : > { %v1324_v62 = vsel %vm1250_vm1, %v752_v41, -inf  ;;  %v1326_v1 = vsel %vm1250_vm1, %v3356_v3, -inf  ;;  %v773_v4 = vmax.f32 %v771_v25, %v772_v57  ;;  %v1327_v11 = vsel %vm1250_vm1, %v759_v49, -inf  ;;  %v294_v41 = vld [vmem:[%s3069_s23 + $0x8a] sm:$0x3] }
  0x98   : > { %v780_v23 = vmax.f32 %v778_v47, %v779_v59  ;;  %v786_v5 = vrot.slane %v785_v28, 1  ;;  %v1325_v36 = vmax.f32 %v1323_v53, %v1324_v62  ;;  %v792_v32 = vmax.f32 %v790_v50, %v791_v61  ;;  %v295_v47 = vld [vmem:[%s3069_s23 + $0x8c] sm:$0x3] }
  0x99   : > { %v799_v43 = vmax.f32 %v797_v26, %v798_v46  ;;  %v1329_v35 = vsel %vm1250_vm1, %v3360_v51, -inf  ;;  %v1328_v13 = vmax.f32 %v1326_v1, %v1327_v11  ;;  %v1330_v56 = vsel %vm1250_vm1, %v766_v27, -inf }
  0x9a   : > { %v787_v58 = vmax.f32 %v785_v28, %v786_v5  ;;  %v1332_v3 = vsel %vm1250_vm1, %v3367_v55, -inf  ;;  %v793_v14 = vrot.slane %v792_v32, 1  ;;  %v1331_v16 = vmax.f32 %v1329_v35, %v1330_v56  ;;  %v296_v28 = vld [vmem:[%s3069_s23 + $0x8e] sm:$0x3] }
  0x9b   : > { %v800_v15 = vrot.slane %v799_v43, 1  ;;  %v1333_v7 = vsel %vm1250_vm1, %v773_v4, -inf  ;;  %v1335_v2 = vsel %vm1250_vm1, %v3373_v60, -inf  ;;  %v1336_v51 = vsel %vm1250_vm1, %v780_v23, -inf }
  0x9c   : > { %v1334_v17 = vmax.f32 %v1332_v3, %v1333_v7  ;;  %v1338_v18 = vsel %vm1250_vm1, %v3378_v10, -inf  ;;  %v794_v20 = vmax.f32 %v792_v32, %v793_v14  ;;  %v1337_v55 = vmax.f32 %v1335_v2, %v1336_v51  ;;  %v292_v10 = vld [vmem:[%s3069_s23 + $0x86] sm:$0x3]  ;;  %v297_v7 = vld [vmem:[%s3069_s23 + $0x90] sm:$0x3] }
  0x9d   : > { %v801_v8 = vmax.f32 %v799_v43, %v800_v15  ;;  %v1339_v63 = vsel %vm1250_vm1, %v787_v58, -inf  ;;  %v1341_v34 = vsel %vm1250_vm1, %v3391_v24, -inf  ;;  %v1344_v60 = vsel %vm1250_vm1, %v3393_v29, -inf }
  0x9e   : > { %v1340_v33 = vmax.f32 %v1338_v18, %v1339_v63  ;;  %v1555_v37 = vsel %vm1527_vm2, %v1328_v13, %v1325_v36  ;;  %v1342_v12 = vsel %vm1250_vm1, %v794_v20, -inf  ;;  %v802_v38 = vsel %vm353_vm0, %v289_v19, -inf  ;;  %v298_v63 = vld [vmem:[%s3069_s23 + $0x92] sm:$0x3] }
  0x9f   : > { %v1345_v22 = vsel %vm1250_vm1, %v801_v8, -inf  ;;  %v1556_v6 = vsel %vm1529_vm3, %v1331_v16, %v1555_v37  ;;  %v1343_v39 = vmax.f32 %v1341_v34, %v1342_v12  ;;  %v803_v29 = vrot.slane %v802_v38, 4 }
  0xa0   : > { %v1346_v9 = vmax.f32 %v1344_v60, %v1345_v22  ;;  %v1557_v24 = vsel %vm1531_vm4, %v1334_v17, %v1556_v6  ;;  %v809_v52 = vsel %vm353_vm0, %v290_v30, -inf  ;;  %v816_v42 = vsel %vm353_vm0, %v291_v31, -inf  ;;  %v299_v30 = vld [vmem:[%s3069_s23 + $0x94] sm:$0x3] }
  0xa1   : > { %v1558_v44 = vsel %vm1533_vm5, %v1337_v55, %v1557_v24  ;;  %v823_v45 = vsel %vm353_vm0, %v292_v10, -inf  ;;  %v804_v48 = vmax.f32 %v802_v38, %v803_v29  ;;  %v810_v49 = vrot.slane %v809_v52, 4  ;;  %v301_v29 = vld [vmem:[%s3069_s23 + $0x98] sm:$0x3] }
  0xa2   : > { %v1559_v25 = vsel %vm1535_vm6, %v1340_v33, %v1558_v44  ;;  %v817_v50 = vrot.slane %v816_v42, 4  ;;  %v824_v53 = vrot.slane %v823_v45, 4  ;;  %v830_v27 = vsel %vm353_vm0, %v293_v40, -inf }
  0xa3   : > { %v1560_v26 = vsel %vm1537_vm7, %v1343_v39, %v1559_v25  ;;  %v837_v57 = vsel %vm353_vm0, %v294_v41, -inf  ;;  %v805_v61 = vrot.slane %v804_v48, 2  ;;  %v811_v46 = vmax.f32 %v809_v52, %v810_v49  ;;  %v300_v39 = vld [vmem:[%s3069_s23 + $0x96] sm:$0x3]  ;;  %v302_v25 = vld [vmem:[%s3069_s23 + $0x9a] sm:$0x3] }
  0xa4   : > { %v1561_v59 = vsel %vm1539_vm8, %v1346_v9, %v1560_v26  ;;  %v818_v62 = vmax.f32 %v816_v42, %v817_v50  ;;  %v825_v1 = vmax.f32 %v823_v45, %v824_v53  ;;  %v831_v4 = vrot.slane %v830_v27, 4 }
  0xa5   : > { %1602 = vst.msk [vmem:[#allocation2 + $0x41] sm:$0xff] %vm1250_vm1, %v1561_v59  ;;  %v838_v23 = vrot.slane %v837_v57, 4  ;;  %v844_v5 = vsel %vm353_vm0, %v295_v47, -inf  ;;  %v806_v36 = vmax.f32 %v804_v48, %v805_v61  ;;  %v812_v32 = vrot.slane %v811_v46, 2  ;;  %v303_v59 = vld [vmem:[%s3069_s23 + $0x9c] sm:$0x3] }
  0xa6   : > { %v819_v43 = vrot.slane %v818_v62, 2  ;;  %v845_v11 = vrot.slane %v844_v5, 4  ;;  %v826_v35 = vrot.slane %v825_v1, 2  ;;  %v832_v58 = vmax.f32 %v830_v27, %v831_v4 }
  0xa7   : > { %v839_v13 = vmax.f32 %v837_v57, %v838_v23  ;;  %v851_v56 = vsel %vm353_vm0, %v296_v28, -inf  ;;  %v807_v3 = vrot.slane %v806_v36, 1  ;;  %v813_v14 = vmax.f32 %v811_v46, %v812_v32  ;;  %v304_v32 = vld [vmem:[%s3069_s23 + $0x9e] sm:$0x3] }
  0xa8   : > { %v820_v15 = vmax.f32 %v818_v62, %v819_v43  ;;  %v846_v16 = vmax.f32 %v844_v5, %v845_v11  ;;  %v827_v17 = vmax.f32 %v825_v1, %v826_v35  ;;  %v833_v2 = vrot.slane %v832_v58, 2 }
  0xa9   : > { %v840_v51 = vrot.slane %v839_v13, 2  ;;  %v852_v18 = vrot.slane %v851_v56, 4  ;;  %v3454_v19 = vmax.f32 %v806_v36, %v807_v3  ;;  %v814_v20 = vrot.slane %v813_v14, 1 }
  0xaa   : > { %v821_v8 = vrot.slane %v820_v15, 1  ;;  %v847_v55 = vrot.slane %v846_v16, 2  ;;  %v828_v33 = vrot.slane %v827_v17, 1  ;;  %v834_v34 = vmax.f32 %v832_v58, %v833_v2 }
  0xab   : > { %v841_v60 = vmax.f32 %v839_v13, %v840_v51  ;;  %v853_v37 = vmax.f32 %v851_v56, %v852_v18  ;;  %v3462_v12 = vmax.f32 %v813_v14, %v814_v20  ;;  %v858_v38 = vsel %vm353_vm0, %v297_v7, -inf }
  0xac   : > { %v3458_v31 = vld [vmem:[#allocation2 + $0x40] sm:$0xff]  ;;  %v3464_v22 = vmax.f32 %v820_v15, %v821_v8  ;;  %v848_v6 = vmax.f32 %v846_v16, %v847_v55  ;;  %v3472_v9 = vmax.f32 %v827_v17, %v828_v33  ;;  %v835_v24 = vrot.slane %v834_v34, 1 }
  0xad   : > { %v3460_v10 = vld [vmem:[#allocation2 + $0x41] sm:$0xff]  ;;  %1758 = vrot.lane.b32.xlu0 %v3458_v31, %s2975_s26  ;;  %v842_v40 = vrot.slane %v841_v60, 1  ;;  %v854_v41 = vrot.slane %v853_v37, 2  ;;  %v859_v52 = vrot.slane %v858_v38, 4  ;;  %v865_v42 = vsel %vm353_vm0, %v298_v63, -inf }
  0xae   : > { %1790 = vrot.lane.b32.xlu1 %v3460_v10, %s2976_s27  ;;  %v849_v44 = vrot.slane %v848_v6, 1  ;;  %v872_v45 = vsel %vm353_vm0, %v299_v30, -inf  ;;  %v3478_v47 = vmax.f32 %v834_v34, %v835_v24  ;;  %v866_v50 = vrot.slane %v865_v42, 4  ;;  %v3491_v1 = vld [vmem:[#allocation2 + $0x42] sm:$0xff] }
  0xaf   : > { %v3480_v48 = vmax.f32 %v841_v60, %v842_v40  ;;  %v855_v49 = vmax.f32 %v853_v37, %v854_v41  ;;  %v860_v53 = vmax.f32 %v858_v38, %v859_v52  ;;  %v873_v27 = vrot.slane %v872_v45, 4 }
  0xb0   : > { %v3482_v26 = vmax.f32 %v848_v6, %v849_v44  ;;  %v879_v57 = vsel %vm353_vm0, %v300_v39, -inf  ;;  %v867_v61 = vmax.f32 %v865_v42, %v866_v50  ;;  %v886_v62 = vsel %vm353_vm0, %v301_v29, -inf }
  0xb1   : > { %1882 = vrot.lane.b32.xlu0 %v3363_v54, %s2979_s30  ;;  %v856_v28 = vrot.slane %v855_v49, 1  ;;  %v880_v46 = vrot.slane %v879_v57, 4  ;;  %v861_v4 = vrot.slane %v860_v53, 2  ;;  %v874_v23 = vmax.f32 %v872_v45, %v873_v27 }
  0xb2   : > { %1914 = vrot.lane.b32.xlu1 %v3389_v21, %s2980_s6  ;;  %v887_v5 = vrot.slane %v886_v62, 4  ;;  %v893_v36 = vsel %vm353_vm0, %v302_v25, -inf  ;;  %v868_v54 = vrot.slane %v867_v61, 2  ;;  %v900_v3 = vsel %vm353_vm0, %v303_v59, -inf }
  0xb3   : > { %v3495_v43 = vmax.f32 %v855_v49, %v856_v28  ;;  %v881_v11 = vmax.f32 %v879_v57, %v880_v46  ;;  %v894_v35 = vrot.slane %v893_v36, 4  ;;  %v862_v58 = vmax.f32 %v860_v53, %v861_v4 }
  0xb4   : > { %v875_v13 = vrot.slane %v874_v23, 2  ;;  %v888_v56 = vmax.f32 %v886_v62, %v887_v5  ;;  %v869_v14 = vmax.f32 %v867_v61, %v868_v54  ;;  %v901_v7 = vrot.slane %v900_v3, 4  ;;  %v306_v5 = vld [vmem:[%s3069_s23 + $0xa2] sm:$0x3] }
  0xb5   : > { %1696 = vrot.lane.b32.xlu0 %v3460_v10, %s2973_s24  ;;  %v882_v15 = vrot.slane %v881_v11, 2  ;;  %v895_v16 = vmax.f32 %v893_v36, %v894_v35  ;;  %v863_v17 = vrot.slane %v862_v58, 1  ;;  %v907_v18 = vsel %vm353_vm0, %v304_v32, -inf }
  0xb6   : > { %1728 = vrot.lane.b32.xlu1 %v3491_v1, %s2974_s25  ;;  %v876_v2 = vmax.f32 %v874_v23, %v875_v13  ;;  %v889_v51 = vrot.slane %v888_v56, 2  ;;  %v870_v20 = vrot.slane %v869_v14, 1  ;;  %v902_v63 = vmax.f32 %v900_v3, %v901_v7  ;;  %v305_v23 = vld [vmem:[%s3069_s23 + $0xa0] sm:$0x3] }
  0xb7   : > { %v883_v8 = vmax.f32 %v881_v11, %v882_v15  ;;  %v896_v55 = vrot.slane %v895_v16, 2  ;;  %v864_v30 = vmax.f32 %v862_v58, %v863_v17  ;;  %v908_v60 = vrot.slane %v907_v18, 4  ;;  %v307_v11 = vld [vmem:[%s3069_s23 + $0xa4] sm:$0x3]  ;;  %v308_v15 = vld [vmem:[%s3069_s23 + $0xa6] sm:$0x3] }
  0xb8   : > { %v877_v33 = vrot.slane %v876_v2, 1  ;;  %v890_v34 = vmax.f32 %v888_v56, %v889_v51  ;;  %v871_v37 = vmax.f32 %v869_v14, %v870_v20  ;;  %v903_v39 = vrot.slane %v902_v63, 2 }
  0xb9   : > { %1820 = vrot.lane.b32.xlu0 %v3389_v21, %s2977_s28  ;;  %v884_v6 = vrot.slane %v883_v8, 1  ;;  %v897_v38 = vmax.f32 %v895_v16, %v896_v55  ;;  %v909_v41 = vmax.f32 %v907_v18, %v908_v60  ;;  %v1347_v29 = vsel %vm1250_vm1, %v3454_v19, -inf  ;;  %v310_v18 = vld [vmem:[%s3069_s23 + $0xaa] sm:$0x3] }
  0xba   : > { %1852 = vrot.lane.b32.xlu1 %v3458_v31, %s2978_s29  ;;  %v878_v24 = vmax.f32 %v876_v2, %v877_v33  ;;  %v891_v40 = vrot.slane %v890_v34, 1  ;;  %v904_v42 = vmax.f32 %v902_v63, %v903_v39  ;;  %v1348_v45 = vsel %vm1250_vm1, %v864_v30, -inf }
  0xbb   : > { %v885_v44 = vmax.f32 %v883_v8, %v884_v6  ;;  %v898_v52 = vrot.slane %v897_v38, 1  ;;  %v910_v21 = vrot.slane %v909_v41, 2  ;;  %v1349_v49 = vmax.f32 %v1347_v29, %v1348_v45  ;;  %v312_v45 = vld [vmem:[%s3069_s23 + $0xae] sm:$0x3] }
  0xbc   : > { %v892_v25 = vmax.f32 %v890_v34, %v891_v40  ;;  %v1350_v50 = vsel %vm1250_vm1, %v3462_v12, -inf  ;;  %v905_v53 = vrot.slane %v904_v42, 1  ;;  %v1351_v27 = vsel %vm1250_vm1, %v871_v37, -inf }
  0xbd   : > { %v899_v31 = vmax.f32 %v897_v38, %v898_v52  ;;  %v1353_v19 = vsel %vm1250_vm1, %v3464_v22, -inf  ;;  %v911_v57 = vmax.f32 %v909_v41, %v910_v21  ;;  %v1352_v59 = vmax.f32 %v1350_v50, %v1351_v27  ;;  %v311_v38 = vld [vmem:[%s3069_s23 + $0xac] sm:$0x3] }
  0xbe   : > { %v1354_v28 = vsel %vm1250_vm1, %v878_v24, -inf  ;;  %v1356_v61 = vsel %vm1250_vm1, %v3472_v9, -inf  ;;  %v906_v46 = vmax.f32 %v904_v42, %v905_v53  ;;  %v1357_v4 = vsel %vm1250_vm1, %v885_v44, -inf }
  0xbf   : > { %v1355_v62 = vmax.f32 %v1353_v19, %v1354_v28  ;;  %v1359_v12 = vsel %vm1250_vm1, %v3478_v47, -inf  ;;  %v912_v36 = vrot.slane %v911_v57, 1  ;;  %v1358_v22 = vmax.f32 %v1356_v61, %v1357_v4  ;;  %v313_v61 = vld [vmem:[%s3069_s23 + $0xb0] sm:$0x3] }
  0xc0   : > { %v1360_v32 = vsel %vm1250_vm1, %v892_v25, -inf  ;;  %v1362_v54 = vsel %vm1250_vm1, %v3480_v48, -inf  ;;  %v1363_v35 = vsel %vm1250_vm1, %v899_v31, -inf  ;;  %v1365_v58 = vsel %vm1250_vm1, %v3482_v26, -inf  ;;  %v309_v48 = vld [vmem:[%s3069_s23 + $0xa8] sm:$0x3] }
  0xc1   : > { %v1361_v9 = vmax.f32 %v1359_v12, %v1360_v32  ;;  %v1366_v47 = vsel %vm1250_vm1, %v906_v46, -inf  ;;  %v913_v13 = vmax.f32 %v911_v57, %v912_v36  ;;  %v1364_v56 = vmax.f32 %v1362_v54, %v1363_v35 }
  0xc2   : > { %v1367_v3 = vmax.f32 %v1365_v58, %v1366_v47  ;;  %v1368_v14 = vsel %vm1250_vm1, %v3495_v43, -inf  ;;  %v1562_v16 = vsel %vm1527_vm2, %v1352_v59, %v1349_v49  ;;  %v914_v7 = vsel %vm353_vm0, %v305_v23, -inf  ;;  %v314_v23 = vld [vmem:[%s3069_s23 + $0xb2] sm:$0x3]  ;;  %v315_v58 = vld [vmem:[%s3069_s23 + $0xb4] sm:$0x3] }
  0xc3   : > { %v921_v17 = vsel %vm353_vm0, %v306_v5, -inf  ;;  %v928_v2 = vsel %vm353_vm0, %v307_v11, -inf  ;;  %v1369_v26 = vsel %vm1250_vm1, %v913_v13, -inf  ;;  %v1563_v51 = vsel %vm1529_vm3, %v1355_v62, %v1562_v16  ;;  %v316_v47 = vld [vmem:[%s3069_s23 + $0xb6] sm:$0x3] }
  0xc4   : > { %v915_v20 = vrot.slane %v914_v7, 4  ;;  %v922_v8 = vrot.slane %v921_v17, 4  ;;  %v1370_v55 = vmax.f32 %v1368_v14, %v1369_v26  ;;  %v1564_v43 = vsel %vm1531_vm4, %v1358_v22, %v1563_v51 }
  0xc5   : > { %v929_v63 = vrot.slane %v928_v2, 4  ;;  %v935_v30 = vsel %vm353_vm0, %v308_v15, -inf  ;;  %v1565_v33 = vsel %vm1533_vm5, %v1361_v9, %v1564_v43  ;;  %v942_v24 = vsel %vm353_vm0, %v309_v48, -inf  ;;  %v317_v15 = vld [vmem:[%s3069_s23 + $0xb8] sm:$0x3] }
  0xc6   : > { %v916_v34 = vmax.f32 %v914_v7, %v915_v20  ;;  %v923_v60 = vmax.f32 %v921_v17, %v922_v8  ;;  %v936_v37 = vrot.slane %v935_v30, 4  ;;  %v1566_v6 = vsel %vm1535_vm6, %v1364_v56, %v1565_v33 }
  0xc7   : > { %v930_v39 = vmax.f32 %v928_v2, %v929_v63  ;;  %v949_v40 = vsel %vm353_vm0, %v310_v18, -inf  ;;  %v1567_v41 = vsel %vm1537_vm7, %v1367_v3, %v1566_v6  ;;  %v943_v21 = vrot.slane %v942_v24, 4 }
  0xc8   : > { %v917_v29 = vrot.slane %v916_v34, 2  ;;  %v924_v44 = vrot.slane %v923_v60, 2  ;;  %v937_v52 = vmax.f32 %v935_v30, %v936_v37  ;;  %v1568_v42 = vsel %vm1539_vm8, %v1370_v55, %v1567_v41  ;;  %v318_v55 = vld [vmem:[%s3069_s23 + $0xba] sm:$0x3] }
  0xc9   : > { %v931_v25 = vrot.slane %v930_v39, 2  ;;  %v950_v49 = vrot.slane %v949_v40, 4  ;;  %1603 = vst.msk [vmem:[#allocation2 + $0x51] sm:$0xff] %vm1250_vm1, %v1568_v42  ;;  %v956_v27 = vsel %vm353_vm0, %v311_v38, -inf  ;;  %v944_v57 = vmax.f32 %v942_v24, %v943_v21  ;;  %v319_v38 = vld [vmem:[%s3069_s23 + $0xbc] sm:$0x3] }
  0xca   : > { %v918_v50 = vmax.f32 %v916_v34, %v917_v29  ;;  %v925_v31 = vmax.f32 %v923_v60, %v924_v44  ;;  %v938_v53 = vrot.slane %v937_v52, 2  ;;  %v957_v28 = vrot.slane %v956_v27, 4 }
  0xcb   : > { %v932_v19 = vmax.f32 %v930_v39, %v931_v25  ;;  %v951_v59 = vmax.f32 %v949_v40, %v950_v49  ;;  %v963_v12 = vsel %vm353_vm0, %v312_v45, -inf  ;;  %v945_v36 = vrot.slane %v944_v57, 2 }
  0xcc   : > { %v919_v46 = vrot.slane %v918_v50, 1  ;;  %v926_v62 = vrot.slane %v925_v31, 1  ;;  %v939_v4 = vmax.f32 %v937_v52, %v938_v53  ;;  %v958_v32 = vmax.f32 %v956_v27, %v957_v28 }
  0xcd   : > { %v933_v5 = vrot.slane %v932_v19, 1  ;;  %v952_v22 = vrot.slane %v951_v59, 2  ;;  %v964_v35 = vrot.slane %v963_v12, 4  ;;  %v946_v56 = vmax.f32 %v944_v57, %v945_v36 }
  0xce   : > { %v3557_v54 = vmax.f32 %v918_v50, %v919_v46  ;;  %v3559_v11 = vmax.f32 %v925_v31, %v926_v62  ;;  %v940_v9 = vrot.slane %v939_v4, 1  ;;  %v959_v14 = vrot.slane %v958_v32, 2  ;;  %v320_v31 = vld [vmem:[%s3069_s23 + $0xbe] sm:$0x3] }
  0xcf   : > { %v3563_v13 = vmax.f32 %v932_v19, %v933_v5  ;;  %v953_v3 = vmax.f32 %v951_v59, %v952_v22  ;;  %v965_v48 = vmax.f32 %v963_v12, %v964_v35  ;;  %v970_v7 = vsel %vm353_vm0, %v313_v61, -inf }
  0xd0   : > { %v3566_v16 = vmax.f32 %v939_v4, %v940_v9  ;;  %v977_v17 = vsel %vm353_vm0, %v314_v23, -inf  ;;  %v3570_v2 = vld [vmem:[#allocation2 + $0x51] sm:$0xff]  ;;  %v947_v51 = vrot.slane %v946_v56, 1  ;;  %v960_v20 = vmax.f32 %v958_v32, %v959_v14 }
  0xd1   : > { %v3572_v26 = vld [vmem:[#allocation2 + $0x50] sm:$0xff]  ;;  %v954_v18 = vrot.slane %v953_v3, 1  ;;  %v971_v8 = vrot.slane %v970_v7, 4  ;;  %1698 = vrot.lane.b32.xlu0 %v3570_v2, %s2973_s24  ;;  %v966_v43 = vrot.slane %v965_v48, 2  ;;  %v978_v63 = vrot.slane %v977_v17, 4 }
  0xd2   : > { %1760 = vrot.lane.b32.xlu1 %v3572_v26, %s2975_s26  ;;  %v984_v30 = vsel %vm353_vm0, %v315_v58, -inf  ;;  %v991_v33 = vsel %vm353_vm0, %v316_v47, -inf  ;;  %v3581_v34 = vmax.f32 %v946_v56, %v947_v51  ;;  %v961_v37 = vrot.slane %v960_v20, 1  ;;  %v3594_v50 = vld [vmem:[#allocation2 + $0x52] sm:$0xff] }
  0xd3   : > { %v3583_v60 = vmax.f32 %v953_v3, %v954_v18  ;;  %v972_v6 = vmax.f32 %v970_v7, %v971_v8  ;;  %v967_v39 = vmax.f32 %v965_v48, %v966_v43  ;;  %v979_v24 = vmax.f32 %v977_v17, %v978_v63 }
  0xd4   : > { %v985_v40 = vrot.slane %v984_v30, 4  ;;  %v992_v41 = vrot.slane %v991_v33, 4  ;;  %v3586_v29 = vmax.f32 %v960_v20, %v961_v37  ;;  %v998_v52 = vsel %vm353_vm0, %v317_v15, -inf }
  0xd5   : > { %v973_v44 = vrot.slane %v972_v6, 2  ;;  %v1005_v42 = vsel %vm353_vm0, %v318_v55, -inf  ;;  %1822 = vrot.lane.b32.xlu0 %v3491_v1, %s2977_s28  ;;  %v968_v45 = vrot.slane %v967_v39, 1  ;;  %v980_v25 = vrot.slane %v979_v24, 2 }
  0xd6   : > { %1884 = vrot.lane.b32.xlu1 %v3460_v10, %s2979_s30  ;;  %v986_v21 = vmax.f32 %v984_v30, %v985_v40  ;;  %v993_v49 = vmax.f32 %v991_v33, %v992_v41  ;;  %v999_v27 = vrot.slane %v998_v52, 4  ;;  %v1006_v19 = vrot.slane %v1005_v42, 4 }
  0xd7   : > { %v974_v53 = vmax.f32 %v972_v6, %v973_v44  ;;  %v1012_v57 = vsel %vm353_vm0, %v319_v38, -inf  ;;  %v3598_v59 = vmax.f32 %v967_v39, %v968_v45  ;;  %v981_v28 = vmax.f32 %v979_v24, %v980_v25  ;;  %v322_v25 = vld [vmem:[%s3069_s23 + $0xc2] sm:$0x3] }
  0xd8   : > { %v987_v61 = vrot.slane %v986_v21, 2  ;;  %v994_v46 = vrot.slane %v993_v49, 2  ;;  %v1000_v4 = vmax.f32 %v998_v52, %v999_v27  ;;  %v1007_v10 = vmax.f32 %v1005_v42, %v1006_v19 }
  0xd9   : > { %v975_v62 = vrot.slane %v974_v53, 1  ;;  %v1013_v12 = vrot.slane %v1012_v57, 4  ;;  %1730 = vrot.lane.b32.xlu0 %v3594_v50, %s2974_s25  ;;  %v982_v23 = vrot.slane %v981_v28, 1  ;;  %v1019_v22 = vsel %vm353_vm0, %v320_v31, -inf }
  0xda   : > { %1792 = vrot.lane.b32.xlu1 %v3570_v2, %s2976_s27  ;;  %v988_v5 = vmax.f32 %v986_v21, %v987_v61  ;;  %v995_v36 = vmax.f32 %v993_v49, %v994_v46  ;;  %v1001_v9 = vrot.slane %v1000_v4, 2  ;;  %v1008_v35 = vrot.slane %v1007_v10, 2 }
  0xdb   : > { %v976_v32 = vmax.f32 %v974_v53, %v975_v62  ;;  %v1014_v58 = vmax.f32 %v1012_v57, %v1013_v12  ;;  %v983_v47 = vmax.f32 %v981_v28, %v982_v23  ;;  %v1020_v14 = vrot.slane %v1019_v22, 4  ;;  %v323_v53 = vld [vmem:[%s3069_s23 + $0xc4] sm:$0x3] }
  0xdc   : > { %v989_v56 = vrot.slane %v988_v5, 1  ;;  %v996_v3 = vrot.slane %v995_v36, 1  ;;  %v1002_v15 = vmax.f32 %v1000_v4, %v1001_v9  ;;  %v1009_v48 = vmax.f32 %v1007_v10, %v1008_v35  ;;  %v324_v4 = vld [vmem:[%s3069_s23 + $0xc6] sm:$0x3]  ;;  %v325_v10 = vld [vmem:[%s3069_s23 + $0xc8] sm:$0x3] }
  0xdd   : > { %v1015_v7 = vrot.slane %v1014_v58, 2  ;;  %v1371_v17 = vsel %vm1250_vm1, %v3557_v54, -inf  ;;  %1854 = vrot.lane.b32.xlu0 %v3572_v26, %s2978_s29  ;;  %v1021_v20 = vmax.f32 %v1019_v22, %v1020_v14  ;;  %v1372_v8 = vsel %vm1250_vm1, %v976_v32, -inf  ;;  %v326_v22 = vld [vmem:[%s3069_s23 + $0xca] sm:$0x3] }
  0xde   : > { %v990_v51 = vmax.f32 %v988_v5, %v989_v56  ;;  %v997_v18 = vmax.f32 %v995_v36, %v996_v3  ;;  %1916 = vrot.lane.b32.xlu1 %v3491_v1, %s2980_s6  ;;  %v1003_v55 = vrot.slane %v1002_v15, 1  ;;  %v1010_v43 = vrot.slane %v1009_v48, 1  ;;  %v327_v3 = vld [vmem:[%s3069_s23 + $0xcc] sm:$0x3] }
  0xdf   : > { %v1016_v63 = vmax.f32 %v1014_v58, %v1015_v7  ;;  %v1373_v30 = vmax.f32 %v1371_v17, %v1372_v8  ;;  %v1022_v33 = vrot.slane %v1021_v20, 2  ;;  %v1374_v54 = vsel %vm1250_vm1, %v3559_v11, -inf  ;;  %v3649_v7 = vpop.permute.xlu1 %1720 }
  0xe0   : > { %v1375_v26 = vsel %vm1250_vm1, %v983_v47, -inf  ;;  %v1377_v37 = vsel %vm1250_vm1, %v3563_v13, -inf  ;;  %v1004_v6 = vmax.f32 %v1002_v15, %v1003_v55  ;;  %v1011_v38 = vmax.f32 %v1009_v48, %v1010_v43  ;;  %v321_v13 = vld [vmem:[%s3069_s23 + $0xc0] sm:$0x3]  ;;  %v328_v55 = vld [vmem:[%s3069_s23 + $0xce] sm:$0x3] }
  0xe1   : > { %v1017_v39 = vrot.slane %v1016_v63, 1  ;;  %v1376_v1 = vmax.f32 %v1374_v54, %v1375_v26  ;;  %v1023_v24 = vmax.f32 %v1021_v20, %v1022_v33  ;;  %v1378_v40 = vsel %vm1250_vm1, %v990_v51, -inf }
  0xe2   : > { %v1380_v41 = vsel %vm1250_vm1, %v3566_v16, -inf  ;;  %v1381_v44 = vsel %vm1250_vm1, %v997_v18, -inf  ;;  %v1379_v52 = vmax.f32 %v1377_v37, %v1378_v40  ;;  %v1383_v45 = vsel %vm1250_vm1, %v3581_v34, -inf }
  0xe3   : > { %v1018_v11 = vmax.f32 %v1016_v63, %v1017_v39  ;;  %v1382_v42 = vmax.f32 %v1380_v41, %v1381_v44  ;;  %v1024_v21 = vrot.slane %v1023_v24, 1  ;;  %v1384_v49 = vsel %vm1250_vm1, %v1004_v6, -inf }
  0xe4   : > { %v1386_v31 = vsel %vm1250_vm1, %v3583_v60, -inf  ;;  %v1387_v16 = vsel %vm1250_vm1, %v1011_v38, -inf  ;;  %v1385_v27 = vmax.f32 %v1383_v45, %v1384_v49  ;;  %v1389_v57 = vsel %vm1250_vm1, %v3586_v29, -inf }
  0xe5   : > { %v1388_v19 = vmax.f32 %v1386_v31, %v1387_v16  ;;  %v1390_v34 = vsel %vm1250_vm1, %v1018_v11, -inf  ;;  %v1025_v28 = vmax.f32 %v1023_v24, %v1024_v21  ;;  %v1392_v46 = vsel %vm1250_vm1, %v3598_v59, -inf  ;;  %v329_v11 = vld [vmem:[%s3069_s23 + $0xd0] sm:$0x3]  ;;  %v330_v21 = vld [vmem:[%s3069_s23 + $0xd2] sm:$0x3] }
  0xe6   : > { %v1391_v61 = vmax.f32 %v1389_v57, %v1390_v34  ;;  %v1569_v62 = vsel %vm1527_vm2, %v1376_v1, %v1373_v30  ;;  %v1026_v12 = vsel %vm353_vm0, %v321_v13, -inf  ;;  %v1033_v23 = vsel %vm353_vm0, %v322_v25, -inf  ;;  %v3660_v25 = vpop.permute.xlu1 %1722 }
  0xe7   : > { %v1570_v60 = vsel %vm1529_vm3, %v1379_v52, %v1569_v62  ;;  %v1040_v29 = vsel %vm353_vm0, %v323_v53, -inf  ;;  %v1393_v5 = vsel %vm1250_vm1, %v1025_v28, -inf  ;;  %v1027_v32 = vrot.slane %v1026_v12, 4  ;;  %v331_v28 = vld [vmem:[%s3069_s23 + $0xd4] sm:$0x3] }
  0xe8   : > { %v1571_v36 = vsel %vm1531_vm4, %v1382_v42, %v1570_v60  ;;  %v1034_v59 = vrot.slane %v1033_v23, 4  ;;  %v1394_v9 = vmax.f32 %v1392_v46, %v1393_v5  ;;  %v1041_v58 = vrot.slane %v1040_v29, 4 }
  0xe9   : > { %v1572_v35 = vsel %vm1533_vm5, %v1385_v27, %v1571_v36  ;;  %v1047_v47 = vsel %vm353_vm0, %v324_v4, -inf  ;;  %v1028_v14 = vmax.f32 %v1026_v12, %v1027_v32  ;;  %v1054_v18 = vsel %vm353_vm0, %v325_v10, -inf }
  0xea   : > { %v1573_v56 = vsel %vm1535_vm6, %v1388_v19, %v1572_v35  ;;  %v1035_v15 = vmax.f32 %v1033_v23, %v1034_v59  ;;  %v1048_v48 = vrot.slane %v1047_v47, 4  ;;  %v1042_v51 = vmax.f32 %v1040_v29, %v1041_v58  ;;  %v334_v58 = vld [vmem:[%s3069_s23 + $0xda] sm:$0x3] }
  0xeb   : > { %v1574_v17 = vsel %vm1537_vm7, %v1391_v61, %v1573_v56  ;;  %v1061_v20 = vsel %vm353_vm0, %v326_v22, -inf  ;;  %v1029_v43 = vrot.slane %v1028_v14, 2  ;;  %v1055_v54 = vrot.slane %v1054_v18, 4  ;;  %v332_v61 = vld [vmem:[%s3069_s23 + $0xd6] sm:$0x3] }
  0xec   : > { %v1575_v8 = vsel %vm1539_vm8, %v1394_v9, %v1574_v17  ;;  %v1036_v63 = vrot.slane %v1035_v15, 2  ;;  %v1049_v30 = vmax.f32 %v1047_v47, %v1048_v48  ;;  %v1043_v33 = vrot.slane %v1042_v51, 2  ;;  %v333_v22 = vld [vmem:[%s3069_s23 + $0xd8] sm:$0x3] }
  0xed   : > { %1604 = vst.msk [vmem:[#allocation2 + $0x61] sm:$0xff] %vm1250_vm1, %v1575_v8  ;;  %v1062_v26 = vrot.slane %v1061_v20, 4  ;;  %v1068_v37 = vsel %vm353_vm0, %v327_v3, -inf  ;;  %v1030_v6 = vmax.f32 %v1028_v14, %v1029_v43  ;;  %v1056_v40 = vmax.f32 %v1054_v18, %v1055_v54 }
  0xee   : > { %v1037_v38 = vmax.f32 %v1035_v15, %v1036_v63  ;;  %v1050_v39 = vrot.slane %v1049_v30, 2  ;;  %v1069_v1 = vrot.slane %v1068_v37, 4  ;;  %v1044_v24 = vmax.f32 %v1042_v51, %v1043_v33  ;;  %v3687_v15 = vpop.permute.xlu1 %1754 }
  0xef   : > { %v1063_v41 = vmax.f32 %v1061_v20, %v1062_v26  ;;  %v1075_v44 = vsel %vm353_vm0, %v328_v55, -inf  ;;  %v1031_v52 = vrot.slane %v1030_v6, 1  ;;  %v1057_v31 = vrot.slane %v1056_v40, 2  ;;  %v335_v20 = vld [vmem:[%s3069_s23 + $0xdc] sm:$0x3] }
  0xf0   : > { %v1038_v42 = vrot.slane %v1037_v38, 1  ;;  %v1051_v45 = vmax.f32 %v1049_v30, %v1050_v39  ;;  %v1070_v13 = vmax.f32 %v1068_v37, %v1069_v1  ;;  %v1045_v49 = vrot.slane %v1044_v24, 1 }
  0xf1   : > { %v1064_v16 = vrot.slane %v1063_v41, 2  ;;  %v1076_v53 = vrot.slane %v1075_v44, 4  ;;  %v3663_v27 = vmax.f32 %v1030_v6, %v1031_v52  ;;  %v1058_v62 = vmax.f32 %v1056_v40, %v1057_v31  ;;  %v336_v6 = vld [vmem:[%s3069_s23 + $0xde] sm:$0x3] }
  0xf2   : > { %v3665_v19 = vmax.f32 %v1037_v38, %v1038_v42  ;;  %v1052_v57 = vrot.slane %v1051_v45, 1  ;;  %v1071_v34 = vrot.slane %v1070_v13, 2  ;;  %v3669_v46 = vmax.f32 %v1044_v24, %v1045_v49 }
  0xf3   : > { %v1065_v4 = vmax.f32 %v1063_v41, %v1064_v16  ;;  %v1077_v60 = vmax.f32 %v1075_v44, %v1076_v53  ;;  %v1082_v5 = vsel %vm353_vm0, %v329_v11, -inf  ;;  %v1089_v36 = vsel %vm353_vm0, %v330_v21, -inf }
  0xf4   : > { %v3671_v10 = vld [vmem:[#allocation2 + $0x60] sm:$0xff]  ;;  %v3675_v23 = vmax.f32 %v1051_v45, %v1052_v57  ;;  %v1072_v29 = vmax.f32 %v1070_v13, %v1071_v34  ;;  %v1059_v32 = vrot.slane %v1058_v62, 1  ;;  %v1083_v35 = vrot.slane %v1082_v5, 4  ;;  %v3708_v13 = vpop.permute.xlu1 %1692 }
  0xf5   : > { %v3673_v12 = vld [vmem:[#allocation2 + $0x61] sm:$0xff]  ;;  %1762 = vrot.lane.b32.xlu0 %v3671_v10, %s2975_s26  ;;  %v1066_v59 = vrot.slane %v1065_v4, 1  ;;  %v1078_v9 = vrot.slane %v1077_v60, 2  ;;  %v1090_v56 = vrot.slane %v1089_v36, 4  ;;  %v1096_v3 = vsel %vm353_vm0, %v331_v28, -inf }
  0xf6   : > { %1794 = vrot.lane.b32.xlu1 %v3673_v12, %s2976_s27  ;;  %v1073_v47 = vrot.slane %v1072_v29, 1  ;;  %v1103_v14 = vsel %vm353_vm0, %v332_v61, -inf  ;;  %v3689_v48 = vmax.f32 %v1058_v62, %v1059_v32  ;;  %v1084_v18 = vmax.f32 %v1082_v5, %v1083_v35  ;;  %v3702_v37 = vld [vmem:[#allocation2 + $0x62] sm:$0xff]  ;;  %v3715_v32 = vpop.permute.xlu0 %1688 }
  0xf7   : > { %v3691_v17 = vmax.f32 %v1065_v4, %v1066_v59  ;;  %v1079_v51 = vmax.f32 %v1077_v60, %v1078_v9  ;;  %v1091_v55 = vmax.f32 %v1089_v36, %v1090_v56  ;;  %v1097_v43 = vrot.slane %v1096_v3, 4 }
  0xf8   : > { %v3694_v8 = vmax.f32 %v1072_v29, %v1073_v47  ;;  %v1104_v63 = vrot.slane %v1103_v14, 4  ;;  %v1085_v33 = vrot.slane %v1084_v18, 2  ;;  %v1110_v54 = vsel %vm353_vm0, %v333_v22, -inf }
  0xf9   : > { %1886 = vrot.lane.b32.xlu0 %v3570_v2, %s2979_s30  ;;  %v1080_v30 = vrot.slane %v1079_v51, 1  ;;  %v1117_v26 = vsel %vm353_vm0, %v334_v58, -inf  ;;  %v1092_v38 = vrot.slane %v1091_v55, 2  ;;  %v1098_v39 = vmax.f32 %v1096_v3, %v1097_v43 }
  0xfa   : > { %1918 = vrot.lane.b32.xlu1 %v3594_v50, %s2980_s6  ;;  %v1105_v1 = vmax.f32 %v1103_v14, %v1104_v63  ;;  %v1111_v24 = vrot.slane %v1110_v54, 4  ;;  %v1086_v41 = vmax.f32 %v1084_v18, %v1085_v33  ;;  %v1118_v2 = vrot.slane %v1117_v26, 4 }
  0xfb   : > { %v3705_v40 = vmax.f32 %v1079_v51, %v1080_v30  ;;  %v1124_v44 = vsel %vm353_vm0, %v335_v20, -inf  ;;  %v1093_v11 = vmax.f32 %v1091_v55, %v1092_v38  ;;  %v1099_v52 = vrot.slane %v1098_v39, 2  ;;  %v3724_v51 = vpop.permute.xlu1 %1816 }
  0xfc   : > { %v1106_v42 = vrot.slane %v1105_v1, 2  ;;  %v1112_v45 = vmax.f32 %v1110_v54, %v1111_v24  ;;  %v1087_v21 = vrot.slane %v1086_v41, 1  ;;  %v1119_v49 = vmax.f32 %v1117_v26, %v1118_v2  ;;  %v3737_v24 = vpop.permute.xlu0 %1690 }
  0xfd   : > { %1700 = vrot.lane.b32.xlu0 %v3673_v12, %s2973_s24  ;;  %v1125_v31 = vrot.slane %v1124_v44, 4  ;;  %v1131_v16 = vsel %vm353_vm0, %v336_v6, -inf  ;;  %v1094_v53 = vrot.slane %v1093_v11, 1  ;;  %v1100_v57 = vmax.f32 %v1098_v39, %v1099_v52 }
  0xfe   : > { %1732 = vrot.lane.b32.xlu1 %v3702_v37, %s2974_s25  ;;  %v1107_v34 = vmax.f32 %v1105_v1, %v1106_v42  ;;  %v1113_v28 = vrot.slane %v1112_v45, 2  ;;  %v1088_v61 = vmax.f32 %v1086_v41, %v1087_v21  ;;  %v1120_v62 = vrot.slane %v1119_v49, 2 }
  0xff   : > { %v1126_v4 = vmax.f32 %v1124_v44, %v1125_v31  ;;  %v1132_v60 = vrot.slane %v1131_v16, 4  ;;  %v1095_v29 = vmax.f32 %v1093_v11, %v1094_v53  ;;  %v1101_v5 = vrot.slane %v1100_v57, 1  ;;  %v337_v11 = vld [vmem:[%s3069_s23 + $0xe0] sm:$0x3]  ;;  %v3747_v21 = vpop.permute.xlu1 %1724 }
 0x100   : > { %v1108_v36 = vrot.slane %v1107_v34, 1  ;;  %v1114_v22 = vmax.f32 %v1112_v45, %v1113_v28  ;;  %v1121_v59 = vmax.f32 %v1119_v49, %v1120_v62  ;;  %v1395_v58 = vsel %vm1250_vm1, %v3663_v27, -inf  ;;  %v338_v45 = vld [vmem:[%s3069_s23 + $0xe2] sm:$0x3] }
 0x101   : > { %1824 = vrot.lane.b32.xlu0 %v3594_v50, %s2977_s28  ;;  %v1127_v9 = vrot.slane %v1126_v4, 2  ;;  %v1133_v35 = vmax.f32 %v1131_v16, %v1132_v60  ;;  %v1102_v47 = vmax.f32 %v1100_v57, %v1101_v5  ;;  %v1396_v14 = vsel %vm1250_vm1, %v1088_v61, -inf  ;;  %v339_v57 = vld [vmem:[%s3069_s23 + $0xe4] sm:$0x3]  ;;  %v340_v61 = vld [vmem:[%s3069_s23 + $0xe6] sm:$0x3] }
 0x102   : > { %1856 = vrot.lane.b32.xlu1 %v3671_v10, %s2978_s29  ;;  %v1109_v56 = vmax.f32 %v1107_v34, %v1108_v36  ;;  %v1115_v3 = vrot.slane %v1114_v22, 1  ;;  %v1122_v18 = vrot.slane %v1121_v59, 1  ;;  %v1397_v50 = vmax.f32 %v1395_v58, %v1396_v14  ;;  %v341_v60 = vld [vmem:[%s3069_s23 + $0xe8] sm:$0x3]  ;;  %v342_v58 = vld [vmem:[%s3069_s23 + $0xea] sm:$0x3] }
 0x103   : > { %v1128_v20 = vmax.f32 %v1126_v4, %v1127_v9  ;;  %v1134_v55 = vrot.slane %v1133_v35, 2  ;;  %v1398_v63 = vsel %vm1250_vm1, %v3665_v19, -inf  ;;  %v1399_v27 = vsel %vm1250_vm1, %v1095_v29, -inf  ;;  %v3762_v9 = vpop.permute.xlu0 %1752 }
 0x104   : > { %v1116_v43 = vmax.f32 %v1114_v22, %v1115_v3  ;;  %v1401_v30 = vsel %vm1250_vm1, %v3669_v46, -inf  ;;  %v1123_v33 = vmax.f32 %v1121_v59, %v1122_v18  ;;  %v1400_v6 = vmax.f32 %v1398_v63, %v1399_v27  ;;  %v343_v63 = vld [vmem:[%s3069_s23 + $0xec] sm:$0x3]  ;;  %v344_v27 = vld [vmem:[%s3069_s23 + $0xee] sm:$0x3] }
 0x105   : > { %v1129_v54 = vrot.slane %v1128_v20, 1  ;;  %v1135_v26 = vmax.f32 %v1133_v35, %v1134_v55  ;;  %v1402_v38 = vsel %vm1250_vm1, %v1102_v47, -inf  ;;  %v1404_v39 = vsel %vm1250_vm1, %v3675_v23, -inf }
 0x106   : > { %v1405_v1 = vsel %vm1250_vm1, %v1109_v56, -inf  ;;  %v1407_v19 = vsel %vm1250_vm1, %v3689_v48, -inf  ;;  %v1403_v2 = vmax.f32 %v1401_v30, %v1402_v38  ;;  %v1408_v52 = vsel %vm1250_vm1, %v1116_v43, -inf }
 0x107   : > { %v1130_v41 = vmax.f32 %v1128_v20, %v1129_v54  ;;  %v1136_v46 = vrot.slane %v1135_v26, 1  ;;  %v1406_v44 = vmax.f32 %v1404_v39, %v1405_v1  ;;  %v1410_v42 = vsel %vm1250_vm1, %v3691_v17, -inf }
 0x108   : > { %v1411_v23 = vsel %vm1250_vm1, %v1123_v33, -inf  ;;  %v1413_v48 = vsel %vm1250_vm1, %v3694_v8, -inf  ;;  %v1409_v31 = vmax.f32 %v1407_v19, %v1408_v52  ;;  %v1416_v17 = vsel %vm1250_vm1, %v3705_v40, -inf }
 0x109   : > { %v1137_v49 = vmax.f32 %v1135_v26, %v1136_v46  ;;  %v1412_v16 = vmax.f32 %v1410_v42, %v1411_v23  ;;  %v1414_v53 = vsel %vm1250_vm1, %v1130_v41, -inf  ;;  %v1576_v28 = vsel %vm1527_vm2, %v1400_v6, %v1397_v50  ;;  %v3769_v50 = vpop.permute.xlu1 %1848  ;;  %v3779_v42 = vpop.permute.xlu0 %1784 }
 0x10a   : > { %v1415_v34 = vmax.f32 %v1413_v48, %v1414_v53  ;;  %v1138_v62 = vsel %vm353_vm0, %v337_v11, -inf  ;;  %v1577_v4 = vsel %vm1529_vm3, %v1403_v2, %v1576_v28  ;;  %v1145_v5 = vsel %vm353_vm0, %v338_v45, -inf }
 0x10b   : > { %v1417_v8 = vsel %vm1250_vm1, %v1137_v49, -inf  ;;  %v1139_v29 = vrot.slane %v1138_v62, 4  ;;  %v1578_v22 = vsel %vm1531_vm4, %v1406_v44, %v1577_v4  ;;  %v1146_v59 = vrot.slane %v1145_v5, 4  ;;  %v346_v4 = vld [vmem:[%s3069_s23 + $0xf2] sm:$0x3] }
 0x10c   : > { %v1418_v36 = vmax.f32 %v1416_v17, %v1417_v8  ;;  %v1152_v40 = vsel %vm353_vm0, %v339_v57, -inf  ;;  %v1579_v35 = vsel %vm1533_vm5, %v1409_v31, %v1578_v22  ;;  %v1159_v3 = vsel %vm353_vm0, %v340_v61, -inf  ;;  %v345_v31 = vld [vmem:[%s3069_s23 + $0xf0] sm:$0x3] }
 0x10d   : > { %v1140_v47 = vmax.f32 %v1138_v62, %v1139_v29  ;;  %v1153_v56 = vrot.slane %v1152_v40, 4  ;;  %v1580_v14 = vsel %vm1535_vm6, %v1412_v16, %v1579_v35  ;;  %v1147_v18 = vmax.f32 %v1145_v5, %v1146_v59  ;;  %v3782_v17 = vpop.permute.xlu1 %1756  ;;  %v348_v59 = vld [vmem:[%s3069_s23 + $0xf6] sm:$0x3] }
 0x10e   : > { %v1160_v20 = vrot.slane %v1159_v3, 4  ;;  %v1166_v55 = vsel %vm353_vm0, %v341_v60, -inf  ;;  %v1581_v43 = vsel %vm1537_vm7, %v1415_v34, %v1580_v14  ;;  %v1173_v39 = vsel %vm353_vm0, %v342_v58, -inf  ;;  %v347_v60 = vld [vmem:[%s3069_s23 + $0xf4] sm:$0x3] }
 0x10f   : > { %v1141_v30 = vrot.slane %v1140_v47, 2  ;;  %v1154_v33 = vmax.f32 %v1152_v40, %v1153_v56  ;;  %v1167_v54 = vrot.slane %v1166_v55, 4  ;;  %v1582_v26 = vsel %vm1539_vm8, %v1418_v36, %v1581_v43  ;;  %v349_v40 = vld [vmem:[%s3069_s23 + $0xf8] sm:$0x3] }
 0x110   : > { %v1148_v6 = vrot.slane %v1147_v18, 2  ;;  %v1161_v38 = vmax.f32 %v1159_v3, %v1160_v20  ;;  %1605 = vst.msk [vmem:[#allocation2 + $0x71] sm:$0xff] %vm1250_vm1, %v1582_v26  ;;  %v1174_v46 = vrot.slane %v1173_v39, 4  ;;  %v1180_v11 = vsel %vm353_vm0, %v343_v63, -inf  ;;  %v3801_v63 = vpop.permute.xlu0 %1786  ;;  %v350_v26 = vld [vmem:[%s3069_s23 + $0xfa] sm:$0x3] }
 0x111   : > { %v1142_v1 = vmax.f32 %v1140_v47, %v1141_v30  ;;  %v1155_v19 = vrot.slane %v1154_v33, 2  ;;  %v1168_v41 = vmax.f32 %v1166_v55, %v1167_v54  ;;  %v1187_v52 = vsel %vm353_vm0, %v344_v27, -inf }
 0x112   : > { %v1149_v2 = vmax.f32 %v1147_v18, %v1148_v6  ;;  %v1162_v44 = vrot.slane %v1161_v38, 2  ;;  %v1175_v49 = vmax.f32 %v1173_v39, %v1174_v46  ;;  %v1181_v57 = vrot.slane %v1180_v11, 4 }
 0x113   : > { %v1143_v23 = vrot.slane %v1142_v1, 1  ;;  %v1156_v48 = vmax.f32 %v1154_v33, %v1155_v19  ;;  %v1169_v45 = vrot.slane %v1168_v41, 2  ;;  %v1188_v34 = vrot.slane %v1187_v52, 4  ;;  %v3812_v19 = vpop.permute.xlu1 %1880 }
 0x114   : > { %v1150_v16 = vrot.slane %v1149_v2, 1  ;;  %v1163_v53 = vmax.f32 %v1161_v38, %v1162_v44  ;;  %v1176_v8 = vrot.slane %v1175_v49, 2  ;;  %v1182_v36 = vmax.f32 %v1180_v11, %v1181_v57  ;;  %v351_v11 = vld [vmem:[%s3069_s23 + $0xfc] sm:$0x3] }
 0x115   : > { %v3784_v28 = vmax.f32 %v1142_v1, %v1143_v23  ;;  %v1157_v61 = vrot.slane %v1156_v48, 1  ;;  %v1170_v62 = vmax.f32 %v1168_v41, %v1169_v45  ;;  %v1189_v22 = vmax.f32 %v1187_v52, %v1188_v34 }
 0x116   : > { %v3788_v29 = vmax.f32 %v1149_v2, %v1150_v16  ;;  %v1164_v5 = vrot.slane %v1163_v53, 1  ;;  %v1177_v47 = vmax.f32 %v1175_v49, %v1176_v8  ;;  %v1194_v56 = vsel %vm353_vm0, %v345_v31, -inf  ;;  %v352_v49 = vld [vmem:[%s3069_s23 + $0xfe] sm:$0x3]  ;;  %s2983_s23 = smov 40  }
 0x117   : > { %v3792_v35 = vmax.f32 %v1156_v48, %v1157_v61  ;;  %v1171_v58 = vrot.slane %v1170_v62, 1  ;;  %v3795_v3 = vld [vmem:[#allocation2 + $0x71] sm:$0xff]  ;;  %v1183_v20 = vrot.slane %v1182_v36, 2  ;;  %v1190_v55 = vrot.slane %v1189_v22, 2 }
 0x118   : > { %v3797_v14 = vld [vmem:[#allocation2 + $0x70] sm:$0xff]  ;;  %v3799_v18 = vmax.f32 %v1163_v53, %v1164_v5  ;;  %v1195_v43 = vrot.slane %v1194_v56, 4  ;;  %1702 = vrot.lane.b32.xlu0 %v3795_v3, %s2973_s24  ;;  %v1178_v30 = vrot.slane %v1177_v47, 1  ;;  %v1201_v33 = vsel %vm353_vm0, %v346_v4, -inf  ;;  %s2984_s24 = smov 64  }
 0x119   : > { %1764 = vrot.lane.b32.xlu1 %v3797_v14, %s2975_s26  ;;  %v3807_v27 = vmax.f32 %v1170_v62, %v1171_v58  ;;  %v1208_v54 = vsel %vm353_vm0, %v347_v60, -inf  ;;  %v1184_v6 = vmax.f32 %v1182_v36, %v1183_v20  ;;  %v1191_v38 = vmax.f32 %v1189_v22, %v1190_v55  ;;  %v3825_v34 = vld [vmem:[#allocation2 + $0x72] sm:$0xff]  ;;  %v3831_v60 = vpop.permute.xlu0 %1694 }
 0x11a   : > { %v1196_v39 = vmax.f32 %v1194_v56, %v1195_v43  ;;  %v1202_v1 = vrot.slane %v1201_v33, 4  ;;  %v3814_v41 = vmax.f32 %v1177_v47, %v1178_v30  ;;  %v1209_v46 = vrot.slane %v1208_v54, 4  ;;  %v3835_v56 = vpop.permute.xlu1 %1788 }
 0x11b   : > { %v1215_v2 = vsel %vm353_vm0, %v348_v59, -inf  ;;  %v1222_v44 = vsel %vm353_vm0, %v349_v40, -inf  ;;  %v1185_v52 = vrot.slane %v1184_v6, 1  ;;  %v1192_v23 = vrot.slane %v1191_v38, 1 }
 0x11c   : > { %v1197_v48 = vrot.slane %v1196_v39, 2  ;;  %v1203_v45 = vmax.f32 %v1201_v33, %v1202_v1  ;;  %1826 = vrot.lane.b32.xlu0 %v3702_v37, %s2977_s28  ;;  %v1210_v31 = vmax.f32 %v1208_v54, %v1209_v46  ;;  %v1216_v16 = vrot.slane %v1215_v2, 4 }
 0x11d   : > { %1888 = vrot.lane.b32.xlu1 %v3673_v12, %s2979_s30  ;;  %v1223_v53 = vrot.slane %v1222_v44, 4  ;;  %v1229_v57 = vsel %vm353_vm0, %v350_v26, -inf  ;;  %v3827_v61 = vmax.f32 %v1184_v6, %v1185_v52  ;;  %v3829_v62 = vmax.f32 %v1191_v38, %v1192_v23  ;;  %v3843_v23 = vpop.permute.xlu0 %1818 }
 0x11e   : > { %v1198_v8 = vmax.f32 %v1196_v39, %v1197_v48  ;;  %v1204_v4 = vrot.slane %v1203_v45, 2  ;;  %v1211_v5 = vrot.slane %v1210_v31, 2  ;;  %v1217_v36 = vmax.f32 %v1215_v2, %v1216_v16 }
 0x11f   : > { %v1224_v22 = vmax.f32 %v1222_v44, %v1223_v53  ;;  %v1230_v12 = vrot.slane %v1229_v57, 4  ;;  %v1236_v58 = vsel %vm353_vm0, %v351_v11, -inf  ;;  %v1243_v47 = vsel %vm353_vm0, %v352_v49, -inf }
 0x120   : > { %v1199_v59 = vrot.slane %v1198_v8, 1  ;;  %v1205_v40 = vmax.f32 %v1203_v45, %v1204_v4  ;;  %1734 = vrot.lane.b32.xlu0 %v3825_v34, %s2974_s25  ;;  %v1212_v20 = vmax.f32 %v1210_v31, %v1211_v5  ;;  %v1218_v55 = vrot.slane %v1217_v36, 2 }
 0x121   : > { %1796 = vrot.lane.b32.xlu1 %v3795_v3, %s2976_s27  ;;  %v1225_v43 = vrot.slane %v1224_v22, 2  ;;  %v1231_v30 = vmax.f32 %v1229_v57, %v1230_v12  ;;  %v1237_v26 = vrot.slane %v1236_v58, 4  ;;  %v1244_v6 = vrot.slane %v1243_v47, 4 }
 0x122   : > { %v1200_v33 = vmax.f32 %v1198_v8, %v1199_v59  ;;  %v1206_v54 = vrot.slane %v1205_v40, 1  ;;  %v1213_v38 = vrot.slane %v1212_v20, 1  ;;  %v1219_v39 = vmax.f32 %v1217_v36, %v1218_v55 }
 0x123   : > { %v1226_v1 = vmax.f32 %v1224_v22, %v1225_v43  ;;  %v1232_v46 = vrot.slane %v1231_v30, 2  ;;  %v1238_v44 = vmax.f32 %v1236_v58, %v1237_v26  ;;  %v1245_v11 = vmax.f32 %v1243_v47, %v1244_v6 }
 0x124   : > { %v1207_v2 = vmax.f32 %v1205_v40, %v1206_v54  ;;  %v1419_v52 = vsel %vm1250_vm1, %v3784_v28, -inf  ;;  %1858 = vrot.lane.b32.xlu0 %v3797_v14, %s2978_s29  ;;  %v1214_v48 = vmax.f32 %v1212_v20, %v1213_v38  ;;  %v1220_v45 = vrot.slane %v1219_v39, 1  ;;  %v3852_v28 = vpop.permute.xlu1 %1912  ;;  %v3863_v54 = vpop.permute.xlu0 %1726 }
 0x125   : > { %v1227_v49 = vrot.slane %v1226_v1, 1  ;;  %v1233_v31 = vmax.f32 %v1231_v30, %v1232_v46  ;;  %1920 = vrot.lane.b32.xlu1 %v3702_v37, %s2980_s6  ;;  %v1239_v16 = vrot.slane %v1238_v44, 2  ;;  %v1246_v53 = vrot.slane %v1245_v11, 2 }
 0x126   : > { %v1420_v57 = vsel %vm1250_vm1, %v1200_v33, -inf  ;;  %v1422_v8 = vsel %vm1250_vm1, %v3788_v29, -inf  ;;  %v1221_v4 = vmax.f32 %v1219_v39, %v1220_v45  ;;  %v1423_v40 = vsel %vm1250_vm1, %v1207_v2, -inf }
 0x127   : > { %v1228_v5 = vmax.f32 %v1226_v1, %v1227_v49  ;;  %v1234_v36 = vrot.slane %v1233_v31, 1  ;;  %v1421_v22 = vmax.f32 %v1419_v52, %v1420_v57  ;;  %v1240_v12 = vmax.f32 %v1238_v44, %v1239_v16 }
 0x128   : > { %v1247_v59 = vmax.f32 %v1245_v11, %v1246_v53  ;;  %v1425_v37 = vsel %vm1250_vm1, %v3792_v35, -inf  ;;  %v1424_v47 = vmax.f32 %v1422_v8, %v1423_v40  ;;  %v1426_v20 = vsel %vm1250_vm1, %v1214_v48, -inf  ;;  %v3871_v44 = vpop.permute.xlu1 %1790  ;;  %v2007_v40 = vld [vmem:[%s4300_s1] sm:$0xff] }
 0x129   : > { %v1235_v58 = vmax.f32 %v1233_v31, %v1234_v36  ;;  %v1428_v29 = vsel %vm1250_vm1, %v3799_v18, -inf  ;;  %1828 = vrot.lane.b32.xlu1 %v3825_v34, %s2977_s28  ;;  %v1241_v55 = vrot.slane %v1240_v12, 1  ;;  %v1427_v30 = vmax.f32 %v1425_v37, %v1426_v20  ;;  %v1607_v18 = vld [vmem:[#allocation2] sm:$0xff] }
 0x12a   : > { %v1248_v43 = vrot.slane %v1247_v59, 1  ;;  %v1429_v33 = vsel %vm1250_vm1, %v1221_v4, -inf  ;;  %v1431_v35 = vsel %vm1250_vm1, %v3807_v27, -inf  ;;  %v1432_v6 = vsel %vm1250_vm1, %v1228_v5, -inf }
 0x12b   : > { %v1430_v26 = vmax.f32 %v1428_v29, %v1429_v33  ;;  %v1434_v38 = vsel %vm1250_vm1, %v3814_v41, -inf  ;;  %v1242_v39 = vmax.f32 %v1240_v12, %v1241_v55  ;;  %v1433_v46 = vmax.f32 %v1431_v35, %v1432_v6  ;;  %v2011_v35 = vld [vmem:[%s4300_s1 + $0x20] sm:$0xf] }
 0x12c   : > { %v1249_v1 = vmax.f32 %v1247_v59, %v1248_v43  ;;  %v1435_v2 = vsel %vm1250_vm1, %v1235_v58, -inf  ;;  %v1437_v52 = vsel %vm1250_vm1, %v3827_v61, -inf  ;;  %v1440_v27 = vsel %vm1250_vm1, %v3829_v62, -inf  ;;  %v1915_v5 = vpop.permute.xlu1 %1914 }
 0x12d   : > { %v1436_v11 = vmax.f32 %v1434_v38, %v1435_v2  ;;  %v1583_v48 = vsel %vm1527_vm2, %v1424_v47, %v1421_v22  ;;  %v1438_v45 = vsel %vm1250_vm1, %v1242_v39, -inf  ;;  %v1936_v31 = vsel %vm1250_vm1, %v1607_v18, %v3715_v32  ;;  %v1851_v32 = vpop.permute.xlu0 %1850  ;;  %v1608_v22 = vld [vmem:[#allocation2 + $0x10] sm:$0xff] }
 0x12e   : > { %v1441_v41 = vsel %vm1250_vm1, %v1249_v1, -inf  ;;  %v1584_v49 = vsel %vm1529_vm3, %v1427_v30, %v1583_v48  ;;  %v1439_v16 = vmax.f32 %v1437_v52, %v1438_v45  ;;  %v1945_v4 = vsel %vm1944_vm9, %v1936_v31, %v3649_v7  ;;  %v2008_v7 = vld [vmem:[%s4300_s1 + $0x8] sm:$0xff]  ;;  %v1671_v1 = vld [vmem:[#allocation2 + $0x91] sm:$0xff]  ;;  %v1611_v52 = vld [vmem:[#allocation2 + $0x40] sm:$0xff] }
 0x12f   : > { %v1442_v53 = vmax.f32 %v1440_v27, %v1441_v41  ;;  %v1585_v57 = vsel %vm1531_vm4, %v1430_v26, %v1584_v49  ;;  %v1954_v12 = vsel %vm1953_vm10, %v1945_v4, %v3762_v9  ;;  %v2009_v9 = vld [vmem:[%s4300_s1 + $0x10] sm:$0xff]  ;;  %v1937_v58 = vsel %vm1250_vm1, %v1608_v22, %v3737_v24 }
 0x130   : > { %v1586_v61 = vsel %vm1533_vm5, %v1433_v46, %v1585_v57  ;;  %v1963_v59 = vsel %vm1962_vm11, %v1954_v12, %v3779_v42  ;;  %v2010_v42 = vld [vmem:[%s4300_s1 + $0x18] sm:$0xff]  ;;  %v2919_v29 = vpack.c.bf16 %v2008_v7, %v2007_v40  ;;  %vm2019_vm0 = vcmask 293888   ;;  %v1729_v30 = vpop.permute.xlu1 %1728 }
 0x131   : > { %v1587_v62 = vsel %vm1535_vm6, %v1436_v11, %v1586_v61  ;;  %v1972_v37 = vsel %vm1971_vm12, %v1963_v59, %v3724_v51  ;;  %v3933_v20 = vpop.permute.xlu0 %1758  ;;  %v2923_v43 = vpack.c.bf16 %v2010_v42, %v2009_v9  ;;  %v1946_v24 = vsel %vm1944_vm9, %v1937_v58, %v3660_v25  ;;  %v1663_v25 = vld [vmem:[#allocation2 + $0x90] sm:$0xff]  ;;  %v1609_v11 = vld [vmem:[#allocation2 + $0x20] sm:$0xff] }
 0x132   : > { %v1588_v8 = vsel %vm1537_vm7, %v1439_v16, %v1587_v62  ;;  %v1981_v47 = vsel %vm1980_vm13, %v1972_v37, %v3769_v50  ;;  %2920 = vmatprep.subr.bf16.mxu0 %v2919_v29  ;;  %vm2044_vm2 = vcmask 1043456   ;;  %v1679_v2 = vld [vmem:[#allocation2 + $0x92] sm:$0xff]  ;;  %v1938_v48 = vsel %vm1250_vm1, %v1609_v11, %v3708_v13 }
 0x133   : > { %v1589_v36 = vsel %vm1539_vm8, %v1442_v53, %v1588_v8  ;;  %v1990_v51 = vsel %vm1989_vm14, %v1981_v47, %v3812_v19  ;;  %2922 = vmatpush3.bf16.msra.mxu0 %v2919_v29  ;;  %v1955_v19 = vsel %vm1953_vm10, %v1946_v24, %v3687_v15  ;;  %v1947_v41 = vsel %vm1944_vm9, %v1938_v48, %v3747_v21 }
 0x134   : > { %1606 = vst.msk [vmem:[#allocation2 + $0x81] sm:$0xff] %vm1250_vm1, %v1589_v36  ;;  %v1999_v55 = vsel %vm1998_vm15, %v1990_v51, %v3852_v28  ;;  %2924 = vmatprep.subr.bf16.mxu0 %v2923_v43  ;;  %v1964_v28 = vsel %vm1962_vm11, %v1955_v19, %v3801_v63  ;;  %v1853_v38 = vpop.permute.xlu1 %1852  ;;  %v1956_v31 = vsel %vm1953_vm10, %v1947_v41, %v3782_v17  ;;  %v1612_v36 = vld [vmem:[#allocation2 + $0x50] sm:$0xff]  ;;  %vm2162_vm3 = vcmask 58368  }
 0x135   : > { %2877 = vmatprep.mubr.msk.f32.mxu0 %vm2019_vm0, %v1999_v55  ;;  %v1883_v26 = vpop.permute.xlu0 %1882  ;;  %v1973_v6 = vsel %vm1971_vm12, %v1964_v28, %v3843_v23  ;;  %v1965_v53 = vsel %vm1962_vm11, %v1956_v31, %v3835_v56  ;;  %2167 = vst.msk [vmem:[#allocation3 + $0x28] sm:$0x3] %vm2162_vm3, %v2972_v0  ;;  %2163 = vst.msk [vmem:[#allocation3 + $0x8] sm:$0x3] %vm2162_vm3, %v2972_v0  ;;  %vm2561_vm4 = vcmask 392192   ;;  %vm2570_vm5 = vcmask 457728  }
 0x136   : > { %v1982_v15 = vsel %vm1980_vm13, %v1973_v6, %v1851_v32  ;;  %2165 = vst.msk [vmem:[#allocation3 + $0x18] sm:$0x3] %vm2162_vm3, %v2972_v0  ;;  %2169 = vst.msk [vmem:[#allocation3 + $0x38] sm:$0x3] %vm2162_vm3, %v2972_v0  ;;  %vm2579_vm6 = vcmask 523264   ;;  %vm2604_vm7 = vcmask 588800  }
 0x137   : > { %2926 = vmatpush3.bf16.msra.mxu0 %v2923_v43  ;;  %v1991_v18 = vsel %vm1989_vm14, %v1982_v15, %v1883_v26  ;;  %2171 = vst.msk [vmem:[#allocation3 + $0x48] sm:$0x3] %vm2162_vm3, %v2972_v0  ;;  %2173 = vst.msk [vmem:[#allocation3 + $0x58] sm:$0x3] %vm2162_vm3, %v2972_v0 }
 0x138   : > { %2875 = vmatprep.subr.msk.mxu0 %vm2044_vm2, %v2011_v35  ;;  %v2000_v63 = vsel %vm1998_vm15, %v1991_v18, %v1915_v5  ;;  %v1610_v5 = vld [vmem:[#allocation2 + $0x30] sm:$0xff]  ;;  %2175 = vst.msk [vmem:[#allocation3 + $0x68] sm:$0x3] %vm2162_vm3, %v2972_v0  ;;  %2177 = vst.msk [vmem:[#allocation3 + $0x78] sm:$0x3] %vm2162_vm3, %v2972_v0 }
 0x139   : > { %v1697_v46 = vpop.permute.xlu0 %1696  ;;  %v1939_v22 = vsel %vm1250_vm1, %v1610_v5, %v3831_v60  ;;  %2179 = vst.msk [vmem:[#allocation3 + $0x88] sm:$0x3] %vm2162_vm3, %v2972_v0  ;;  %2181 = vst.msk [vmem:[#allocation3 + $0x98] sm:$0x3] %vm2162_vm3, %v2972_v0  ;;  %v2247_v18 = vld [vmem:[#allocation3 + $0x90] sm:$0xff] }
 0x13a   : > { %v1940_v45 = vsel %vm1250_vm1, %v1611_v52, %v1697_v46  ;;  %v1948_v59 = vsel %vm1944_vm9, %v1939_v22, %v3863_v54 }
 0x13b   : > { %v1638_v50 = vld [vmem:[#allocation2 + $0x80] sm:$0xff]  ;;  %2876 = vmatpush3.msk.msra.mxu0 %vm2044_vm2, %v2011_v35  ;;  %v1949_v49 = vsel %vm1944_vm9, %v1940_v45, %v1729_v30  ;;  %v1957_v9 = vsel %vm1953_vm10, %v1948_v59, %v3933_v20 }
 0x13c   : > { %v1654_v33 = vld [vmem:[#allocation2 + $0x82] sm:$0xff]  ;;  %1766 = vrot.lane.b32.xlu0 %v1638_v50, %s2975_s26  ;;  %2878 = vmatmul.mubr.msk.f32.vlgmr.msra.gmra.mrb[0].mxu0 %vm2019_vm0, %v2000_v63  ;;  %v1966_v58 = vsel %vm1962_vm11, %v1957_v9, %v3871_v44 }
 0x13d   : > { %1830 = vrot.lane.b32.xlu1 %v1654_v33, %s2977_s28  ;;  %v1646_v39 = vld [vmem:[#allocation2 + $0x81] sm:$0xff]  ;;  %v1821_v27 = vpop.permute.xlu0 %1820 }
 0x13e   : > { %v1974_v57 = vsel %vm1971_vm12, %v1965_v53, %v1821_v27  ;;  %v2199_v63 = vld [vmem:[#allocation3 + $0x1] sm:$0xff] }
 0x13f   : > { %v1983_v21 = vsel %vm1980_vm13, %v1974_v57, %v1853_v38  ;;  %v2207_v46 = vld [vmem:[#allocation3 + $0x2] sm:$0xff] }
 0x140   : > { %1890 = vrot.lane.b32.xlu0 %v3795_v3, %s2979_s30 }
 0x141   : > { %1862 = vrot.lane.b32.xlu1 %v1663_v25, %s2978_s29 }
 0x143   : > { %v1699_v61 = vpop.permute.xlu0 %1698 }
 0x144   : > { %1798 = vrot.lane.b32.xlu0 %v1646_v39, %s2976_s27  ;;  %v1761_v23 = vpop.permute.xlu1 %1760  ;;  %v1941_v12 = vsel %vm1250_vm1, %v1612_v36, %v1699_v61 }
 0x145   : > { %1894 = vrot.lane.b32.xlu1 %v1671_v1, %s2979_s30 }
 0x147   : > { %v1823_v8 = vpop.permute.xlu0 %1822 }
 0x148   : > { %1922 = vrot.lane.b32.xlu0 %v3825_v34, %s2980_s6  ;;  %v1885_v3 = vpop.permute.xlu1 %1884  ;;  %v1958_v34 = vsel %vm1953_vm10, %v1949_v49, %v1761_v23  ;;  %v1975_v60 = vsel %vm1971_vm12, %v1966_v58, %v1823_v8 }
 0x149   : > { %1926 = vrot.lane.b32.xlu1 %v1679_v2, %s2980_s6  ;;  %v1992_v32 = vsel %vm1989_vm14, %v1983_v21, %v1885_v3 }
 0x14b   : > { %v1731_v56 = vpop.permute.xlu0 %1730 }
 0x14c   : > { %1860 = vrot.lane.b32.xlu0 %v1638_v50, %s2978_s29  ;;  %v1793_v16 = vpop.permute.xlu1 %1792  ;;  %v1950_v40 = vsel %vm1944_vm9, %v1941_v12, %v1731_v56 }
 0x14d   : > { %v1967_v13 = vsel %vm1962_vm11, %v1958_v34, %v1793_v16  ;;  %2446 = vrot.lane.b32.xlu1 %v2247_v18, %s2981_s17 }
 0x14f   : > { %v1855_v4 = vpop.permute.xlu0 %1854 }
 0x150   : > { %1892 = vrot.lane.b32.xlu0 %v1646_v39, %s2979_s30  ;;  %v1917_v62 = vpop.permute.xlu1 %1916  ;;  %v1984_v51 = vsel %vm1980_vm13, %v1975_v60, %v1855_v4  ;;  %v2255_v39 = vld [vmem:[#allocation3 + $0x91] sm:$0xff] }
 0x151   : > { %v2001_v17 = vsel %vm1998_vm15, %v1992_v32, %v1917_v62  ;;  %2478 = vrot.lane.b32.xlu1 %v2255_v39, %s2982_s20  ;;  %v2590_v39 = vld [vmem:[%s4302_s3 + $0x10] sm:$0xff] }
 0x152   : > { %2880 = vmatprep.mubr.msk.f32.mxu0 %vm2019_vm0, %v2001_v17 }
 0x154   : > { %1924 = vrot.lane.b32.xlu0 %v1654_v33, %s2980_s6 }
 0x158   : > { %2272 = vrot.lane.b32.xlu0 %v2199_v63, %s2974_s25 }
 0x15c   : > { %2304 = vrot.lane.b32.xlu0 %v2207_v46, %s2976_s27 }
 0x167   : > { %v1763_v7 = vpop.permute.xlu0 %1762 }
 0x168   : > { %v1795_v37 = vpop.permute.xlu1 %1794  ;;  %v1959_v42 = vsel %vm1953_vm10, %v1950_v40, %v1763_v7  ;;  %v4049_v7 = vld [vmem:[%s4301_s2] ss:$0 sm:$0xff] }
 0x169   : > { %v1968_v47 = vsel %vm1962_vm11, %v1959_v42, %v1795_v37 }
 0x16b   : > { %v1887_v29 = vpop.permute.xlu0 %1886 }
 0x16c   : > { %v1919_v54 = vpop.permute.xlu1 %1918  ;;  %v1993_v55 = vsel %vm1989_vm14, %v1984_v51, %v1887_v29 }
 0x16d   : > { %v2002_v43 = vsel %vm1998_vm15, %v1993_v55, %v1919_v54 }
 0x16e   : > { %2881 = vmatmul.mubr.msk.f32.gmra.mrb[2].mxu0 %vm2019_vm0, %v2002_v43 }
 0x16f   : > { %v1701_v24 = vpop.permute.xlu0 %1700 }
 0x170   : > { %v1733_v20 = vpop.permute.xlu1 %1732 }
 0x173   : > { %v1825_v44 = vpop.permute.xlu0 %1824 }
 0x174   : > { %v1857_v30 = vpop.permute.xlu1 %1856  ;;  %v1976_v28 = vsel %vm1971_vm12, %v1967_v13, %v1825_v44  ;;  %v1942_v13 = vsel %vm1250_vm1, %v3671_v10, %v1701_v24 }
 0x175   : > { %v1985_v35 = vsel %vm1980_vm13, %v1976_v28, %v1857_v30  ;;  %v1951_v61 = vsel %vm1944_vm9, %v1942_v13, %v1733_v20 }
 0x18a   : > { %v1703_v26 = vpop.permute.xlu0 %1702 }
 0x18b   : > { %v1765_v50 = vpop.permute.xlu1 %1764  ;;  %v1943_v53 = vsel %vm1250_vm1, %v3797_v14, %v1703_v26  ;;  %vm2552_vm1 = vcmask 326656  }
 0x18c   : > { %v1960_v32 = vsel %vm1953_vm10, %v1951_v61, %v1765_v50 }
 0x18e   : > { %v1827_v38 = vpop.permute.xlu0 %1826 }
 0x18f   : > { %v1889_v33 = vpop.permute.xlu1 %1888  ;;  %v1977_v48 = vsel %vm1971_vm12, %v1968_v47, %v1827_v38  ;;  %v2589_v38 = vld [vmem:[%s4302_s3 + $0x8] sm:$0xff] }
 0x190   : > { %v1994_v25 = vsel %vm1989_vm14, %v1985_v35, %v1889_v33 }
 0x192   : > { %v1735_v1 = vpop.permute.xlu0 %1734 }
 0x193   : > { %v1797_v19 = vpop.permute.xlu1 %1796  ;;  %v1952_v57 = vsel %vm1944_vm9, %v1943_v53, %v1735_v1  ;;  %v2591_v1 = vld [vmem:[%s4302_s3 + $0x18] sm:$0xff] }
 0x194   : > { %v1969_v8 = vsel %vm1962_vm11, %v1960_v32, %v1797_v19  ;;  %v2931_v46 = vpack.c.bf16 %v2591_v1, %v2590_v39 }
 0x196   : > { %v1859_v23 = vpop.permute.xlu0 %1858 }
 0x197   : > { %v1921_v6 = vpop.permute.xlu1 %1920  ;;  %v1986_v45 = vsel %vm1980_vm13, %v1977_v48, %v1859_v23  ;;  %v2592_v23 = vld [vmem:[%s4302_s3 + $0x20] sm:$0xff] }
 0x198   : > { %v2003_v15 = vsel %vm1998_vm15, %v1994_v25, %v1921_v6 }
 0x199   : > { %2883 = vmatprep.mubr.msk.f32.mxu0 %vm2019_vm0, %v2003_v15  ;;  %v2588_v15 = vld [vmem:[%s4302_s3] sm:$0xff] }
 0x19a   : > { %v2927_v63 = vpack.c.bf16 %v2589_v38, %v2588_v15 }
 0x19b   : > { %v1829_v2 = vpop.permute.xlu1 %1828 }
 0x19c   : > { %v1978_v14 = vsel %vm1971_vm12, %v1969_v8, %v1829_v2  ;;  %v2593_v2 = vld [vmem:[%s4302_s3 + $0x28] sm:$0xff]  ;;  %2928 = vmatprep.subr.bf16.mxu1 %v2927_v63 }
 0x19d   : > { %2930 = vmatpush3.bf16.msra.mxu1 %v2927_v63 }
 0x19e   : > { %2932 = vmatprep.subr.bf16.mxu1 %v2931_v46 }
 0x1a1   : > { %2934 = vmatpush3.bf16.msra.mxu1 %v2931_v46 }
 0x1ae   : > { %v1767_v11 = vpop.permute.xlu0 %1766 }
 0x1af   : > { %v1831_v0 = vpop.permute.xlu1 %1830  ;;  %v1961_v21 = vsel %vm1953_vm10, %v1952_v57, %v1767_v11  ;;  %v2935_v11 = vpack.c.bf16 %v2593_v2, %v2592_v23 }
 0x1b1   : > { %2936 = vmatprep.subr.bf16.mxu1 %v2935_v11 }
 0x1b2   : > { %v1891_v52 = vpop.permute.xlu0 %1890  ;;  %2938 = vmatpush3.bf16.msra.mxu1 %v2935_v11 }
 0x1b3   : > { %v1863_v27 = vpop.permute.xlu1 %1862  ;;  %v1995_v41 = vsel %vm1989_vm14, %v1986_v45, %v1891_v52  ;;  %v2595_v52 = vld [vmem:[%s4302_s3 + $0x38] sm:$0xff] }
 0x1b6   : > { %v1799_v3 = vpop.permute.xlu0 %1798 }
 0x1b7   : > { %v1895_v34 = vpop.permute.xlu1 %1894  ;;  %v1970_v62 = vsel %vm1962_vm11, %v1961_v21, %v1799_v3 }
 0x1b8   : > { %v1979_v56 = vsel %vm1971_vm12, %v1970_v62, %v1831_v0  ;;  %v2594_v0 = vld [vmem:[%s4302_s3 + $0x30] sm:$0xff] }
 0x1b9   : > { %v1988_v10 = vsel %vm1980_vm13, %v1979_v56, %v1863_v27  ;;  %v2939_v3 = vpack.c.bf16 %v2595_v52, %v2594_v0  ;;  %v2596_v27 = vld [vmem:[%s4302_s3 + $0x40] sm:$0xff] }
 0x1ba   : > { %v1923_v49 = vpop.permute.xlu0 %1922  ;;  %v1997_v36 = vsel %vm1989_vm14, %v1988_v10, %v1895_v34 }
 0x1bb   : > { %v2004_v31 = vsel %vm1998_vm15, %v1995_v41, %v1923_v49  ;;  %v1927_v4 = vpop.permute.xlu1 %1926  ;;  %2940 = vmatprep.subr.bf16.mxu1 %v2939_v3 }
 0x1bc   : > { %2884 = vmatmul.mubr.msk.f32.gmra.mrb[4].mxu0 %vm2019_vm0, %v2004_v31  ;;  %v2006_v12 = vsel %vm1998_vm15, %v1997_v36, %v1927_v4  ;;  %2942 = vmatpush3.bf16.msra.mxu1 %v2939_v3  ;;  %v2263_v3 = vld [vmem:[#allocation3 + $0x92] sm:$0xff] }
 0x1bd   : > { %2905 = vmatprep.subr.mxu1 %v2596_v27 }
 0x1be   : > { %v1861_v16 = vpop.permute.xlu0 %1860 }
 0x1bf   : > { %v1987_v5 = vsel %vm1980_vm13, %v1978_v14, %v1861_v16  ;;  %v4130_v48 = vpop.permute.xlu1 %2446 }
 0x1c0   : > { %2906 = vmatpush3.msra.mxu1 %v2596_v27 }
 0x1c2   : > { %v1893_v17 = vpop.permute.xlu0 %1892 }
 0x1c3   : > { %v1996_v22 = vsel %vm1989_vm14, %v1987_v5, %v1893_v17  ;;  %v4132_v41 = vpop.permute.xlu1 %2478 }
 0x1c6   : > { %v1925_v59 = vpop.permute.xlu0 %1924 }
 0x1c7   : > { %v2005_v40 = vsel %vm1998_vm15, %v1996_v22, %v1925_v59 }
 0x1c8   : > { %2886 = vmatprep.mubr.msk.f32.mxu0 %vm2019_vm0, %v2005_v40 }
 0x1c9   : > { %2887 = vmatmul.mubr.msk.f32.gmra.mrb[6].mxu0 %vm2019_vm0, %v2006_v12 }
 0x1ca   : > { %v2273_v13 = vpop.permute.xlu0 %2272 }
 0x1ce   : > { %v2305_v21 = vpop.permute.xlu0 %2304 }
 0x20f   : > { %v2879_v37 = vpop.f32.mrb[0].mxu0 }
 0x210   : > { %v2120_v9 = vadd.f32 %v2879_v37, %v4049_v7  ;;  %v2114_v42 = vpop.f32.mrb[1].mxu0 }
 0x211   : > { %v2115_v58 = vadd.f32 %v4049_v7, %v2114_v42  ;;  %v2191_v42 = vld [vmem:[#allocation3] sm:$0xff] }
 0x212   : > { %v2154_v47 = vmax.f32 %v2120_v9, 0.0 }
 0x213   : > { %v2153_v60 = vmax.f32 %v2115_v58, 0.0 }
 0x214   : > { %2184 = vst.msk [vmem:[#allocation3 + $0x21] sm:$0xff] %vm1944_vm9, %v2154_v47 }
 0x215   : > { %2183 = vst.msk [vmem:[#allocation3 + $0x11] sm:$0xff] %vm1944_vm9, %v2153_v60  ;;  %v2520_v60 = vsel %vm1944_vm9, %v2191_v42, %v2273_v13 }
 0x21b   : > { %v2224_v51 = vld [vmem:[#allocation3 + $0x21] sm:$0xff] }
 0x21c   : > { %v4055_v29 = vld [vmem:[#allocation3 + $0x20] sm:$0xff]  ;;  %2370 = vrot.lane.b32.xlu0 %v2224_v51, %s2980_s6  ;;  %v4062_v55 = vld [vmem:[#allocation3 + $0x10] sm:$0xff] }
 0x21d   : > { %2338 = vrot.lane.b32.xlu1 %v4055_v29, %s2978_s29  ;;  %v2232_v54 = vld [vmem:[#allocation3 + $0x22] sm:$0xff]  ;;  %v2223_v43 = vld [vmem:[#allocation3 + $0x11] sm:$0xff] }
 0x21e   : > { %v2208_v20 = vld [vmem:[#allocation3 + $0x12] sm:$0xff] }
 0x220   : > { %2402 = vrot.lane.b32.xlu0 %v2232_v54, %s2983_s23 }
 0x221   : > { %2276 = vrot.lane.b32.xlu1 %v2224_v51, %s2974_s25 }
 0x224   : > { %2336 = vrot.lane.b32.xlu0 %v4062_v55, %s2978_s29 }
 0x225   : > { %2308 = vrot.lane.b32.xlu1 %v2232_v54, %s2976_s27 }
 0x228   : > { %2368 = vrot.lane.b32.xlu0 %v2223_v43, %s2980_s6 }
 0x229   : > { %2432 = vrot.lane.b32.xlu1 %v4055_v29, %s2981_s17 }
 0x22d   : > { %2464 = vrot.lane.b32.xlu1 %v2224_v51, %s2982_s20 }
 0x231   : > { %2496 = vrot.lane.b32.xlu1 %v2232_v54, %s2984_s24  ;;  %v2528_v54 = vsel %vm1962_vm11, %v2520_v60, %v2305_v21 }
 0x235   : > { %2274 = vrot.lane.b32.xlu1 %v2223_v43, %s2974_s25 }
 0x239   : > { %2306 = vrot.lane.b32.xlu1 %v2208_v20, %s2976_s27 }
 0x23d   : > { %2400 = vrot.lane.b32.xlu1 %v2208_v20, %s2983_s23 }
 0x241   : > { %v2882_v30 = vpop.f32.mrb[2].mxu0 }
 0x242   : > { %v2130_v24 = vadd.f32 %v2882_v30, %v4049_v7  ;;  %v2124_v50 = vpop.f32.mrb[3].mxu0 }
 0x243   : > { %v2125_v33 = vadd.f32 %v4049_v7, %v2124_v50 }
 0x244   : > { %v2156_v44 = vmax.f32 %v2130_v24, 0.0 }
 0x245   : > { %v2155_v19 = vmax.f32 %v2125_v33, 0.0 }
 0x246   : > { %2186 = vst.msk [vmem:[#allocation3 + $0x41] sm:$0xff] %vm1944_vm9, %v2156_v44 }
 0x247   : > { %2185 = vst.msk [vmem:[#allocation3 + $0x31] sm:$0xff] %vm1944_vm9, %v2155_v19 }
 0x24d   : > { %v4079_v28 = vld [vmem:[#allocation3 + $0x40] sm:$0xff] }
 0x24e   : > { %v2203_v26 = vld [vmem:[#allocation3 + $0x41] sm:$0xff]  ;;  %2342 = vrot.lane.b32.xlu0 %v4079_v28, %s2978_s29  ;;  %v2202_v25 = vld [vmem:[#allocation3 + $0x31] sm:$0xff] }
 0x24f   : > { %2374 = vrot.lane.b32.xlu1 %v2203_v26, %s2980_s6  ;;  %v2234_v35 = vld [vmem:[#allocation3 + $0x42] sm:$0xff]  ;;  %v2210_v6 = vld [vmem:[#allocation3 + $0x32] sm:$0xff] }
 0x250   : > { %v4099_v18 = vld [vmem:[#allocation3 + $0x30] sm:$0xff] }
 0x252   : > { %2280 = vrot.lane.b32.xlu0 %v2203_v26, %s2974_s25 }
 0x253   : > { %2312 = vrot.lane.b32.xlu1 %v2234_v35, %s2976_s27 }
 0x256   : > { %2406 = vrot.lane.b32.xlu0 %v2234_v35, %s2983_s23 }
 0x257   : > { %2436 = vrot.lane.b32.xlu1 %v4079_v28, %s2981_s17 }
 0x25a   : > { %2278 = vrot.lane.b32.xlu0 %v2202_v25, %s2974_s25 }
 0x25b   : > { %2468 = vrot.lane.b32.xlu1 %v2203_v26, %s2982_s20 }
 0x25e   : > { %2310 = vrot.lane.b32.xlu0 %v2210_v6, %s2976_s27 }
 0x25f   : > { %2500 = vrot.lane.b32.xlu1 %v2234_v35, %s2984_s24 }
 0x262   : > { %2434 = vrot.lane.b32.xlu0 %v4099_v18, %s2981_s17 }
 0x263   : > { %2340 = vrot.lane.b32.xlu1 %v4099_v18, %s2978_s29 }
 0x266   : > { %2466 = vrot.lane.b32.xlu0 %v2202_v25, %s2982_s20 }
 0x267   : > { %2372 = vrot.lane.b32.xlu1 %v2202_v25, %s2980_s6 }
 0x26a   : > { %2404 = vrot.lane.b32.xlu0 %v2210_v6, %s2983_s23 }
 0x26b   : > { %2498 = vrot.lane.b32.xlu1 %v2210_v6, %s2984_s24 }
 0x28e   : > { %v4153_v22 = vpop.permute.xlu0 %2370 }
 0x28f   : > { %v2885_v45 = vpop.f32.mrb[4].mxu0  ;;  %v4138_v57 = vpop.permute.xlu1 %2338 }
 0x290   : > { %v2140_v49 = vadd.f32 %v2885_v45, %v4049_v7  ;;  %v2134_v31 = vpop.f32.mrb[5].mxu0 }
 0x291   : > { %v2135_v34 = vadd.f32 %v4049_v7, %v2134_v31 }
 0x292   : > { %v2158_v16 = vmax.f32 %v2140_v49, 0.0  ;;  %v4160_v40 = vpop.permute.xlu0 %2402 }
 0x293   : > { %v2157_v53 = vmax.f32 %v2135_v34, 0.0  ;;  %v4140_v61 = vpop.permute.xlu1 %2276 }
 0x294   : > { %2188 = vst.msk [vmem:[#allocation3 + $0x61] sm:$0xff] %vm1944_vm9, %v2158_v16 }
 0x295   : > { %2187 = vst.msk [vmem:[#allocation3 + $0x51] sm:$0xff] %vm1944_vm9, %v2157_v53 }
 0x296   : > { %v2337_v58 = vpop.permute.xlu0 %2336 }
 0x297   : > { %v4148_v4 = vpop.permute.xlu1 %2308  ;;  %v2536_v30 = vsel %vm1980_vm13, %v2528_v54, %v2337_v58 }
 0x29a   : > { %v2369_v20 = vpop.permute.xlu0 %2368 }
 0x29b   : > { %v4142_v32 = vld [vmem:[#allocation3 + $0x60] sm:$0xff]  ;;  %v2433_v12 = vpop.permute.xlu1 %2432  ;;  %v2544_v24 = vsel %vm1998_vm15, %v2536_v30, %v2369_v20 }
 0x29c   : > { %v2205_v62 = vld [vmem:[#allocation3 + $0x61] sm:$0xff]  ;;  %v2888_v17 = vpop.f32.mrb[6].mxu0  ;;  %2346 = vrot.lane.b32.xlu0 %v4142_v32, %s2978_s29  ;;  %v2212_v9 = vld [vmem:[#allocation3 + $0x52] sm:$0xff] }
 0x29d   : > { %2378 = vrot.lane.b32.xlu1 %v2205_v62, %s2980_s6  ;;  %v2150_v8 = vadd.f32 %v2888_v17, %v4049_v7  ;;  %v2144_v56 = vpop.f32.mrb[7].mxu0  ;;  %v2236_v5 = vld [vmem:[#allocation3 + $0x62] sm:$0xff]  ;;  %v4167_v51 = vld [vmem:[#allocation3 + $0x50] sm:$0xff] }
 0x29e   : > { %v2145_v14 = vadd.f32 %v4049_v7, %v2144_v56  ;;  %v2204_v7 = vld [vmem:[#allocation3 + $0x51] sm:$0xff] }
 0x29f   : > { %v2160_v10 = vmax.f32 %v2150_v8, 0.0  ;;  %v2465_v59 = vpop.permute.xlu1 %2464  ;;  %v2522_v8 = vsel %vm1944_vm9, %v4055_v29, %v4140_v61 }
 0x2a0   : > { %v2159_v36 = vmax.f32 %v2145_v14, 0.0  ;;  %2284 = vrot.lane.b32.xlu0 %v2205_v62, %s2974_s25  ;;  %v2530_v14 = vsel %vm1962_vm11, %v2522_v8, %v4148_v4 }
 0x2a1   : > { %2316 = vrot.lane.b32.xlu1 %v2236_v5, %s2976_s27  ;;  %2190 = vst.msk [vmem:[#allocation3 + $0x81] sm:$0xff] %vm1944_vm9, %v2160_v10 }
 0x2a2   : > { %2189 = vst.msk [vmem:[#allocation3 + $0x71] sm:$0xff] %vm1944_vm9, %v2159_v36 }
 0x2a3   : > { %v2497_v37 = vpop.permute.xlu1 %2496 }
 0x2a4   : > { %2410 = vrot.lane.b32.xlu0 %v2236_v5, %s2983_s23 }
 0x2a5   : > { %2440 = vrot.lane.b32.xlu1 %v4142_v32, %s2981_s17 }
 0x2a7   : > { %v2275_v47 = vpop.permute.xlu1 %2274 }
 0x2a8   : > { %2282 = vrot.lane.b32.xlu0 %v2204_v7, %s2974_s25  ;;  %v2222_v35 = vld [vmem:[#allocation3 + $0x80] sm:$0xff] }
 0x2a9   : > { %2472 = vrot.lane.b32.xlu1 %v2205_v62, %s2982_s20  ;;  %v2238_v25 = vld [vmem:[#allocation3 + $0x82] sm:$0xff]  ;;  %v4187_v15 = vld [vmem:[#allocation3 + $0x70] sm:$0xff] }
 0x2aa   : > { %v2230_v6 = vld [vmem:[#allocation3 + $0x81] sm:$0xff]  ;;  %v2229_v39 = vld [vmem:[#allocation3 + $0x71] sm:$0xff] }
 0x2ab   : > { %v2307_v43 = vpop.permute.xlu1 %2306  ;;  %v2237_v11 = vld [vmem:[#allocation3 + $0x72] sm:$0xff] }
 0x2ac   : > { %2314 = vrot.lane.b32.xlu0 %v2212_v9, %s2976_s27 }
 0x2ad   : > { %2504 = vrot.lane.b32.xlu1 %v2236_v5, %s2984_s24 }
 0x2af   : > { %v2401_v50 = vpop.permute.xlu1 %2400 }
 0x2b0   : > { %2438 = vrot.lane.b32.xlu0 %v4167_v51, %s2981_s17  ;;  %v2553_v33 = vsel %vm2552_vm1, %v2544_v24, %v2401_v50 }
 0x2b1   : > { %2344 = vrot.lane.b32.xlu1 %v4167_v51, %s2978_s29  ;;  %v2562_v44 = vsel %vm2561_vm4, %v2553_v33, %v2433_v12 }
 0x2b2   : > { %v2571_v19 = vsel %vm2570_vm5, %v2562_v44, %v2465_v59 }
 0x2b3   : > { %v2580_v26 = vsel %vm2579_vm6, %v2571_v19, %v2497_v37 }
 0x2b4   : > { %2470 = vrot.lane.b32.xlu0 %v2204_v7, %s2982_s20  ;;  %2907 = vmatprep.mubr.msk.f32.mxu1 %vm2604_vm7, %v2580_v26 }
 0x2b5   : > { %2376 = vrot.lane.b32.xlu1 %v2204_v7, %s2980_s6 }
 0x2b8   : > { %2408 = vrot.lane.b32.xlu0 %v2212_v9, %s2983_s23 }
 0x2b9   : > { %2502 = vrot.lane.b32.xlu1 %v2212_v9, %s2984_s24 }
 0x2bc   : > { %2350 = vrot.lane.b32.xlu0 %v2222_v35, %s2978_s29 }
 0x2bd   : > { %2414 = vrot.lane.b32.xlu1 %v2238_v25, %s2983_s23 }
 0x2c0   : > { %2382 = vrot.lane.b32.xlu0 %v2230_v6, %s2980_s6  ;;  %v2343_v38 = vpop.permute.xlu0 %2342 }
 0x2c1   : > { %2348 = vrot.lane.b32.xlu1 %v4187_v15, %s2978_s29  ;;  %v2375_v63 = vpop.permute.xlu1 %2374  ;;  %s2836_s29 = sshll.u32 %s4306_s19, 6 }
 0x2c4   : > { %2444 = vrot.lane.b32.xlu0 %v2222_v35, %s2981_s17  ;;  %v2281_v1 = vpop.permute.xlu0 %2280 }
 0x2c5   : > { %2380 = vrot.lane.b32.xlu1 %v2229_v39, %s2980_s6  ;;  %v2313_v46 = vpop.permute.xlu1 %2312  ;;  %v2524_v23 = vsel %vm1944_vm9, %v4079_v28, %v2281_v1  ;;  %v2521_v28 = vsel %vm1944_vm9, %v4062_v55, %v2275_v47 }
 0x2c6   : > { %v2532_v2 = vsel %vm1962_vm11, %v2524_v23, %v2313_v46  ;;  %v2529_v16 = vsel %vm1962_vm11, %v2521_v28, %v2307_v43 }
 0x2c7   : > { %v2537_v62 = vsel %vm1980_vm13, %v2529_v16, %v4138_v57 }
 0x2c8   : > { %2476 = vrot.lane.b32.xlu0 %v2230_v6, %s2982_s20  ;;  %v2407_v0 = vpop.permute.xlu0 %2406  ;;  %v2545_v56 = vsel %vm1998_vm15, %v2537_v62, %v4153_v22 }
 0x2c9   : > { %2412 = vrot.lane.b32.xlu1 %v2237_v11, %s2983_s23  ;;  %v2437_v52 = vpop.permute.xlu1 %2436  ;;  %v2554_v36 = vsel %vm2552_vm1, %v2545_v56, %v4160_v40 }
 0x2cc   : > { %2286 = vrot.lane.b32.xlu0 %v2229_v39, %s2974_s25  ;;  %v2279_v27 = vpop.permute.xlu0 %2278 }
 0x2cd   : > { %2510 = vrot.lane.b32.xlu1 %v2263_v3, %s2984_s24  ;;  %v2469_v45 = vpop.permute.xlu1 %2468  ;;  %v2523_v49 = vsel %vm1944_vm9, %v4099_v18, %v2279_v27 }
 0x2d0   : > { %2318 = vrot.lane.b32.xlu0 %v2237_v11, %s2976_s27  ;;  %v2311_v31 = vpop.permute.xlu0 %2310 }
 0x2d1   : > { %v2501_v34 = vpop.permute.xlu1 %2500  ;;  %v2531_v53 = vsel %vm1962_vm11, %v2523_v49, %v2311_v31 }
 0x2d2   : > { %v2539_v13 = vsel %vm1980_vm13, %v2531_v53, %v2343_v38 }
 0x2d3   : > { %v2547_v21 = vsel %vm1998_vm15, %v2539_v13, %v2375_v63 }
 0x2d4   : > { %2442 = vrot.lane.b32.xlu0 %v4187_v15, %s2981_s17  ;;  %v2435_v55 = vpop.permute.xlu0 %2434  ;;  %v2556_v18 = vsel %vm2552_vm1, %v2547_v21, %v2407_v0 }
 0x2d5   : > { %v2341_v17 = vpop.permute.xlu1 %2340  ;;  %v2563_v59 = vsel %vm2561_vm4, %v2554_v36, %v2435_v55 }
 0x2d6   : > { %v2538_v57 = vsel %vm1980_vm13, %v2530_v14, %v2341_v17 }
 0x2d8   : > { %2474 = vrot.lane.b32.xlu0 %v2229_v39, %s2982_s20  ;;  %v2467_v10 = vpop.permute.xlu0 %2466  ;;  %s224_s20 = scalar_lea.vmem %s4304_s5, %s2836_s29 }
 0x2d9   : > { %v2373_v5 = vpop.permute.xlu1 %2372  ;;  %v2572_v29 = vsel %vm2570_vm5, %v2563_v59, %v2467_v10 }
 0x2da   : > { %v2546_v12 = vsel %vm1998_vm15, %v2538_v57, %v2373_v5 }
 0x2dc   : > { %2506 = vrot.lane.b32.xlu0 %v2237_v11, %s2984_s24  ;;  %v2405_v61 = vpop.permute.xlu0 %2404 }
 0x2dd   : > { %v2499_v22 = vpop.permute.xlu1 %2498  ;;  %v2555_v4 = vsel %vm2552_vm1, %v2546_v12, %v2405_v61 }
 0x2de   : > { %v2581_v7 = vsel %vm2579_vm6, %v2572_v29, %v2499_v22  ;;  %v2564_v37 = vsel %vm2561_vm4, %v2555_v4, %v2437_v52 }
 0x2df   : > { %2908 = vmatmul.mubr.msk.f32.vlgmr.msra.gmra.mrb[0].mxu1 %vm2604_vm7, %v2581_v7  ;;  %v2573_v40 = vsel %vm2570_vm5, %v2564_v37, %v2469_v45 }
 0x2e0   : > { %2508 = vrot.lane.b32.xlu0 %v2238_v25, %s2984_s24  ;;  %v2582_v9 = vsel %vm2579_vm6, %v2573_v40, %v2501_v34 }
 0x2e1   : > { %2910 = vmatprep.mubr.msk.f32.mxu1 %vm2604_vm7, %v2582_v9 }
 0x30e   : > { %v2347_v42 = vpop.permute.xlu0 %2346 }
 0x30f   : > { %v2379_v58 = vpop.permute.xlu1 %2378 }
 0x312   : > { %v2285_v47 = vpop.permute.xlu0 %2284 }
 0x313   : > { %v2317_v60 = vpop.permute.xlu1 %2316 }
 0x316   : > { %v2411_v54 = vpop.permute.xlu0 %2410 }
 0x317   : > { %v2441_v43 = vpop.permute.xlu1 %2440 }
 0x31a   : > { %v2283_v20 = vpop.permute.xlu0 %2282 }
 0x31b   : > { %v2473_v30 = vpop.permute.xlu1 %2472  ;;  %v2525_v31 = vsel %vm1944_vm9, %v4167_v51, %v2283_v20 }
 0x31e   : > { %v2315_v24 = vpop.permute.xlu0 %2314 }
 0x31f   : > { %v2505_v50 = vpop.permute.xlu1 %2504  ;;  %v2533_v53 = vsel %vm1962_vm11, %v2525_v31, %v2315_v24 }
 0x320   : > { %v2541_v55 = vsel %vm1980_vm13, %v2533_v53, %v2347_v42 }
 0x322   : > { %v2439_v33 = vpop.permute.xlu0 %2438 }
 0x323   : > { %v2345_v44 = vpop.permute.xlu1 %2344  ;;  %v2565_v6 = vsel %vm2561_vm4, %v2556_v18, %v2439_v33  ;;  %v2526_v18 = vsel %vm1944_vm9, %v4142_v32, %v2285_v47 }
 0x324   : > { %v2540_v35 = vsel %vm1980_vm13, %v2532_v2, %v2345_v44  ;;  %v2534_v51 = vsel %vm1962_vm11, %v2526_v18, %v2317_v60 }
 0x326   : > { %v2471_v19 = vpop.permute.xlu0 %2470 }
 0x327   : > { %v2377_v26 = vpop.permute.xlu1 %2376  ;;  %v2574_v38 = vsel %vm2570_vm5, %v2565_v6, %v2471_v19 }
 0x328   : > { %v2548_v25 = vsel %vm1998_vm15, %v2540_v35, %v2377_v26 }
 0x32a   : > { %v2409_v63 = vpop.permute.xlu0 %2408 }
 0x32b   : > { %v2503_v39 = vpop.permute.xlu1 %2502  ;;  %v2557_v1 = vsel %vm2552_vm1, %v2548_v25, %v2409_v63 }
 0x32c   : > { %v2583_v46 = vsel %vm2579_vm6, %v2574_v38, %v2503_v39  ;;  %v2566_v23 = vsel %vm2561_vm4, %v2557_v1, %v2441_v43 }
 0x32d   : > { %2911 = vmatmul.mubr.msk.f32.gmra.mrb[2].mxu1 %vm2604_vm7, %v2583_v46  ;;  %v2575_v11 = vsel %vm2570_vm5, %v2566_v23, %v2473_v30 }
 0x32e   : > { %v2351_v0 = vpop.permute.xlu0 %2350  ;;  %v2584_v2 = vsel %vm2579_vm6, %v2575_v11, %v2505_v50 }
 0x32f   : > { %2913 = vmatprep.mubr.msk.f32.mxu1 %vm2604_vm7, %v2584_v2  ;;  %v2415_v27 = vpop.permute.xlu1 %2414 }
 0x332   : > { %v2383_v52 = vpop.permute.xlu0 %2382 }
 0x333   : > { %v2349_v28 = vpop.permute.xlu1 %2348 }
 0x334   : > { %v2542_v14 = vsel %vm1980_vm13, %v2534_v51, %v2349_v28 }
 0x336   : > { %v2445_v3 = vpop.permute.xlu0 %2444 }
 0x337   : > { %v2381_v13 = vpop.permute.xlu1 %2380 }
 0x338   : > { %v2550_v5 = vsel %vm1998_vm15, %v2542_v14, %v2381_v13 }
 0x33a   : > { %v2477_v45 = vpop.permute.xlu0 %2476 }
 0x33b   : > { %v2413_v56 = vpop.permute.xlu1 %2412 }
 0x33c   : > { %v2559_v36 = vsel %vm2552_vm1, %v2550_v5, %v2413_v56 }
 0x33d   : > { %v2568_v22 = vsel %vm2561_vm4, %v2559_v36, %v2445_v3 }
 0x33e   : > { %v2287_v49 = vpop.permute.xlu0 %2286  ;;  %v2577_v9 = vsel %vm2570_vm5, %v2568_v22, %v2477_v45 }
 0x33f   : > { %v2527_v34 = vsel %vm1944_vm9, %v4187_v15, %v2287_v49  ;;  %v2549_v15 = vsel %vm1998_vm15, %v2541_v55, %v2379_v58  ;;  %v2511_v37 = vpop.permute.xlu1 %2510  ;;  %v2824_v58 = vld [vmem:[%s4303_s4] ss:$0 sm:$0xff] }
 0x340   : > { %v2558_v12 = vsel %vm2552_vm1, %v2549_v15, %v2411_v54 }
 0x342   : > { %v2319_v16 = vpop.permute.xlu0 %2318 }
 0x343   : > { %v2535_v21 = vsel %vm1962_vm11, %v2527_v34, %v2319_v16 }
 0x344   : > { %v2543_v62 = vsel %vm1980_vm13, %v2535_v21, %v2351_v0 }
 0x345   : > { %v2551_v8 = vsel %vm1998_vm15, %v2543_v62, %v2383_v52 }
 0x346   : > { %v2443_v17 = vpop.permute.xlu0 %2442  ;;  %v2560_v57 = vsel %vm2552_vm1, %v2551_v8, %v2415_v27 }
 0x347   : > { %v2567_v32 = vsel %vm2561_vm4, %v2558_v12, %v2443_v17  ;;  %v2569_v59 = vsel %vm2561_vm4, %v2560_v57, %v4130_v48 }
 0x348   : > { %v2578_v7 = vsel %vm2570_vm5, %v2569_v59, %v4132_v41 }
 0x349   : > { %v2587_v48 = vsel %vm2579_vm6, %v2578_v7, %v2511_v37 }
 0x34a   : > { %v2475_v10 = vpop.permute.xlu0 %2474 }
 0x34b   : > { %v2576_v29 = vsel %vm2570_vm5, %v2567_v32, %v2475_v10 }
 0x34e   : > { %v2507_v61 = vpop.permute.xlu0 %2506 }
 0x34f   : > { %v2585_v4 = vsel %vm2579_vm6, %v2576_v29, %v2507_v61 }
 0x350   : > { %2914 = vmatmul.mubr.msk.f32.gmra.mrb[4].mxu1 %vm2604_vm7, %v2585_v4 }
 0x352   : > { %v2509_v40 = vpop.permute.xlu0 %2508 }
 0x353   : > { %v2586_v42 = vsel %vm2579_vm6, %v2577_v9, %v2509_v40 }
 0x354   : > { %2916 = vmatprep.mubr.msk.f32.mxu1 %vm2604_vm7, %v2586_v42 }
 0x355   : > { %2917 = vmatmul.mubr.msk.f32.gmra.mrb[6].mxu1 %vm2604_vm7, %v2587_v48 }
 0x3b2   : > { %v2909_v47 = vpop.f32.mrb[0].mxu1 }
 0x3b3   : > { %v2701_v60 = vadd.f32 %v2909_v47, %v2824_v58  ;;  %v2695_v41 = vpop.f32.mrb[1].mxu1 }
 0x3b4   : > { %v2696_v54 = vadd.f32 %v2824_v58, %v2695_v41 }
 0x3b5   : > { %v2735_v43 = vmax.f32 %v2701_v60, 0.0 }
 0x3b6   : > { %v2734_v20 = vmax.f32 %v2696_v54, 0.0 }
 0x3b7   : > { %2743 = vst.msk [vmem:[%s224_s20 + $0x8] sm:$0xff] %vm1944_vm9, %v2735_v43 }
 0x3b8   : > { %2742 = vst.msk [vmem:[%s224_s20] sm:$0xff] %vm1944_vm9, %v2734_v20 }
 0x400   : > { %v2912_v30 = vpop.f32.mrb[2].mxu1 }
 0x401   : > { %v2711_v24 = vadd.f32 %v2912_v30, %v2824_v58  ;;  %v2705_v50 = vpop.f32.mrb[3].mxu1 }
 0x402   : > { %v2706_v33 = vadd.f32 %v2824_v58, %v2705_v50 }
 0x403   : > { %v2737_v44 = vmax.f32 %v2711_v24, 0.0 }
 0x404   : > { %v2736_v19 = vmax.f32 %v2706_v33, 0.0 }
 0x405   : > { %2745 = vst.msk [vmem:[%s224_s20 + $0x18] sm:$0xff] %vm1944_vm9, %v2737_v44 }
 0x406   : > { %2744 = vst.msk [vmem:[%s224_s20 + $0x10] sm:$0xff] %vm1944_vm9, %v2736_v19 }
 0x423   : > { %v2915_v26 = vpop.f32.mrb[4].mxu1 }
 0x424   : > { %v2721_v35 = vadd.f32 %v2915_v26, %v2824_v58  ;;  %v2715_v25 = vpop.f32.mrb[5].mxu1 }
 0x425   : > { %v2716_v6 = vadd.f32 %v2824_v58, %v2715_v25 }
 0x426   : > { %v2739_v38 = vmax.f32 %v2721_v35, 0.0 }
 0x427   : > { %v2738_v63 = vmax.f32 %v2716_v6, 0.0 }
 0x428   : > { %2747 = vst.msk [vmem:[%s224_s20 + $0x28] sm:$0xff] %vm1944_vm9, %v2739_v38  ;;  %v2918_v39 = vpop.f32.mrb[6].mxu1 }
 0x429   : > { %2746 = vst.msk [vmem:[%s224_s20 + $0x20] sm:$0xff] %vm1944_vm9, %v2738_v63  ;;  %v2731_v1 = vadd.f32 %v2918_v39, %v2824_v58  ;;  %v2725_v46 = vpop.f32.mrb[7].mxu1 }
 0x42a   : > { %v2726_v23 = vadd.f32 %v2824_v58, %v2725_v46 }
 0x42b   : > { %v2741_v11 = vmax.f32 %v2731_v1, 0.0 }
 0x42c   : > { %v2740_v0 = vmax.f32 %v2726_v23, 0.0 }
 0x42d   : > { %2749 = vst.msk [vmem:[%s224_s20 + $0x38] sm:$0xff] %vm1944_vm9, %v2741_v11 }
 0x42e   : > { %2748 = vst.msk [vmem:[%s224_s20 + $0x30] sm:$0xff] %vm1944_vm9, %v2740_v0 }
 0x42f PF: > { %s15_s18 = sadd.s32 1, %s2970_s18  }
 0x430   : > { %p12_p4 = scmp.ge.s32.totalorder %s15_s18, 4  }
 0x432   :  { %14 = sbr.rel (!%p12_p4) target bundleno = 1 (0x1), region = 74 }

</bundles_post_ra>
